<compile_context>
chip_gen: v7x
topology: tpu7x:2x2x1
jax: 0.10.0
libtpu: 0.0.40
codegen_flags: <defaults>
</compile_context>

<pallas_src>
import jax
import jax.numpy as jnp
from jax.experimental import pallas as pl
from jax.experimental.pallas import tpu as pltpu  # noqa: F401  (TPU backend)


# ----------------------------- config ---------------------------------------
class CFG:
    ENCOD_DATA_DIM = 16   # observed data dim
    ENCOD_SEQ_LEN = 8     # sequence length T
    IC_ENC_DIM = 16       # IC encoder GRU hidden
    CI_ENC_DIM = 8        # CI encoder GRU hidden
    IC_DIM = 8            # initial-condition latent dim
    CO_DIM = 4            # controller-output dim
    CON_DIM = 16          # controller GRU hidden
    GEN_DIM = 32          # generator GRU hidden
    LATENT_DIM = 8        # factor dim (readout: LATENT_DIM -> ENCOD_DATA_DIM)


# ------------------ packed output slab layouts (lane offsets) ----------------
# per-time-step slab: (T, B, 128)
_OFF_CI = 0
_OFF_GEN = _OFF_CI + 2 * CFG.CI_ENC_DIM           # 16
_OFF_CON = _OFF_GEN + CFG.GEN_DIM                 # 48
_OFF_COM = _OFF_CON + CFG.CON_DIM                 # 64
_OFF_COS = _OFF_COM + CFG.CO_DIM                  # 68
_OFF_FAC = _OFF_COS + CFG.CO_DIM                  # 72
_OFF_PRED = _OFF_FAC + CFG.LATENT_DIM             # 80
_SEQ_USED = _OFF_PRED + CFG.ENCOD_DATA_DIM        # 96
_SEQ_W = 128                                      # lane-dense slab width

# per-trial slab: (B, 128)
_VOFF_ICM = 0
_VOFF_ICS = _VOFF_ICM + CFG.IC_DIM                # 8
_VOFF_G0 = _VOFF_ICS + CFG.IC_DIM                 # 16
_VEC_USED = _VOFF_G0 + CFG.GEN_DIM                # 48
_VEC_W = 128


# ------------------------- GRU cell helpers (values) -------------------------
def _gru_gates(gi, gh, h):
    """PyTorch nn.GRUCell semantics given pre-computed gate pre-activations."""
    H = h.shape[-1]
    r = jax.nn.sigmoid(gi[:, :H] + gh[:, :H])
    z = jax.nn.sigmoid(gi[:, H:2 * H] + gh[:, H:2 * H])
    n = jnp.tanh(gi[:, 2 * H:] + r * gh[:, 2 * H:])
    return (1.0 - z) * n + z * h


# --------------------------- fused LFADS kernel -------------------------------
def _lfads_fused_kernel(
    x_ref,                                                   # (T*B, D) time-major flat
    encf_wih_ref, encf_whh_ref, encf_bih_ref, encf_bhh_ref,  # combined fwd enc GRU
    encb_wih_ref, encb_whh_ref, encb_bih_ref, encb_bhh_ref,  # combined bwd enc GRU
    icl_w_ref, icl_b_ref,                                    # ic_linear
    g0_w_ref, g0_b_ref,                                      # ic_to_g0
    con_wci_ref, con_wfac_ref, con_whh_ref, con_bih_ref, con_bhh_ref,  # controller GRU
    cogen_w_ref, cogen_b_ref,                                # fused co_linear + gen W_ih
    gen_whh_ref, gen_bhh_ref,                                # generator GRU hidden side
    facpred_w_ref, facpred_b_ref,                            # fused fac_linear + readout
    seq_ref, vec_ref,                                        # packed outputs
):
    f32 = jnp.float32
    T, B, _ = seq_ref.shape
    ICE, CIE = CFG.IC_ENC_DIM, CFG.CI_ENC_DIM
    HE = ICE + CIE
    IC, CO, LAT = CFG.IC_DIM, CFG.CO_DIM, CFG.LATENT_DIM
    CON = CFG.CON_DIM

    # -- load weights once; everything stays resident in VMEM / vregs --
    encf_whh = encf_whh_ref[...]; encf_bhh = encf_bhh_ref[...]
    encb_whh = encb_whh_ref[...]; encb_bhh = encb_bhh_ref[...]
    con_wci = con_wci_ref[...]; con_wfac = con_wfac_ref[...]
    con_whh = con_whh_ref[...]; con_bih = con_bih_ref[...]; con_bhh = con_bhh_ref[...]
    cogen_w = cogen_w_ref[...]; cogen_b = cogen_b_ref[...]
    gen_whh = gen_whh_ref[...]; gen_bhh = gen_bhh_ref[...]
    facpred_w = facpred_w_ref[...]; facpred_b = facpred_b_ref[...]

    x = x_ref[...]                                           # (T*B, D)

    # -- encoder input-side gate pre-activations, batched over all T at once --
    gi_f_flat = jnp.dot(x, encf_wih_ref[...],
                        preferred_element_type=f32) + encf_bih_ref[...]   # (T*B, 3*HE)
    gi_b_flat = jnp.dot(x, encb_wih_ref[...],
                        preferred_element_type=f32) + encb_bih_ref[...]   # (T*B, 3*HE)

    # -- fused bidirectional encoders: {IC-enc (+) CI-enc} per direction (unrolled) --
    h_f = jnp.zeros((B, HE), f32)
    h_b = jnp.zeros((B, HE), f32)
    cf_list = [None] * T
    cb_list = [None] * T
    for t in range(T):
        gh_f = jnp.dot(h_f, encf_whh, preferred_element_type=f32) + encf_bhh
        h_f = _gru_gates(gi_f_flat[t * B:(t + 1) * B], gh_f, h_f)
        gh_b = jnp.dot(h_b, encb_whh, preferred_element_type=f32) + encb_bhh
        h_b = _gru_gates(gi_b_flat[(T - 1 - t) * B:(T - t) * B], gh_b, h_b)
        cf_list[t] = h_f[:, ICE:]            # CI-enc fwd hidden at forward time t
        cb_list[T - 1 - t] = h_b[:, ICE:]    # CI-enc bwd hidden, forward-time index

    # IC posterior parameters (only the final fwd/bwd IC-enc states are used)
    ic_in = jnp.concatenate([h_f[:, :ICE], h_b[:, :ICE]], axis=-1)
    ic_params = jnp.dot(ic_in, icl_w_ref[...], preferred_element_type=f32) + icl_b_ref[...]
    ic_mean = ic_params[:, :IC]
    ic_std = jnp.exp(0.5 * ic_params[:, IC:])

    # ---------------- decoder init (sample_posteriors=False -> ic_mean) -------
    gen_init = jnp.dot(ic_mean, g0_w_ref[...], preferred_element_type=f32) + g0_b_ref[...]
    fac = jnp.dot(gen_init, facpred_w, preferred_element_type=f32)[:, :LAT]
    gen_h = gen_init
    con_h = jnp.zeros((B, CON), f32)

    pad_seq = jnp.zeros((B, _SEQ_W - _SEQ_USED), f32)

    # ---------------- decoder time loop (unrolled) -----------------------------
    for t in range(T):
        ci_t = jnp.concatenate([cf_list[t], cb_list[t]], axis=-1)       # (B, 2*CIE)

        # controller GRU on [ci_t, fac_prev]
        gi = (jnp.dot(ci_t, con_wci, preferred_element_type=f32)
              + jnp.dot(fac, con_wfac, preferred_element_type=f32)
              + con_bih)
        gh = jnp.dot(con_h, con_whh, preferred_element_type=f32) + con_bhh
        con_h = _gru_gates(gi, gh, con_h)

        # fused: controller-output posterior params + generator input gates
        cogen = jnp.dot(con_h, cogen_w, preferred_element_type=f32) + cogen_b
        co_mean = cogen[:, :CO]
        co_std = jnp.exp(0.5 * cogen[:, CO:2 * CO])
        gen_gi = cogen[:, 2 * CO:]           # == co_mean @ gen_wih + gen_bih

        # generator GRU (sample_posteriors=False, ext_input dim == 0 -> input = co_mean)
        gen_gh = jnp.dot(gen_h, gen_whh, preferred_element_type=f32) + gen_bhh
        gen_h = _gru_gates(gen_gi, gen_gh, gen_h)

        # fused: factors (no bias) + readout in one matmul
        facpred = jnp.dot(gen_h, facpred_w, preferred_element_type=f32) + facpred_b
        fac = facpred[:, :LAT]
        pred_t = facpred[:, LAT:]

        # one lane-dense 128-wide packed store per step
        seq_ref[t] = jnp.concatenate(
            [ci_t, gen_h, con_h, co_mean, co_std, fac, pred_t, pad_seq], axis=-1)

    # ---------------- per-trial packed output ---------------------------------
    pad_vec = jnp.zeros((B, _VEC_W - _VEC_USED), f32)
    vec_ref[...] = jnp.concatenate([ic_mean, ic_std, gen_init, pad_vec], axis=-1)


# --------------------------- parameter init ----------------------------------
def _uniform(key, shape, fan):
    bound = 1.0 / float(fan) ** 0.5
    return jax.random.uniform(key, shape, jnp.float32, -bound, bound)


def init_gru_params(key, input_dim, hidden_dim):
    k1, k2, k3, k4 = jax.random.split(key, 4)
    return dict(
        wih_t=_uniform(k1, (input_dim, 3 * hidden_dim), hidden_dim),
        whh_t=_uniform(k2, (hidden_dim, 3 * hidden_dim), hidden_dim),
        bih=_uniform(k3, (1, 3 * hidden_dim), hidden_dim),
        bhh=_uniform(k4, (1, 3 * hidden_dim), hidden_dim),
    )


def init_linear_params(key, din, dout, bias=True):
    k1, k2 = jax.random.split(key)
    w_t = _uniform(k1, (din, dout), din)
    b = _uniform(k2, (1, dout), din) if bias else jnp.zeros((1, dout), jnp.float32)
    return dict(w_t=w_t, b=b)


def init_params(key):
    keys = jax.random.split(key, 11)
    D = CFG.ENCOD_DATA_DIM
    CIE = CFG.CI_ENC_DIM

    # controller GRU: input = [ci_fwd, ci_bwd, factors]; pre-split input weight
    con = init_gru_params(keys[6], 2 * CIE + CFG.LATENT_DIM, CFG.CON_DIM)
    con_split = dict(
        wcif_t=con["wih_t"][:CIE],
        wcib_t=con["wih_t"][CIE:2 * CIE],
        wfac_t=con["wih_t"][2 * CIE:],
        whh_t=con["whh_t"], bih=con["bih"], bhh=con["bhh"],
    )

    return {
        "ic_enc_fwd": init_gru_params(keys[0], D, CFG.IC_ENC_DIM),
        "ic_enc_bwd": init_gru_params(keys[1], D, CFG.IC_ENC_DIM),
        "ci_enc_fwd": init_gru_params(keys[2], D, CFG.CI_ENC_DIM),
        "ci_enc_bwd": init_gru_params(keys[3], D, CFG.CI_ENC_DIM),
        "ic_linear": init_linear_params(keys[4], 2 * CFG.IC_ENC_DIM, 2 * CFG.IC_DIM),
        "ic_to_g0": init_linear_params(keys[5], CFG.IC_DIM, CFG.GEN_DIM),
        "con_gru": con_split,
        "co_linear": init_linear_params(keys[7], CFG.CON_DIM, 2 * CFG.CO_DIM),
        "gen_gru": init_gru_params(keys[8], CFG.CO_DIM, CFG.GEN_DIM),
        "fac_linear": init_linear_params(keys[9], CFG.GEN_DIM, CFG.LATENT_DIM,
                                         bias=False),
        "readout": init_linear_params(keys[10], CFG.LATENT_DIM, CFG.ENCOD_DATA_DIM),
    }


# --------------------- one-time weight fusion / packing ----------------------
def _pack_gate_cols(wa, wb, ha, hb):
    """Interleave per-gate column blocks of two GRUs: [r_a,r_b | z_a,z_b | n_a,n_b]."""
    return jnp.concatenate(
        [wa[..., 0:ha], wb[..., 0:hb],
         wa[..., ha:2 * ha], wb[..., hb:2 * hb],
         wa[..., 2 * ha:3 * ha], wb[..., 2 * hb:3 * hb]], axis=-1)


def _combine_enc_grus(ic, ci):
    """Merge the IC-enc and CI-enc GRUs (same direction) into one GRU of hidden
    size ICE+CIE via block-diagonal W_hh and gate-wise column interleaving."""
    ice, cie = CFG.IC_ENC_DIM, CFG.CI_ENC_DIM
    z_ic = jnp.zeros((ice, 3 * cie), jnp.float32)
    z_ci = jnp.zeros((cie, 3 * ice), jnp.float32)
    wih = _pack_gate_cols(ic["wih_t"], ci["wih_t"], ice, cie)
    whh = jnp.concatenate(
        [_pack_gate_cols(ic["whh_t"], z_ic, ice, cie),
         _pack_gate_cols(z_ci, ci["whh_t"], ice, cie)], axis=0)
    bih = _pack_gate_cols(ic["bih"], ci["bih"], ice, cie)
    bhh = _pack_gate_cols(ic["bhh"], ci["bhh"], ice, cie)
    return wih, whh, bih, bhh


def pack_lfads_params(p):
    """Fuse / reorder weights once (outside the jitted forward)."""
    CO = CFG.CO_DIM
    encf = _combine_enc_grus(p["ic_enc_fwd"], p["ci_enc_fwd"])
    encb = _combine_enc_grus(p["ic_enc_bwd"], p["ci_enc_bwd"])

    con = p["con_gru"]
    con_wci = jnp.concatenate([con["wcif_t"], con["wcib_t"]], axis=0)   # (2*CIE, 3*CON)

    co_w, co_b = p["co_linear"]["w_t"], p["co_linear"]["b"]
    gen = p["gen_gru"]
    # fused controller-output linear + generator input-side gates
    cogen_w = jnp.concatenate([co_w, co_w[:, :CO] @ gen["wih_t"]], axis=1)
    cogen_b = jnp.concatenate([co_b, co_b[:, :CO] @ gen["wih_t"] + gen["bih"]], axis=1)

    fac_w = p["fac_linear"]["w_t"]
    ro_w, ro_b = p["readout"]["w_t"], p["readout"]["b"]
    facpred_w = jnp.concatenate([fac_w, fac_w @ ro_w], axis=1)          # (GEN, LAT+D)
    facpred_b = jnp.concatenate([jnp.zeros((1, CFG.LATENT_DIM), jnp.float32), ro_b],
                                axis=1)

    return dict(
        encf_wih=encf[0], encf_whh=encf[1], encf_bih=encf[2], encf_bhh=encf[3],
        encb_wih=encb[0], encb_whh=encb[1], encb_bih=encb[2], encb_bhh=encb[3],
        icl_w=p["ic_linear"]["w_t"], icl_b=p["ic_linear"]["b"],
        g0_w=p["ic_to_g0"]["w_t"], g0_b=p["ic_to_g0"]["b"],
        con_wci=con_wci, con_wfac=con["wfac_t"],
        con_whh=con["whh_t"], con_bih=con["bih"], con_bhh=con["bhh"],
        cogen_w=cogen_w, cogen_b=cogen_b,
        gen_whh=gen["whh_t"], gen_bhh=gen["bhh"],
        facpred_w=facpred_w, facpred_b=facpred_b,
    )


# ------------------------------ LFADS forward --------------------------------
def lfads_forward(packed, batch):
    """batch: (B, T, ENCOD_DATA_DIM) batch-major, matching the PyTorch module."""
    B, T, D = batch.shape
    pp = packed
    # time-major flattened input: row index = t*B + b
    x_flat = jnp.transpose(batch.astype(jnp.float32), (1, 0, 2)).reshape(T * B, D)

    seq, vec = pl.pallas_call(
        _lfads_fused_kernel,
        out_shape=(
            jax.ShapeDtypeStruct((T, B, _SEQ_W), jnp.float32),   # packed per-step
            jax.ShapeDtypeStruct((B, _VEC_W), jnp.float32),      # packed per-trial
        ),
    )(x_flat,
      pp["encf_wih"], pp["encf_whh"], pp["encf_bih"], pp["encf_bhh"],
      pp["encb_wih"], pp["encb_whh"], pp["encb_bih"], pp["encb_bhh"],
      pp["icl_w"], pp["icl_b"],
      pp["g0_w"], pp["g0_b"],
      pp["con_wci"], pp["con_wfac"], pp["con_whh"], pp["con_bih"], pp["con_bhh"],
      pp["cogen_w"], pp["cogen_b"],
      pp["gen_whh"], pp["gen_bhh"],
      pp["facpred_w"], pp["facpred_b"])

    seq = jnp.transpose(seq, (1, 0, 2))        # (B, T, 128) batch-major slab
    co_means = seq[:, :, _OFF_COM:_OFF_COS]
    return {
        "pred":       seq[:, :, _OFF_PRED:_SEQ_USED],
        "ic_mean":    vec[:, _VOFF_ICM:_VOFF_ICS],
        "ic_std":     vec[:, _VOFF_ICS:_VOFF_G0],
        "ci":         seq[:, :, _OFF_CI:_OFF_GEN],
        "gen_init":   vec[:, _VOFF_G0:_VEC_USED],
        "gen_states": seq[:, :, _OFF_GEN:_OFF_CON],
        "con_states": seq[:, :, _OFF_CON:_OFF_COM],
        "co_means":   co_means,
        "co_stds":    seq[:, :, _OFF_COS:_OFF_FAC],
        # identical to co_means when sample_posteriors=False and ext_input dim==0
        "gen_inputs": co_means,
        "factors":    seq[:, :, _OFF_FAC:_OFF_PRED],
    }


# ---------------------------------- main --------------------------------------
if __name__ == "__main__":
    key = jax.random.PRNGKey(0)
    pkey, dkey = jax.random.split(key)
    params = init_params(pkey)
    packed = pack_lfads_params(params)       # one-time weight fusion

    batch = jax.random.normal(
        dkey, (2, CFG.ENCOD_SEQ_LEN, CFG.ENCOD_DATA_DIM), jnp.float32)

    fwd = jax.jit(lfads_forward)
    out = fwd(packed, batch)
    out = jax.block_until_ready(out)

    assert out["pred"].shape == (2, CFG.ENCOD_SEQ_LEN, CFG.ENCOD_DATA_DIM)
    assert out["factors"].shape == (2, CFG.ENCOD_SEQ_LEN, CFG.LATENT_DIM)
    assert out["ic_mean"].shape == (2, CFG.IC_DIM)
    assert out["ic_std"].shape == (2, CFG.IC_DIM)
    assert out["gen_init"].shape == (2, CFG.GEN_DIM)
    assert out["gen_states"].shape == (2, CFG.ENCOD_SEQ_LEN, CFG.GEN_DIM)
    assert out["con_states"].shape == (2, CFG.ENCOD_SEQ_LEN, CFG.CON_DIM)
    assert out["co_means"].shape == (2, CFG.ENCOD_SEQ_LEN, CFG.CO_DIM)
    assert out["ci"].shape == (2, CFG.ENCOD_SEQ_LEN, 2 * CFG.CI_ENC_DIM)
    assert all(bool(jnp.all(jnp.isfinite(v))) for v in out.values())
    print("KERNEL_OK")
</pallas_src>

<mosaic_0001>
module attributes {stable_mosaic.version = 11 : i64} {
  func.func @_lfads_fused_kernel(%arg0: memref<16x16xf32, #tpu.memory_space<vmem>>, %arg1: memref<16x72xf32, #tpu.memory_space<vmem>>, %arg2: memref<24x72xf32, #tpu.memory_space<vmem>>, %arg3: memref<1x72xf32, #tpu.memory_space<vmem>>, %arg4: memref<1x72xf32, #tpu.memory_space<vmem>>, %arg5: memref<16x72xf32, #tpu.memory_space<vmem>>, %arg6: memref<24x72xf32, #tpu.memory_space<vmem>>, %arg7: memref<1x72xf32, #tpu.memory_space<vmem>>, %arg8: memref<1x72xf32, #tpu.memory_space<vmem>>, %arg9: memref<32x16xf32, #tpu.memory_space<vmem>>, %arg10: memref<1x16xf32, #tpu.memory_space<vmem>>, %arg11: memref<8x32xf32, #tpu.memory_space<vmem>>, %arg12: memref<1x32xf32, #tpu.memory_space<vmem>>, %arg13: memref<16x48xf32, #tpu.memory_space<vmem>>, %arg14: memref<8x48xf32, #tpu.memory_space<vmem>>, %arg15: memref<16x48xf32, #tpu.memory_space<vmem>>, %arg16: memref<1x48xf32, #tpu.memory_space<vmem>>, %arg17: memref<1x48xf32, #tpu.memory_space<vmem>>, %arg18: memref<16x104xf32, #tpu.memory_space<vmem>>, %arg19: memref<1x104xf32, #tpu.memory_space<vmem>>, %arg20: memref<32x96xf32, #tpu.memory_space<vmem>>, %arg21: memref<1x96xf32, #tpu.memory_space<vmem>>, %arg22: memref<32x24xf32, #tpu.memory_space<vmem>>, %arg23: memref<1x24xf32, #tpu.memory_space<vmem>>, %arg24: memref<8x2x128xf32, #tpu.memory_space<vmem>>, %arg25: memref<2x128xf32, #tpu.memory_space<vmem>>) attributes {dimension_semantics = [], scalar_prefetch = 0 : i64, scratch_operands = 0 : i64, tpu.core_type = #tpu.core_type<tc>} {
    %c0 = arith.constant 0 : index
    %c0_0 = arith.constant 0 : index
    %0 = vector.load %arg2[%c0, %c0_0] : memref<24x72xf32, #tpu.memory_space<vmem>>, vector<24x72xf32>
    %c0_1 = arith.constant 0 : index
    %c0_2 = arith.constant 0 : index
    %1 = vector.load %arg4[%c0_1, %c0_2] : memref<1x72xf32, #tpu.memory_space<vmem>>, vector<1x72xf32>
    %c0_3 = arith.constant 0 : index
    %c0_4 = arith.constant 0 : index
    %2 = vector.load %arg6[%c0_3, %c0_4] : memref<24x72xf32, #tpu.memory_space<vmem>>, vector<24x72xf32>
    %c0_5 = arith.constant 0 : index
    %c0_6 = arith.constant 0 : index
    %3 = vector.load %arg8[%c0_5, %c0_6] : memref<1x72xf32, #tpu.memory_space<vmem>>, vector<1x72xf32>
    %c0_7 = arith.constant 0 : index
    %c0_8 = arith.constant 0 : index
    %4 = vector.load %arg13[%c0_7, %c0_8] : memref<16x48xf32, #tpu.memory_space<vmem>>, vector<16x48xf32>
    %c0_9 = arith.constant 0 : index
    %c0_10 = arith.constant 0 : index
    %5 = vector.load %arg14[%c0_9, %c0_10] : memref<8x48xf32, #tpu.memory_space<vmem>>, vector<8x48xf32>
    %c0_11 = arith.constant 0 : index
    %c0_12 = arith.constant 0 : index
    %6 = vector.load %arg15[%c0_11, %c0_12] : memref<16x48xf32, #tpu.memory_space<vmem>>, vector<16x48xf32>
    %c0_13 = arith.constant 0 : index
    %c0_14 = arith.constant 0 : index
    %7 = vector.load %arg16[%c0_13, %c0_14] : memref<1x48xf32, #tpu.memory_space<vmem>>, vector<1x48xf32>
    %c0_15 = arith.constant 0 : index
    %c0_16 = arith.constant 0 : index
    %8 = vector.load %arg17[%c0_15, %c0_16] : memref<1x48xf32, #tpu.memory_space<vmem>>, vector<1x48xf32>
    %c0_17 = arith.constant 0 : index
    %c0_18 = arith.constant 0 : index
    %9 = vector.load %arg18[%c0_17, %c0_18] : memref<16x104xf32, #tpu.memory_space<vmem>>, vector<16x104xf32>
    %c0_19 = arith.constant 0 : index
    %c0_20 = arith.constant 0 : index
    %10 = vector.load %arg19[%c0_19, %c0_20] : memref<1x104xf32, #tpu.memory_space<vmem>>, vector<1x104xf32>
    %c0_21 = arith.constant 0 : index
    %c0_22 = arith.constant 0 : index
    %11 = vector.load %arg20[%c0_21, %c0_22] : memref<32x96xf32, #tpu.memory_space<vmem>>, vector<32x96xf32>
    %c0_23 = arith.constant 0 : index
    %c0_24 = arith.constant 0 : index
    %12 = vector.load %arg21[%c0_23, %c0_24] : memref<1x96xf32, #tpu.memory_space<vmem>>, vector<1x96xf32>
    %c0_25 = arith.constant 0 : index
    %c0_26 = arith.constant 0 : index
    %13 = vector.load %arg22[%c0_25, %c0_26] : memref<32x24xf32, #tpu.memory_space<vmem>>, vector<32x24xf32>
    %c0_27 = arith.constant 0 : index
    %c0_28 = arith.constant 0 : index
    %14 = vector.load %arg23[%c0_27, %c0_28] : memref<1x24xf32, #tpu.memory_space<vmem>>, vector<1x24xf32>
    %c0_29 = arith.constant 0 : index
    %c0_30 = arith.constant 0 : index
    %15 = vector.load %arg0[%c0_29, %c0_30] : memref<16x16xf32, #tpu.memory_space<vmem>>, vector<16x16xf32>
    %c0_31 = arith.constant 0 : index
    %c0_32 = arith.constant 0 : index
    %16 = vector.load %arg1[%c0_31, %c0_32] : memref<16x72xf32, #tpu.memory_space<vmem>>, vector<16x72xf32>
    %cst = arith.constant dense<0.000000e+00> : vector<16x72xf32>
    %17 = tpu.matmul %15, %16, %cst {dimension_numbers = #tpu.dot_dimension_numbers<[1], [0], [0], [1], [0, 0, 1, 1], [], []>} : vector<16x16xf32>, vector<16x72xf32>, vector<16x72xf32> -> vector<16x72xf32>
    %c0_33 = arith.constant 0 : index
    %c0_34 = arith.constant 0 : index
    %18 = vector.load %arg3[%c0_33, %c0_34] : memref<1x72xf32, #tpu.memory_space<vmem>>, vector<1x72xf32>
    %19 = vector.broadcast %18 : vector<1x72xf32> to vector<16x72xf32>
    %20 = arith.addf %17, %19 : vector<16x72xf32>
    %c0_35 = arith.constant 0 : index
    %c0_36 = arith.constant 0 : index
    %21 = vector.load %arg5[%c0_35, %c0_36] : memref<16x72xf32, #tpu.memory_space<vmem>>, vector<16x72xf32>
    %cst_37 = arith.constant dense<0.000000e+00> : vector<16x72xf32>
    %22 = tpu.matmul %15, %21, %cst_37 {dimension_numbers = #tpu.dot_dimension_numbers<[1], [0], [0], [1], [0, 0, 1, 1], [], []>} : vector<16x16xf32>, vector<16x72xf32>, vector<16x72xf32> -> vector<16x72xf32>
    %c0_38 = arith.constant 0 : index
    %c0_39 = arith.constant 0 : index
    %23 = vector.load %arg7[%c0_38, %c0_39] : memref<1x72xf32, #tpu.memory_space<vmem>>, vector<1x72xf32>
    %24 = vector.broadcast %23 : vector<1x72xf32> to vector<16x72xf32>
    %25 = arith.addf %22, %24 : vector<16x72xf32>
    %cst_40 = arith.constant 0.000000e+00 : f32
    %26 = vector.broadcast %cst_40 : f32 to vector<2x24xf32>
    %cst_41 = arith.constant 0.000000e+00 : f32
    %27 = vector.broadcast %cst_41 : f32 to vector<2x24xf32>
    %cst_42 = arith.constant dense<0.000000e+00> : vector<2x72xf32>
    %28 = tpu.matmul %26, %0, %cst_42 {dimension_numbers = #tpu.dot_dimension_numbers<[1], [0], [0], [1], [0, 0, 1, 1], [], []>} : vector<2x24xf32>, vector<24x72xf32>, vector<2x72xf32> -> vector<2x72xf32>
    %29 = vector.broadcast %1 : vector<1x72xf32> to vector<2x72xf32>
    %30 = arith.addf %28, %29 : vector<2x72xf32>
    %31 = vector.extract_strided_slice %20 {offsets = [0, 0], sizes = [2, 72], strides = [1, 1]} : vector<16x72xf32> to vector<2x72xf32>
    %32 = vector.extract_strided_slice %31 {offsets = [0, 0], sizes = [2, 24], strides = [1, 1]} : vector<2x72xf32> to vector<2x24xf32>
    %33 = vector.extract_strided_slice %30 {offsets = [0, 0], sizes = [2, 24], strides = [1, 1]} : vector<2x72xf32> to vector<2x24xf32>
    %34 = arith.addf %32, %33 : vector<2x24xf32>
    %35 = arith.negf %34 : vector<2x24xf32>
    %36 = math.exp %35 : vector<2x24xf32>
    %cst_43 = arith.constant 1.000000e+00 : f32
    %37 = vector.broadcast %cst_43 : f32 to vector<2x24xf32>
    %38 = arith.addf %37, %36 : vector<2x24xf32>
    %39 = arith.divf %37, %38 : vector<2x24xf32>
    %40 = vector.extract_strided_slice %31 {offsets = [0, 24], sizes = [2, 24], strides = [1, 1]} : vector<2x72xf32> to vector<2x24xf32>
    %41 = vector.extract_strided_slice %30 {offsets = [0, 24], sizes = [2, 24], strides = [1, 1]} : vector<2x72xf32> to vector<2x24xf32>
    %42 = arith.addf %40, %41 : vector<2x24xf32>
    %43 = arith.negf %42 : vector<2x24xf32>
    %44 = math.exp %43 : vector<2x24xf32>
    %cst_44 = arith.constant 1.000000e+00 : f32
    %45 = vector.broadcast %cst_44 : f32 to vector<2x24xf32>
    %46 = arith.addf %45, %44 : vector<2x24xf32>
    %47 = arith.divf %45, %46 : vector<2x24xf32>
    %48 = vector.extract_strided_slice %31 {offsets = [0, 48], sizes = [2, 24], strides = [1, 1]} : vector<2x72xf32> to vector<2x24xf32>
    %49 = vector.extract_strided_slice %30 {offsets = [0, 48], sizes = [2, 24], strides = [1, 1]} : vector<2x72xf32> to vector<2x24xf32>
    %50 = arith.mulf %39, %49 : vector<2x24xf32>
    %51 = arith.addf %48, %50 : vector<2x24xf32>
    %52 = math.tanh %51 : vector<2x24xf32>
    %cst_45 = arith.constant 1.000000e+00 : f32
    %53 = vector.broadcast %cst_45 : f32 to vector<2x24xf32>
    %54 = arith.subf %53, %47 : vector<2x24xf32>
    %55 = arith.mulf %54, %52 : vector<2x24xf32>
    %56 = arith.mulf %47, %26 : vector<2x24xf32>
    %57 = arith.addf %55, %56 : vector<2x24xf32>
    %cst_46 = arith.constant dense<0.000000e+00> : vector<2x72xf32>
    %58 = tpu.matmul %27, %2, %cst_46 {dimension_numbers = #tpu.dot_dimension_numbers<[1], [0], [0], [1], [0, 0, 1, 1], [], []>} : vector<2x24xf32>, vector<24x72xf32>, vector<2x72xf32> -> vector<2x72xf32>
    %59 = vector.broadcast %3 : vector<1x72xf32> to vector<2x72xf32>
    %60 = arith.addf %58, %59 : vector<2x72xf32>
    %61 = vector.extract_strided_slice %25 {offsets = [14, 0], sizes = [2, 72], strides = [1, 1]} : vector<16x72xf32> to vector<2x72xf32>
    %62 = vector.extract_strided_slice %61 {offsets = [0, 0], sizes = [2, 24], strides = [1, 1]} : vector<2x72xf32> to vector<2x24xf32>
    %63 = vector.extract_strided_slice %60 {offsets = [0, 0], sizes = [2, 24], strides = [1, 1]} : vector<2x72xf32> to vector<2x24xf32>
    %64 = arith.addf %62, %63 : vector<2x24xf32>
    %65 = arith.negf %64 : vector<2x24xf32>
    %66 = math.exp %65 : vector<2x24xf32>
    %cst_47 = arith.constant 1.000000e+00 : f32
    %67 = vector.broadcast %cst_47 : f32 to vector<2x24xf32>
    %68 = arith.addf %67, %66 : vector<2x24xf32>
    %69 = arith.divf %67, %68 : vector<2x24xf32>
    %70 = vector.extract_strided_slice %61 {offsets = [0, 24], sizes = [2, 24], strides = [1, 1]} : vector<2x72xf32> to vector<2x24xf32>
    %71 = vector.extract_strided_slice %60 {offsets = [0, 24], sizes = [2, 24], strides = [1, 1]} : vector<2x72xf32> to vector<2x24xf32>
    %72 = arith.addf %70, %71 : vector<2x24xf32>
    %73 = arith.negf %72 : vector<2x24xf32>
    %74 = math.exp %73 : vector<2x24xf32>
    %cst_48 = arith.constant 1.000000e+00 : f32
    %75 = vector.broadcast %cst_48 : f32 to vector<2x24xf32>
    %76 = arith.addf %75, %74 : vector<2x24xf32>
    %77 = arith.divf %75, %76 : vector<2x24xf32>
    %78 = vector.extract_strided_slice %61 {offsets = [0, 48], sizes = [2, 24], strides = [1, 1]} : vector<2x72xf32> to vector<2x24xf32>
    %79 = vector.extract_strided_slice %60 {offsets = [0, 48], sizes = [2, 24], strides = [1, 1]} : vector<2x72xf32> to vector<2x24xf32>
    %80 = arith.mulf %69, %79 : vector<2x24xf32>
    %81 = arith.addf %78, %80 : vector<2x24xf32>
    %82 = math.tanh %81 : vector<2x24xf32>
    %cst_49 = arith.constant 1.000000e+00 : f32
    %83 = vector.broadcast %cst_49 : f32 to vector<2x24xf32>
    %84 = arith.subf %83, %77 : vector<2x24xf32>
    %85 = arith.mulf %84, %82 : vector<2x24xf32>
    %86 = arith.mulf %77, %27 : vector<2x24xf32>
    %87 = arith.addf %85, %86 : vector<2x24xf32>
    %88 = vector.extract_strided_slice %57 {offsets = [0, 16], sizes = [2, 8], strides = [1, 1]} : vector<2x24xf32> to vector<2x8xf32>
    %89 = vector.extract_strided_slice %87 {offsets = [0, 16], sizes = [2, 8], strides = [1, 1]} : vector<2x24xf32> to vector<2x8xf32>
    %cst_50 = arith.constant dense<0.000000e+00> : vector<2x72xf32>
    %90 = tpu.matmul %57, %0, %cst_50 {dimension_numbers = #tpu.dot_dimension_numbers<[1], [0], [0], [1], [0, 0, 1, 1], [], []>} : vector<2x24xf32>, vector<24x72xf32>, vector<2x72xf32> -> vector<2x72xf32>
    %91 = vector.broadcast %1 : vector<1x72xf32> to vector<2x72xf32>
    %92 = arith.addf %90, %91 : vector<2x72xf32>
    %93 = vector.extract_strided_slice %20 {offsets = [2, 0], sizes = [2, 72], strides = [1, 1]} : vector<16x72xf32> to vector<2x72xf32>
    %94 = vector.extract_strided_slice %93 {offsets = [0, 0], sizes = [2, 24], strides = [1, 1]} : vector<2x72xf32> to vector<2x24xf32>
    %95 = vector.extract_strided_slice %92 {offsets = [0, 0], sizes = [2, 24], strides = [1, 1]} : vector<2x72xf32> to vector<2x24xf32>
    %96 = arith.addf %94, %95 : vector<2x24xf32>
    %97 = arith.negf %96 : vector<2x24xf32>
    %98 = math.exp %97 : vector<2x24xf32>
    %cst_51 = arith.constant 1.000000e+00 : f32
    %99 = vector.broadcast %cst_51 : f32 to vector<2x24xf32>
    %100 = arith.addf %99, %98 : vector<2x24xf32>
    %101 = arith.divf %99, %100 : vector<2x24xf32>
    %102 = vector.extract_strided_slice %93 {offsets = [0, 24], sizes = [2, 24], strides = [1, 1]} : vector<2x72xf32> to vector<2x24xf32>
    %103 = vector.extract_strided_slice %92 {offsets = [0, 24], sizes = [2, 24], strides = [1, 1]} : vector<2x72xf32> to vector<2x24xf32>
    %104 = arith.addf %102, %103 : vector<2x24xf32>
    %105 = arith.negf %104 : vector<2x24xf32>
    %106 = math.exp %105 : vector<2x24xf32>
    %cst_52 = arith.constant 1.000000e+00 : f32
    %107 = vector.broadcast %cst_52 : f32 to vector<2x24xf32>
    %108 = arith.addf %107, %106 : vector<2x24xf32>
    %109 = arith.divf %107, %108 : vector<2x24xf32>
    %110 = vector.extract_strided_slice %93 {offsets = [0, 48], sizes = [2, 24], strides = [1, 1]} : vector<2x72xf32> to vector<2x24xf32>
    %111 = vector.extract_strided_slice %92 {offsets = [0, 48], sizes = [2, 24], strides = [1, 1]} : vector<2x72xf32> to vector<2x24xf32>
    %112 = arith.mulf %101, %111 : vector<2x24xf32>
    %113 = arith.addf %110, %112 : vector<2x24xf32>
    %114 = math.tanh %113 : vector<2x24xf32>
    %cst_53 = arith.constant 1.000000e+00 : f32
    %115 = vector.broadcast %cst_53 : f32 to vector<2x24xf32>
    %116 = arith.subf %115, %109 : vector<2x24xf32>
    %117 = arith.mulf %116, %114 : vector<2x24xf32>
    %118 = arith.mulf %109, %57 : vector<2x24xf32>
    %119 = arith.addf %117, %118 : vector<2x24xf32>
    %cst_54 = arith.constant dense<0.000000e+00> : vector<2x72xf32>
    %120 = tpu.matmul %87, %2, %cst_54 {dimension_numbers = #tpu.dot_dimension_numbers<[1], [0], [0], [1], [0, 0, 1, 1], [], []>} : vector<2x24xf32>, vector<24x72xf32>, vector<2x72xf32> -> vector<2x72xf32>
    %121 = vector.broadcast %3 : vector<1x72xf32> to vector<2x72xf32>
    %122 = arith.addf %120, %121 : vector<2x72xf32>
    %123 = vector.extract_strided_slice %25 {offsets = [12, 0], sizes = [2, 72], strides = [1, 1]} : vector<16x72xf32> to vector<2x72xf32>
    %124 = vector.extract_strided_slice %123 {offsets = [0, 0], sizes = [2, 24], strides = [1, 1]} : vector<2x72xf32> to vector<2x24xf32>
    %125 = vector.extract_strided_slice %122 {offsets = [0, 0], sizes = [2, 24], strides = [1, 1]} : vector<2x72xf32> to vector<2x24xf32>
    %126 = arith.addf %124, %125 : vector<2x24xf32>
    %127 = arith.negf %126 : vector<2x24xf32>
    %128 = math.exp %127 : vector<2x24xf32>
    %cst_55 = arith.constant 1.000000e+00 : f32
    %129 = vector.broadcast %cst_55 : f32 to vector<2x24xf32>
    %130 = arith.addf %129, %128 : vector<2x24xf32>
    %131 = arith.divf %129, %130 : vector<2x24xf32>
    %132 = vector.extract_strided_slice %123 {offsets = [0, 24], sizes = [2, 24], strides = [1, 1]} : vector<2x72xf32> to vector<2x24xf32>
    %133 = vector.extract_strided_slice %122 {offsets = [0, 24], sizes = [2, 24], strides = [1, 1]} : vector<2x72xf32> to vector<2x24xf32>
    %134 = arith.addf %132, %133 : vector<2x24xf32>
    %135 = arith.negf %134 : vector<2x24xf32>
    %136 = math.exp %135 : vector<2x24xf32>
    %cst_56 = arith.constant 1.000000e+00 : f32
    %137 = vector.broadcast %cst_56 : f32 to vector<2x24xf32>
    %138 = arith.addf %137, %136 : vector<2x24xf32>
    %139 = arith.divf %137, %138 : vector<2x24xf32>
    %140 = vector.extract_strided_slice %123 {offsets = [0, 48], sizes = [2, 24], strides = [1, 1]} : vector<2x72xf32> to vector<2x24xf32>
    %141 = vector.extract_strided_slice %122 {offsets = [0, 48], sizes = [2, 24], strides = [1, 1]} : vector<2x72xf32> to vector<2x24xf32>
    %142 = arith.mulf %131, %141 : vector<2x24xf32>
    %143 = arith.addf %140, %142 : vector<2x24xf32>
    %144 = math.tanh %143 : vector<2x24xf32>
    %cst_57 = arith.constant 1.000000e+00 : f32
    %145 = vector.broadcast %cst_57 : f32 to vector<2x24xf32>
    %146 = arith.subf %145, %139 : vector<2x24xf32>
    %147 = arith.mulf %146, %144 : vector<2x24xf32>
    %148 = arith.mulf %139, %87 : vector<2x24xf32>
    %149 = arith.addf %147, %148 : vector<2x24xf32>
    %150 = vector.extract_strided_slice %119 {offsets = [0, 16], sizes = [2, 8], strides = [1, 1]} : vector<2x24xf32> to vector<2x8xf32>
    %151 = vector.extract_strided_slice %149 {offsets = [0, 16], sizes = [2, 8], strides = [1, 1]} : vector<2x24xf32> to vector<2x8xf32>
    %cst_58 = arith.constant dense<0.000000e+00> : vector<2x72xf32>
    %152 = tpu.matmul %119, %0, %cst_58 {dimension_numbers = #tpu.dot_dimension_numbers<[1], [0], [0], [1], [0, 0, 1, 1], [], []>} : vector<2x24xf32>, vector<24x72xf32>, vector<2x72xf32> -> vector<2x72xf32>
    %153 = vector.broadcast %1 : vector<1x72xf32> to vector<2x72xf32>
    %154 = arith.addf %152, %153 : vector<2x72xf32>
    %155 = vector.extract_strided_slice %20 {offsets = [4, 0], sizes = [2, 72], strides = [1, 1]} : vector<16x72xf32> to vector<2x72xf32>
    %156 = vector.extract_strided_slice %155 {offsets = [0, 0], sizes = [2, 24], strides = [1, 1]} : vector<2x72xf32> to vector<2x24xf32>
    %157 = vector.extract_strided_slice %154 {offsets = [0, 0], sizes = [2, 24], strides = [1, 1]} : vector<2x72xf32> to vector<2x24xf32>
    %158 = arith.addf %156, %157 : vector<2x24xf32>
    %159 = arith.negf %158 : vector<2x24xf32>
    %160 = math.exp %159 : vector<2x24xf32>
    %cst_59 = arith.constant 1.000000e+00 : f32
    %161 = vector.broadcast %cst_59 : f32 to vector<2x24xf32>
    %162 = arith.addf %161, %160 : vector<2x24xf32>
    %163 = arith.divf %161, %162 : vector<2x24xf32>
    %164 = vector.extract_strided_slice %155 {offsets = [0, 24], sizes = [2, 24], strides = [1, 1]} : vector<2x72xf32> to vector<2x24xf32>
    %165 = vector.extract_strided_slice %154 {offsets = [0, 24], sizes = [2, 24], strides = [1, 1]} : vector<2x72xf32> to vector<2x24xf32>
    %166 = arith.addf %164, %165 : vector<2x24xf32>
    %167 = arith.negf %166 : vector<2x24xf32>
    %168 = math.exp %167 : vector<2x24xf32>
    %cst_60 = arith.constant 1.000000e+00 : f32
    %169 = vector.broadcast %cst_60 : f32 to vector<2x24xf32>
    %170 = arith.addf %169, %168 : vector<2x24xf32>
    %171 = arith.divf %169, %170 : vector<2x24xf32>
    %172 = vector.extract_strided_slice %155 {offsets = [0, 48], sizes = [2, 24], strides = [1, 1]} : vector<2x72xf32> to vector<2x24xf32>
    %173 = vector.extract_strided_slice %154 {offsets = [0, 48], sizes = [2, 24], strides = [1, 1]} : vector<2x72xf32> to vector<2x24xf32>
    %174 = arith.mulf %163, %173 : vector<2x24xf32>
    %175 = arith.addf %172, %174 : vector<2x24xf32>
    %176 = math.tanh %175 : vector<2x24xf32>
    %cst_61 = arith.constant 1.000000e+00 : f32
    %177 = vector.broadcast %cst_61 : f32 to vector<2x24xf32>
    %178 = arith.subf %177, %171 : vector<2x24xf32>
    %179 = arith.mulf %178, %176 : vector<2x24xf32>
    %180 = arith.mulf %171, %119 : vector<2x24xf32>
    %181 = arith.addf %179, %180 : vector<2x24xf32>
    %cst_62 = arith.constant dense<0.000000e+00> : vector<2x72xf32>
    %182 = tpu.matmul %149, %2, %cst_62 {dimension_numbers = #tpu.dot_dimension_numbers<[1], [0], [0], [1], [0, 0, 1, 1], [], []>} : vector<2x24xf32>, vector<24x72xf32>, vector<2x72xf32> -> vector<2x72xf32>
    %183 = vector.broadcast %3 : vector<1x72xf32> to vector<2x72xf32>
    %184 = arith.addf %182, %183 : vector<2x72xf32>
    %185 = vector.extract_strided_slice %25 {offsets = [10, 0], sizes = [2, 72], strides = [1, 1]} : vector<16x72xf32> to vector<2x72xf32>
    %186 = vector.extract_strided_slice %185 {offsets = [0, 0], sizes = [2, 24], strides = [1, 1]} : vector<2x72xf32> to vector<2x24xf32>
    %187 = vector.extract_strided_slice %184 {offsets = [0, 0], sizes = [2, 24], strides = [1, 1]} : vector<2x72xf32> to vector<2x24xf32>
    %188 = arith.addf %186, %187 : vector<2x24xf32>
    %189 = arith.negf %188 : vector<2x24xf32>
    %190 = math.exp %189 : vector<2x24xf32>
    %cst_63 = arith.constant 1.000000e+00 : f32
    %191 = vector.broadcast %cst_63 : f32 to vector<2x24xf32>
    %192 = arith.addf %191, %190 : vector<2x24xf32>
    %193 = arith.divf %191, %192 : vector<2x24xf32>
    %194 = vector.extract_strided_slice %185 {offsets = [0, 24], sizes = [2, 24], strides = [1, 1]} : vector<2x72xf32> to vector<2x24xf32>
    %195 = vector.extract_strided_slice %184 {offsets = [0, 24], sizes = [2, 24], strides = [1, 1]} : vector<2x72xf32> to vector<2x24xf32>
    %196 = arith.addf %194, %195 : vector<2x24xf32>
    %197 = arith.negf %196 : vector<2x24xf32>
    %198 = math.exp %197 : vector<2x24xf32>
    %cst_64 = arith.constant 1.000000e+00 : f32
    %199 = vector.broadcast %cst_64 : f32 to vector<2x24xf32>
    %200 = arith.addf %199, %198 : vector<2x24xf32>
    %201 = arith.divf %199, %200 : vector<2x24xf32>
    %202 = vector.extract_strided_slice %185 {offsets = [0, 48], sizes = [2, 24], strides = [1, 1]} : vector<2x72xf32> to vector<2x24xf32>
    %203 = vector.extract_strided_slice %184 {offsets = [0, 48], sizes = [2, 24], strides = [1, 1]} : vector<2x72xf32> to vector<2x24xf32>
    %204 = arith.mulf %193, %203 : vector<2x24xf32>
    %205 = arith.addf %202, %204 : vector<2x24xf32>
    %206 = math.tanh %205 : vector<2x24xf32>
    %cst_65 = arith.constant 1.000000e+00 : f32
    %207 = vector.broadcast %cst_65 : f32 to vector<2x24xf32>
    %208 = arith.subf %207, %201 : vector<2x24xf32>
    %209 = arith.mulf %208, %206 : vector<2x24xf32>
    %210 = arith.mulf %201, %149 : vector<2x24xf32>
    %211 = arith.addf %209, %210 : vector<2x24xf32>
    %212 = vector.extract_strided_slice %181 {offsets = [0, 16], sizes = [2, 8], strides = [1, 1]} : vector<2x24xf32> to vector<2x8xf32>
    %213 = vector.extract_strided_slice %211 {offsets = [0, 16], sizes = [2, 8], strides = [1, 1]} : vector<2x24xf32> to vector<2x8xf32>
    %cst_66 = arith.constant dense<0.000000e+00> : vector<2x72xf32>
    %214 = tpu.matmul %181, %0, %cst_66 {dimension_numbers = #tpu.dot_dimension_numbers<[1], [0], [0], [1], [0, 0, 1, 1], [], []>} : vector<2x24xf32>, vector<24x72xf32>, vector<2x72xf32> -> vector<2x72xf32>
    %215 = vector.broadcast %1 : vector<1x72xf32> to vector<2x72xf32>
    %216 = arith.addf %214, %215 : vector<2x72xf32>
    %217 = vector.extract_strided_slice %20 {offsets = [6, 0], sizes = [2, 72], strides = [1, 1]} : vector<16x72xf32> to vector<2x72xf32>
    %218 = vector.extract_strided_slice %217 {offsets = [0, 0], sizes = [2, 24], strides = [1, 1]} : vector<2x72xf32> to vector<2x24xf32>
    %219 = vector.extract_strided_slice %216 {offsets = [0, 0], sizes = [2, 24], strides = [1, 1]} : vector<2x72xf32> to vector<2x24xf32>
    %220 = arith.addf %218, %219 : vector<2x24xf32>
    %221 = arith.negf %220 : vector<2x24xf32>
    %222 = math.exp %221 : vector<2x24xf32>
    %cst_67 = arith.constant 1.000000e+00 : f32
    %223 = vector.broadcast %cst_67 : f32 to vector<2x24xf32>
    %224 = arith.addf %223, %222 : vector<2x24xf32>
    %225 = arith.divf %223, %224 : vector<2x24xf32>
    %226 = vector.extract_strided_slice %217 {offsets = [0, 24], sizes = [2, 24], strides = [1, 1]} : vector<2x72xf32> to vector<2x24xf32>
    %227 = vector.extract_strided_slice %216 {offsets = [0, 24], sizes = [2, 24], strides = [1, 1]} : vector<2x72xf32> to vector<2x24xf32>
    %228 = arith.addf %226, %227 : vector<2x24xf32>
    %229 = arith.negf %228 : vector<2x24xf32>
    %230 = math.exp %229 : vector<2x24xf32>
    %cst_68 = arith.constant 1.000000e+00 : f32
    %231 = vector.broadcast %cst_68 : f32 to vector<2x24xf32>
    %232 = arith.addf %231, %230 : vector<2x24xf32>
    %233 = arith.divf %231, %232 : vector<2x24xf32>
    %234 = vector.extract_strided_slice %217 {offsets = [0, 48], sizes = [2, 24], strides = [1, 1]} : vector<2x72xf32> to vector<2x24xf32>
    %235 = vector.extract_strided_slice %216 {offsets = [0, 48], sizes = [2, 24], strides = [1, 1]} : vector<2x72xf32> to vector<2x24xf32>
    %236 = arith.mulf %225, %235 : vector<2x24xf32>
    %237 = arith.addf %234, %236 : vector<2x24xf32>
    %238 = math.tanh %237 : vector<2x24xf32>
    %cst_69 = arith.constant 1.000000e+00 : f32
    %239 = vector.broadcast %cst_69 : f32 to vector<2x24xf32>
    %240 = arith.subf %239, %233 : vector<2x24xf32>
    %241 = arith.mulf %240, %238 : vector<2x24xf32>
    %242 = arith.mulf %233, %181 : vector<2x24xf32>
    %243 = arith.addf %241, %242 : vector<2x24xf32>
    %cst_70 = arith.constant dense<0.000000e+00> : vector<2x72xf32>
    %244 = tpu.matmul %211, %2, %cst_70 {dimension_numbers = #tpu.dot_dimension_numbers<[1], [0], [0], [1], [0, 0, 1, 1], [], []>} : vector<2x24xf32>, vector<24x72xf32>, vector<2x72xf32> -> vector<2x72xf32>
    %245 = vector.broadcast %3 : vector<1x72xf32> to vector<2x72xf32>
    %246 = arith.addf %244, %245 : vector<2x72xf32>
    %247 = vector.extract_strided_slice %25 {offsets = [8, 0], sizes = [2, 72], strides = [1, 1]} : vector<16x72xf32> to vector<2x72xf32>
    %248 = vector.extract_strided_slice %247 {offsets = [0, 0], sizes = [2, 24], strides = [1, 1]} : vector<2x72xf32> to vector<2x24xf32>
    %249 = vector.extract_strided_slice %246 {offsets = [0, 0], sizes = [2, 24], strides = [1, 1]} : vector<2x72xf32> to vector<2x24xf32>
    %250 = arith.addf %248, %249 : vector<2x24xf32>
    %251 = arith.negf %250 : vector<2x24xf32>
    %252 = math.exp %251 : vector<2x24xf32>
    %cst_71 = arith.constant 1.000000e+00 : f32
    %253 = vector.broadcast %cst_71 : f32 to vector<2x24xf32>
    %254 = arith.addf %253, %252 : vector<2x24xf32>
    %255 = arith.divf %253, %254 : vector<2x24xf32>
    %256 = vector.extract_strided_slice %247 {offsets = [0, 24], sizes = [2, 24], strides = [1, 1]} : vector<2x72xf32> to vector<2x24xf32>
    %257 = vector.extract_strided_slice %246 {offsets = [0, 24], sizes = [2, 24], strides = [1, 1]} : vector<2x72xf32> to vector<2x24xf32>
    %258 = arith.addf %256, %257 : vector<2x24xf32>
    %259 = arith.negf %258 : vector<2x24xf32>
    %260 = math.exp %259 : vector<2x24xf32>
    %cst_72 = arith.constant 1.000000e+00 : f32
    %261 = vector.broadcast %cst_72 : f32 to vector<2x24xf32>
    %262 = arith.addf %261, %260 : vector<2x24xf32>
    %263 = arith.divf %261, %262 : vector<2x24xf32>
    %264 = vector.extract_strided_slice %247 {offsets = [0, 48], sizes = [2, 24], strides = [1, 1]} : vector<2x72xf32> to vector<2x24xf32>
    %265 = vector.extract_strided_slice %246 {offsets = [0, 48], sizes = [2, 24], strides = [1, 1]} : vector<2x72xf32> to vector<2x24xf32>
    %266 = arith.mulf %255, %265 : vector<2x24xf32>
    %267 = arith.addf %264, %266 : vector<2x24xf32>
    %268 = math.tanh %267 : vector<2x24xf32>
    %cst_73 = arith.constant 1.000000e+00 : f32
    %269 = vector.broadcast %cst_73 : f32 to vector<2x24xf32>
    %270 = arith.subf %269, %263 : vector<2x24xf32>
    %271 = arith.mulf %270, %268 : vector<2x24xf32>
    %272 = arith.mulf %263, %211 : vector<2x24xf32>
    %273 = arith.addf %271, %272 : vector<2x24xf32>
    %274 = vector.extract_strided_slice %243 {offsets = [0, 16], sizes = [2, 8], strides = [1, 1]} : vector<2x24xf32> to vector<2x8xf32>
    %275 = vector.extract_strided_slice %273 {offsets = [0, 16], sizes = [2, 8], strides = [1, 1]} : vector<2x24xf32> to vector<2x8xf32>
    %cst_74 = arith.constant dense<0.000000e+00> : vector<2x72xf32>
    %276 = tpu.matmul %243, %0, %cst_74 {dimension_numbers = #tpu.dot_dimension_numbers<[1], [0], [0], [1], [0, 0, 1, 1], [], []>} : vector<2x24xf32>, vector<24x72xf32>, vector<2x72xf32> -> vector<2x72xf32>
    %277 = vector.broadcast %1 : vector<1x72xf32> to vector<2x72xf32>
    %278 = arith.addf %276, %277 : vector<2x72xf32>
    %279 = vector.extract_strided_slice %20 {offsets = [8, 0], sizes = [2, 72], strides = [1, 1]} : vector<16x72xf32> to vector<2x72xf32>
    %280 = vector.extract_strided_slice %279 {offsets = [0, 0], sizes = [2, 24], strides = [1, 1]} : vector<2x72xf32> to vector<2x24xf32>
    %281 = vector.extract_strided_slice %278 {offsets = [0, 0], sizes = [2, 24], strides = [1, 1]} : vector<2x72xf32> to vector<2x24xf32>
    %282 = arith.addf %280, %281 : vector<2x24xf32>
    %283 = arith.negf %282 : vector<2x24xf32>
    %284 = math.exp %283 : vector<2x24xf32>
    %cst_75 = arith.constant 1.000000e+00 : f32
    %285 = vector.broadcast %cst_75 : f32 to vector<2x24xf32>
    %286 = arith.addf %285, %284 : vector<2x24xf32>
    %287 = arith.divf %285, %286 : vector<2x24xf32>
    %288 = vector.extract_strided_slice %279 {offsets = [0, 24], sizes = [2, 24], strides = [1, 1]} : vector<2x72xf32> to vector<2x24xf32>
    %289 = vector.extract_strided_slice %278 {offsets = [0, 24], sizes = [2, 24], strides = [1, 1]} : vector<2x72xf32> to vector<2x24xf32>
    %290 = arith.addf %288, %289 : vector<2x24xf32>
    %291 = arith.negf %290 : vector<2x24xf32>
    %292 = math.exp %291 : vector<2x24xf32>
    %cst_76 = arith.constant 1.000000e+00 : f32
    %293 = vector.broadcast %cst_76 : f32 to vector<2x24xf32>
    %294 = arith.addf %293, %292 : vector<2x24xf32>
    %295 = arith.divf %293, %294 : vector<2x24xf32>
    %296 = vector.extract_strided_slice %279 {offsets = [0, 48], sizes = [2, 24], strides = [1, 1]} : vector<2x72xf32> to vector<2x24xf32>
    %297 = vector.extract_strided_slice %278 {offsets = [0, 48], sizes = [2, 24], strides = [1, 1]} : vector<2x72xf32> to vector<2x24xf32>
    %298 = arith.mulf %287, %297 : vector<2x24xf32>
    %299 = arith.addf %296, %298 : vector<2x24xf32>
    %300 = math.tanh %299 : vector<2x24xf32>
    %cst_77 = arith.constant 1.000000e+00 : f32
    %301 = vector.broadcast %cst_77 : f32 to vector<2x24xf32>
    %302 = arith.subf %301, %295 : vector<2x24xf32>
    %303 = arith.mulf %302, %300 : vector<2x24xf32>
    %304 = arith.mulf %295, %243 : vector<2x24xf32>
    %305 = arith.addf %303, %304 : vector<2x24xf32>
    %cst_78 = arith.constant dense<0.000000e+00> : vector<2x72xf32>
    %306 = tpu.matmul %273, %2, %cst_78 {dimension_numbers = #tpu.dot_dimension_numbers<[1], [0], [0], [1], [0, 0, 1, 1], [], []>} : vector<2x24xf32>, vector<24x72xf32>, vector<2x72xf32> -> vector<2x72xf32>
    %307 = vector.broadcast %3 : vector<1x72xf32> to vector<2x72xf32>
    %308 = arith.addf %306, %307 : vector<2x72xf32>
    %309 = vector.extract_strided_slice %25 {offsets = [6, 0], sizes = [2, 72], strides = [1, 1]} : vector<16x72xf32> to vector<2x72xf32>
    %310 = vector.extract_strided_slice %309 {offsets = [0, 0], sizes = [2, 24], strides = [1, 1]} : vector<2x72xf32> to vector<2x24xf32>
    %311 = vector.extract_strided_slice %308 {offsets = [0, 0], sizes = [2, 24], strides = [1, 1]} : vector<2x72xf32> to vector<2x24xf32>
    %312 = arith.addf %310, %311 : vector<2x24xf32>
    %313 = arith.negf %312 : vector<2x24xf32>
    %314 = math.exp %313 : vector<2x24xf32>
    %cst_79 = arith.constant 1.000000e+00 : f32
    %315 = vector.broadcast %cst_79 : f32 to vector<2x24xf32>
    %316 = arith.addf %315, %314 : vector<2x24xf32>
    %317 = arith.divf %315, %316 : vector<2x24xf32>
    %318 = vector.extract_strided_slice %309 {offsets = [0, 24], sizes = [2, 24], strides = [1, 1]} : vector<2x72xf32> to vector<2x24xf32>
    %319 = vector.extract_strided_slice %308 {offsets = [0, 24], sizes = [2, 24], strides = [1, 1]} : vector<2x72xf32> to vector<2x24xf32>
    %320 = arith.addf %318, %319 : vector<2x24xf32>
    %321 = arith.negf %320 : vector<2x24xf32>
    %322 = math.exp %321 : vector<2x24xf32>
    %cst_80 = arith.constant 1.000000e+00 : f32
    %323 = vector.broadcast %cst_80 : f32 to vector<2x24xf32>
    %324 = arith.addf %323, %322 : vector<2x24xf32>
    %325 = arith.divf %323, %324 : vector<2x24xf32>
    %326 = vector.extract_strided_slice %309 {offsets = [0, 48], sizes = [2, 24], strides = [1, 1]} : vector<2x72xf32> to vector<2x24xf32>
    %327 = vector.extract_strided_slice %308 {offsets = [0, 48], sizes = [2, 24], strides = [1, 1]} : vector<2x72xf32> to vector<2x24xf32>
    %328 = arith.mulf %317, %327 : vector<2x24xf32>
    %329 = arith.addf %326, %328 : vector<2x24xf32>
    %330 = math.tanh %329 : vector<2x24xf32>
    %cst_81 = arith.constant 1.000000e+00 : f32
    %331 = vector.broadcast %cst_81 : f32 to vector<2x24xf32>
    %332 = arith.subf %331, %325 : vector<2x24xf32>
    %333 = arith.mulf %332, %330 : vector<2x24xf32>
    %334 = arith.mulf %325, %273 : vector<2x24xf32>
    %335 = arith.addf %333, %334 : vector<2x24xf32>
    %336 = vector.extract_strided_slice %305 {offsets = [0, 16], sizes = [2, 8], strides = [1, 1]} : vector<2x24xf32> to vector<2x8xf32>
    %337 = vector.extract_strided_slice %335 {offsets = [0, 16], sizes = [2, 8], strides = [1, 1]} : vector<2x24xf32> to vector<2x8xf32>
    %cst_82 = arith.constant dense<0.000000e+00> : vector<2x72xf32>
    %338 = tpu.matmul %305, %0, %cst_82 {dimension_numbers = #tpu.dot_dimension_numbers<[1], [0], [0], [1], [0, 0, 1, 1], [], []>} : vector<2x24xf32>, vector<24x72xf32>, vector<2x72xf32> -> vector<2x72xf32>
    %339 = vector.broadcast %1 : vector<1x72xf32> to vector<2x72xf32>
    %340 = arith.addf %338, %339 : vector<2x72xf32>
    %341 = vector.extract_strided_slice %20 {offsets = [10, 0], sizes = [2, 72], strides = [1, 1]} : vector<16x72xf32> to vector<2x72xf32>
    %342 = vector.extract_strided_slice %341 {offsets = [0, 0], sizes = [2, 24], strides = [1, 1]} : vector<2x72xf32> to vector<2x24xf32>
    %343 = vector.extract_strided_slice %340 {offsets = [0, 0], sizes = [2, 24], strides = [1, 1]} : vector<2x72xf32> to vector<2x24xf32>
    %344 = arith.addf %342, %343 : vector<2x24xf32>
    %345 = arith.negf %344 : vector<2x24xf32>
    %346 = math.exp %345 : vector<2x24xf32>
    %cst_83 = arith.constant 1.000000e+00 : f32
    %347 = vector.broadcast %cst_83 : f32 to vector<2x24xf32>
    %348 = arith.addf %347, %346 : vector<2x24xf32>
    %349 = arith.divf %347, %348 : vector<2x24xf32>
    %350 = vector.extract_strided_slice %341 {offsets = [0, 24], sizes = [2, 24], strides = [1, 1]} : vector<2x72xf32> to vector<2x24xf32>
    %351 = vector.extract_strided_slice %340 {offsets = [0, 24], sizes = [2, 24], strides = [1, 1]} : vector<2x72xf32> to vector<2x24xf32>
    %352 = arith.addf %350, %351 : vector<2x24xf32>
    %353 = arith.negf %352 : vector<2x24xf32>
    %354 = math.exp %353 : vector<2x24xf32>
    %cst_84 = arith.constant 1.000000e+00 : f32
    %355 = vector.broadcast %cst_84 : f32 to vector<2x24xf32>
    %356 = arith.addf %355, %354 : vector<2x24xf32>
    %357 = arith.divf %355, %356 : vector<2x24xf32>
    %358 = vector.extract_strided_slice %341 {offsets = [0, 48], sizes = [2, 24], strides = [1, 1]} : vector<2x72xf32> to vector<2x24xf32>
    %359 = vector.extract_strided_slice %340 {offsets = [0, 48], sizes = [2, 24], strides = [1, 1]} : vector<2x72xf32> to vector<2x24xf32>
    %360 = arith.mulf %349, %359 : vector<2x24xf32>
    %361 = arith.addf %358, %360 : vector<2x24xf32>
    %362 = math.tanh %361 : vector<2x24xf32>
    %cst_85 = arith.constant 1.000000e+00 : f32
    %363 = vector.broadcast %cst_85 : f32 to vector<2x24xf32>
    %364 = arith.subf %363, %357 : vector<2x24xf32>
    %365 = arith.mulf %364, %362 : vector<2x24xf32>
    %366 = arith.mulf %357, %305 : vector<2x24xf32>
    %367 = arith.addf %365, %366 : vector<2x24xf32>
    %cst_86 = arith.constant dense<0.000000e+00> : vector<2x72xf32>
    %368 = tpu.matmul %335, %2, %cst_86 {dimension_numbers = #tpu.dot_dimension_numbers<[1], [0], [0], [1], [0, 0, 1, 1], [], []>} : vector<2x24xf32>, vector<24x72xf32>, vector<2x72xf32> -> vector<2x72xf32>
    %369 = vector.broadcast %3 : vector<1x72xf32> to vector<2x72xf32>
    %370 = arith.addf %368, %369 : vector<2x72xf32>
    %371 = vector.extract_strided_slice %25 {offsets = [4, 0], sizes = [2, 72], strides = [1, 1]} : vector<16x72xf32> to vector<2x72xf32>
    %372 = vector.extract_strided_slice %371 {offsets = [0, 0], sizes = [2, 24], strides = [1, 1]} : vector<2x72xf32> to vector<2x24xf32>
    %373 = vector.extract_strided_slice %370 {offsets = [0, 0], sizes = [2, 24], strides = [1, 1]} : vector<2x72xf32> to vector<2x24xf32>
    %374 = arith.addf %372, %373 : vector<2x24xf32>
    %375 = arith.negf %374 : vector<2x24xf32>
    %376 = math.exp %375 : vector<2x24xf32>
    %cst_87 = arith.constant 1.000000e+00 : f32
    %377 = vector.broadcast %cst_87 : f32 to vector<2x24xf32>
    %378 = arith.addf %377, %376 : vector<2x24xf32>
    %379 = arith.divf %377, %378 : vector<2x24xf32>
    %380 = vector.extract_strided_slice %371 {offsets = [0, 24], sizes = [2, 24], strides = [1, 1]} : vector<2x72xf32> to vector<2x24xf32>
    %381 = vector.extract_strided_slice %370 {offsets = [0, 24], sizes = [2, 24], strides = [1, 1]} : vector<2x72xf32> to vector<2x24xf32>
    %382 = arith.addf %380, %381 : vector<2x24xf32>
    %383 = arith.negf %382 : vector<2x24xf32>
    %384 = math.exp %383 : vector<2x24xf32>
    %cst_88 = arith.constant 1.000000e+00 : f32
    %385 = vector.broadcast %cst_88 : f32 to vector<2x24xf32>
    %386 = arith.addf %385, %384 : vector<2x24xf32>
    %387 = arith.divf %385, %386 : vector<2x24xf32>
    %388 = vector.extract_strided_slice %371 {offsets = [0, 48], sizes = [2, 24], strides = [1, 1]} : vector<2x72xf32> to vector<2x24xf32>
    %389 = vector.extract_strided_slice %370 {offsets = [0, 48], sizes = [2, 24], strides = [1, 1]} : vector<2x72xf32> to vector<2x24xf32>
    %390 = arith.mulf %379, %389 : vector<2x24xf32>
    %391 = arith.addf %388, %390 : vector<2x24xf32>
    %392 = math.tanh %391 : vector<2x24xf32>
    %cst_89 = arith.constant 1.000000e+00 : f32
    %393 = vector.broadcast %cst_89 : f32 to vector<2x24xf32>
    %394 = arith.subf %393, %387 : vector<2x24xf32>
    %395 = arith.mulf %394, %392 : vector<2x24xf32>
    %396 = arith.mulf %387, %335 : vector<2x24xf32>
    %397 = arith.addf %395, %396 : vector<2x24xf32>
    %398 = vector.extract_strided_slice %367 {offsets = [0, 16], sizes = [2, 8], strides = [1, 1]} : vector<2x24xf32> to vector<2x8xf32>
    %399 = vector.extract_strided_slice %397 {offsets = [0, 16], sizes = [2, 8], strides = [1, 1]} : vector<2x24xf32> to vector<2x8xf32>
    %cst_90 = arith.constant dense<0.000000e+00> : vector<2x72xf32>
    %400 = tpu.matmul %367, %0, %cst_90 {dimension_numbers = #tpu.dot_dimension_numbers<[1], [0], [0], [1], [0, 0, 1, 1], [], []>} : vector<2x24xf32>, vector<24x72xf32>, vector<2x72xf32> -> vector<2x72xf32>
    %401 = vector.broadcast %1 : vector<1x72xf32> to vector<2x72xf32>
    %402 = arith.addf %400, %401 : vector<2x72xf32>
    %403 = vector.extract_strided_slice %20 {offsets = [12, 0], sizes = [2, 72], strides = [1, 1]} : vector<16x72xf32> to vector<2x72xf32>
    %404 = vector.extract_strided_slice %403 {offsets = [0, 0], sizes = [2, 24], strides = [1, 1]} : vector<2x72xf32> to vector<2x24xf32>
    %405 = vector.extract_strided_slice %402 {offsets = [0, 0], sizes = [2, 24], strides = [1, 1]} : vector<2x72xf32> to vector<2x24xf32>
    %406 = arith.addf %404, %405 : vector<2x24xf32>
    %407 = arith.negf %406 : vector<2x24xf32>
    %408 = math.exp %407 : vector<2x24xf32>
    %cst_91 = arith.constant 1.000000e+00 : f32
    %409 = vector.broadcast %cst_91 : f32 to vector<2x24xf32>
    %410 = arith.addf %409, %408 : vector<2x24xf32>
    %411 = arith.divf %409, %410 : vector<2x24xf32>
    %412 = vector.extract_strided_slice %403 {offsets = [0, 24], sizes = [2, 24], strides = [1, 1]} : vector<2x72xf32> to vector<2x24xf32>
    %413 = vector.extract_strided_slice %402 {offsets = [0, 24], sizes = [2, 24], strides = [1, 1]} : vector<2x72xf32> to vector<2x24xf32>
    %414 = arith.addf %412, %413 : vector<2x24xf32>
    %415 = arith.negf %414 : vector<2x24xf32>
    %416 = math.exp %415 : vector<2x24xf32>
    %cst_92 = arith.constant 1.000000e+00 : f32
    %417 = vector.broadcast %cst_92 : f32 to vector<2x24xf32>
    %418 = arith.addf %417, %416 : vector<2x24xf32>
    %419 = arith.divf %417, %418 : vector<2x24xf32>
    %420 = vector.extract_strided_slice %403 {offsets = [0, 48], sizes = [2, 24], strides = [1, 1]} : vector<2x72xf32> to vector<2x24xf32>
    %421 = vector.extract_strided_slice %402 {offsets = [0, 48], sizes = [2, 24], strides = [1, 1]} : vector<2x72xf32> to vector<2x24xf32>
    %422 = arith.mulf %411, %421 : vector<2x24xf32>
    %423 = arith.addf %420, %422 : vector<2x24xf32>
    %424 = math.tanh %423 : vector<2x24xf32>
    %cst_93 = arith.constant 1.000000e+00 : f32
    %425 = vector.broadcast %cst_93 : f32 to vector<2x24xf32>
    %426 = arith.subf %425, %419 : vector<2x24xf32>
    %427 = arith.mulf %426, %424 : vector<2x24xf32>
    %428 = arith.mulf %419, %367 : vector<2x24xf32>
    %429 = arith.addf %427, %428 : vector<2x24xf32>
    %cst_94 = arith.constant dense<0.000000e+00> : vector<2x72xf32>
    %430 = tpu.matmul %397, %2, %cst_94 {dimension_numbers = #tpu.dot_dimension_numbers<[1], [0], [0], [1], [0, 0, 1, 1], [], []>} : vector<2x24xf32>, vector<24x72xf32>, vector<2x72xf32> -> vector<2x72xf32>
    %431 = vector.broadcast %3 : vector<1x72xf32> to vector<2x72xf32>
    %432 = arith.addf %430, %431 : vector<2x72xf32>
    %433 = vector.extract_strided_slice %25 {offsets = [2, 0], sizes = [2, 72], strides = [1, 1]} : vector<16x72xf32> to vector<2x72xf32>
    %434 = vector.extract_strided_slice %433 {offsets = [0, 0], sizes = [2, 24], strides = [1, 1]} : vector<2x72xf32> to vector<2x24xf32>
    %435 = vector.extract_strided_slice %432 {offsets = [0, 0], sizes = [2, 24], strides = [1, 1]} : vector<2x72xf32> to vector<2x24xf32>
    %436 = arith.addf %434, %435 : vector<2x24xf32>
    %437 = arith.negf %436 : vector<2x24xf32>
    %438 = math.exp %437 : vector<2x24xf32>
    %cst_95 = arith.constant 1.000000e+00 : f32
    %439 = vector.broadcast %cst_95 : f32 to vector<2x24xf32>
    %440 = arith.addf %439, %438 : vector<2x24xf32>
    %441 = arith.divf %439, %440 : vector<2x24xf32>
    %442 = vector.extract_strided_slice %433 {offsets = [0, 24], sizes = [2, 24], strides = [1, 1]} : vector<2x72xf32> to vector<2x24xf32>
    %443 = vector.extract_strided_slice %432 {offsets = [0, 24], sizes = [2, 24], strides = [1, 1]} : vector<2x72xf32> to vector<2x24xf32>
    %444 = arith.addf %442, %443 : vector<2x24xf32>
    %445 = arith.negf %444 : vector<2x24xf32>
    %446 = math.exp %445 : vector<2x24xf32>
    %cst_96 = arith.constant 1.000000e+00 : f32
    %447 = vector.broadcast %cst_96 : f32 to vector<2x24xf32>
    %448 = arith.addf %447, %446 : vector<2x24xf32>
    %449 = arith.divf %447, %448 : vector<2x24xf32>
    %450 = vector.extract_strided_slice %433 {offsets = [0, 48], sizes = [2, 24], strides = [1, 1]} : vector<2x72xf32> to vector<2x24xf32>
    %451 = vector.extract_strided_slice %432 {offsets = [0, 48], sizes = [2, 24], strides = [1, 1]} : vector<2x72xf32> to vector<2x24xf32>
    %452 = arith.mulf %441, %451 : vector<2x24xf32>
    %453 = arith.addf %450, %452 : vector<2x24xf32>
    %454 = math.tanh %453 : vector<2x24xf32>
    %cst_97 = arith.constant 1.000000e+00 : f32
    %455 = vector.broadcast %cst_97 : f32 to vector<2x24xf32>
    %456 = arith.subf %455, %449 : vector<2x24xf32>
    %457 = arith.mulf %456, %454 : vector<2x24xf32>
    %458 = arith.mulf %449, %397 : vector<2x24xf32>
    %459 = arith.addf %457, %458 : vector<2x24xf32>
    %460 = vector.extract_strided_slice %429 {offsets = [0, 16], sizes = [2, 8], strides = [1, 1]} : vector<2x24xf32> to vector<2x8xf32>
    %461 = vector.extract_strided_slice %459 {offsets = [0, 16], sizes = [2, 8], strides = [1, 1]} : vector<2x24xf32> to vector<2x8xf32>
    %cst_98 = arith.constant dense<0.000000e+00> : vector<2x72xf32>
    %462 = tpu.matmul %429, %0, %cst_98 {dimension_numbers = #tpu.dot_dimension_numbers<[1], [0], [0], [1], [0, 0, 1, 1], [], []>} : vector<2x24xf32>, vector<24x72xf32>, vector<2x72xf32> -> vector<2x72xf32>
    %463 = vector.broadcast %1 : vector<1x72xf32> to vector<2x72xf32>
    %464 = arith.addf %462, %463 : vector<2x72xf32>
    %465 = vector.extract_strided_slice %20 {offsets = [14, 0], sizes = [2, 72], strides = [1, 1]} : vector<16x72xf32> to vector<2x72xf32>
    %466 = vector.extract_strided_slice %465 {offsets = [0, 0], sizes = [2, 24], strides = [1, 1]} : vector<2x72xf32> to vector<2x24xf32>
    %467 = vector.extract_strided_slice %464 {offsets = [0, 0], sizes = [2, 24], strides = [1, 1]} : vector<2x72xf32> to vector<2x24xf32>
    %468 = arith.addf %466, %467 : vector<2x24xf32>
    %469 = arith.negf %468 : vector<2x24xf32>
    %470 = math.exp %469 : vector<2x24xf32>
    %cst_99 = arith.constant 1.000000e+00 : f32
    %471 = vector.broadcast %cst_99 : f32 to vector<2x24xf32>
    %472 = arith.addf %471, %470 : vector<2x24xf32>
    %473 = arith.divf %471, %472 : vector<2x24xf32>
    %474 = vector.extract_strided_slice %465 {offsets = [0, 24], sizes = [2, 24], strides = [1, 1]} : vector<2x72xf32> to vector<2x24xf32>
    %475 = vector.extract_strided_slice %464 {offsets = [0, 24], sizes = [2, 24], strides = [1, 1]} : vector<2x72xf32> to vector<2x24xf32>
    %476 = arith.addf %474, %475 : vector<2x24xf32>
    %477 = arith.negf %476 : vector<2x24xf32>
    %478 = math.exp %477 : vector<2x24xf32>
    %cst_100 = arith.constant 1.000000e+00 : f32
    %479 = vector.broadcast %cst_100 : f32 to vector<2x24xf32>
    %480 = arith.addf %479, %478 : vector<2x24xf32>
    %481 = arith.divf %479, %480 : vector<2x24xf32>
    %482 = vector.extract_strided_slice %465 {offsets = [0, 48], sizes = [2, 24], strides = [1, 1]} : vector<2x72xf32> to vector<2x24xf32>
    %483 = vector.extract_strided_slice %464 {offsets = [0, 48], sizes = [2, 24], strides = [1, 1]} : vector<2x72xf32> to vector<2x24xf32>
    %484 = arith.mulf %473, %483 : vector<2x24xf32>
    %485 = arith.addf %482, %484 : vector<2x24xf32>
    %486 = math.tanh %485 : vector<2x24xf32>
    %cst_101 = arith.constant 1.000000e+00 : f32
    %487 = vector.broadcast %cst_101 : f32 to vector<2x24xf32>
    %488 = arith.subf %487, %481 : vector<2x24xf32>
    %489 = arith.mulf %488, %486 : vector<2x24xf32>
    %490 = arith.mulf %481, %429 : vector<2x24xf32>
    %491 = arith.addf %489, %490 : vector<2x24xf32>
    %cst_102 = arith.constant dense<0.000000e+00> : vector<2x72xf32>
    %492 = tpu.matmul %459, %2, %cst_102 {dimension_numbers = #tpu.dot_dimension_numbers<[1], [0], [0], [1], [0, 0, 1, 1], [], []>} : vector<2x24xf32>, vector<24x72xf32>, vector<2x72xf32> -> vector<2x72xf32>
    %493 = vector.broadcast %3 : vector<1x72xf32> to vector<2x72xf32>
    %494 = arith.addf %492, %493 : vector<2x72xf32>
    %495 = vector.extract_strided_slice %25 {offsets = [0, 0], sizes = [2, 72], strides = [1, 1]} : vector<16x72xf32> to vector<2x72xf32>
    %496 = vector.extract_strided_slice %495 {offsets = [0, 0], sizes = [2, 24], strides = [1, 1]} : vector<2x72xf32> to vector<2x24xf32>
    %497 = vector.extract_strided_slice %494 {offsets = [0, 0], sizes = [2, 24], strides = [1, 1]} : vector<2x72xf32> to vector<2x24xf32>
    %498 = arith.addf %496, %497 : vector<2x24xf32>
    %499 = arith.negf %498 : vector<2x24xf32>
    %500 = math.exp %499 : vector<2x24xf32>
    %cst_103 = arith.constant 1.000000e+00 : f32
    %501 = vector.broadcast %cst_103 : f32 to vector<2x24xf32>
    %502 = arith.addf %501, %500 : vector<2x24xf32>
    %503 = arith.divf %501, %502 : vector<2x24xf32>
    %504 = vector.extract_strided_slice %495 {offsets = [0, 24], sizes = [2, 24], strides = [1, 1]} : vector<2x72xf32> to vector<2x24xf32>
    %505 = vector.extract_strided_slice %494 {offsets = [0, 24], sizes = [2, 24], strides = [1, 1]} : vector<2x72xf32> to vector<2x24xf32>
    %506 = arith.addf %504, %505 : vector<2x24xf32>
    %507 = arith.negf %506 : vector<2x24xf32>
    %508 = math.exp %507 : vector<2x24xf32>
    %cst_104 = arith.constant 1.000000e+00 : f32
    %509 = vector.broadcast %cst_104 : f32 to vector<2x24xf32>
    %510 = arith.addf %509, %508 : vector<2x24xf32>
    %511 = arith.divf %509, %510 : vector<2x24xf32>
    %512 = vector.extract_strided_slice %495 {offsets = [0, 48], sizes = [2, 24], strides = [1, 1]} : vector<2x72xf32> to vector<2x24xf32>
    %513 = vector.extract_strided_slice %494 {offsets = [0, 48], sizes = [2, 24], strides = [1, 1]} : vector<2x72xf32> to vector<2x24xf32>
    %514 = arith.mulf %503, %513 : vector<2x24xf32>
    %515 = arith.addf %512, %514 : vector<2x24xf32>
    %516 = math.tanh %515 : vector<2x24xf32>
    %cst_105 = arith.constant 1.000000e+00 : f32
    %517 = vector.broadcast %cst_105 : f32 to vector<2x24xf32>
    %518 = arith.subf %517, %511 : vector<2x24xf32>
    %519 = arith.mulf %518, %516 : vector<2x24xf32>
    %520 = arith.mulf %511, %459 : vector<2x24xf32>
    %521 = arith.addf %519, %520 : vector<2x24xf32>
    %522 = vector.extract_strided_slice %491 {offsets = [0, 16], sizes = [2, 8], strides = [1, 1]} : vector<2x24xf32> to vector<2x8xf32>
    %523 = vector.extract_strided_slice %521 {offsets = [0, 16], sizes = [2, 8], strides = [1, 1]} : vector<2x24xf32> to vector<2x8xf32>
    %524 = vector.extract_strided_slice %491 {offsets = [0, 0], sizes = [2, 16], strides = [1, 1]} : vector<2x24xf32> to vector<2x16xf32>
    %525 = vector.extract_strided_slice %521 {offsets = [0, 0], sizes = [2, 16], strides = [1, 1]} : vector<2x24xf32> to vector<2x16xf32>
    %526 = tpu.concatenate %524, %525 in 1 : vector<2x16xf32>, vector<2x16xf32> -> vector<2x32xf32>
    %c0_106 = arith.constant 0 : index
    %c0_107 = arith.constant 0 : index
    %527 = vector.load %arg9[%c0_106, %c0_107] : memref<32x16xf32, #tpu.memory_space<vmem>>, vector<32x16xf32>
    %cst_108 = arith.constant dense<0.000000e+00> : vector<2x16xf32>
    %528 = tpu.matmul %526, %527, %cst_108 {dimension_numbers = #tpu.dot_dimension_numbers<[1], [0], [0], [1], [0, 0, 1, 1], [], []>} : vector<2x32xf32>, vector<32x16xf32>, vector<2x16xf32> -> vector<2x16xf32>
    %c0_109 = arith.constant 0 : index
    %c0_110 = arith.constant 0 : index
    %529 = vector.load %arg10[%c0_109, %c0_110] : memref<1x16xf32, #tpu.memory_space<vmem>>, vector<1x16xf32>
    %530 = vector.broadcast %529 : vector<1x16xf32> to vector<2x16xf32>
    %531 = arith.addf %528, %530 : vector<2x16xf32>
    %532 = vector.extract_strided_slice %531 {offsets = [0, 0], sizes = [2, 8], strides = [1, 1]} : vector<2x16xf32> to vector<2x8xf32>
    %533 = vector.extract_strided_slice %531 {offsets = [0, 8], sizes = [2, 8], strides = [1, 1]} : vector<2x16xf32> to vector<2x8xf32>
    %cst_111 = arith.constant 5.000000e-01 : f32
    %534 = vector.broadcast %cst_111 : f32 to vector<2x8xf32>
    %535 = arith.mulf %534, %533 : vector<2x8xf32>
    %536 = math.exp %535 : vector<2x8xf32>
    %c0_112 = arith.constant 0 : index
    %c0_113 = arith.constant 0 : index
    %537 = vector.load %arg11[%c0_112, %c0_113] : memref<8x32xf32, #tpu.memory_space<vmem>>, vector<8x32xf32>
    %cst_114 = arith.constant dense<0.000000e+00> : vector<2x32xf32>
    %538 = tpu.matmul %532, %537, %cst_114 {dimension_numbers = #tpu.dot_dimension_numbers<[1], [0], [0], [1], [0, 0, 1, 1], [], []>} : vector<2x8xf32>, vector<8x32xf32>, vector<2x32xf32> -> vector<2x32xf32>
    %c0_115 = arith.constant 0 : index
    %c0_116 = arith.constant 0 : index
    %539 = vector.load %arg12[%c0_115, %c0_116] : memref<1x32xf32, #tpu.memory_space<vmem>>, vector<1x32xf32>
    %540 = vector.broadcast %539 : vector<1x32xf32> to vector<2x32xf32>
    %541 = arith.addf %538, %540 : vector<2x32xf32>
    %cst_117 = arith.constant dense<0.000000e+00> : vector<2x24xf32>
    %542 = tpu.matmul %541, %13, %cst_117 {dimension_numbers = #tpu.dot_dimension_numbers<[1], [0], [0], [1], [0, 0, 1, 1], [], []>} : vector<2x32xf32>, vector<32x24xf32>, vector<2x24xf32> -> vector<2x24xf32>
    %543 = vector.extract_strided_slice %542 {offsets = [0, 0], sizes = [2, 8], strides = [1, 1]} : vector<2x24xf32> to vector<2x8xf32>
    %cst_118 = arith.constant 0.000000e+00 : f32
    %544 = vector.broadcast %cst_118 : f32 to vector<2x16xf32>
    %cst_119 = arith.constant 0.000000e+00 : f32
    %545 = vector.broadcast %cst_119 : f32 to vector<2x32xf32>
    %546 = tpu.concatenate %88, %523 in 1 : vector<2x8xf32>, vector<2x8xf32> -> vector<2x16xf32>
    %cst_120 = arith.constant dense<0.000000e+00> : vector<2x48xf32>
    %547 = tpu.matmul %546, %4, %cst_120 {dimension_numbers = #tpu.dot_dimension_numbers<[1], [0], [0], [1], [0, 0, 1, 1], [], []>} : vector<2x16xf32>, vector<16x48xf32>, vector<2x48xf32> -> vector<2x48xf32>
    %cst_121 = arith.constant dense<0.000000e+00> : vector<2x48xf32>
    %548 = tpu.matmul %543, %5, %cst_121 {dimension_numbers = #tpu.dot_dimension_numbers<[1], [0], [0], [1], [0, 0, 1, 1], [], []>} : vector<2x8xf32>, vector<8x48xf32>, vector<2x48xf32> -> vector<2x48xf32>
    %549 = arith.addf %547, %548 : vector<2x48xf32>
    %550 = vector.broadcast %7 : vector<1x48xf32> to vector<2x48xf32>
    %551 = arith.addf %549, %550 : vector<2x48xf32>
    %cst_122 = arith.constant dense<0.000000e+00> : vector<2x48xf32>
    %552 = tpu.matmul %544, %6, %cst_122 {dimension_numbers = #tpu.dot_dimension_numbers<[1], [0], [0], [1], [0, 0, 1, 1], [], []>} : vector<2x16xf32>, vector<16x48xf32>, vector<2x48xf32> -> vector<2x48xf32>
    %553 = vector.broadcast %8 : vector<1x48xf32> to vector<2x48xf32>
    %554 = arith.addf %552, %553 : vector<2x48xf32>
    %555 = vector.extract_strided_slice %551 {offsets = [0, 0], sizes = [2, 16], strides = [1, 1]} : vector<2x48xf32> to vector<2x16xf32>
    %556 = vector.extract_strided_slice %554 {offsets = [0, 0], sizes = [2, 16], strides = [1, 1]} : vector<2x48xf32> to vector<2x16xf32>
    %557 = arith.addf %555, %556 : vector<2x16xf32>
    %558 = arith.negf %557 : vector<2x16xf32>
    %559 = math.exp %558 : vector<2x16xf32>
    %cst_123 = arith.constant 1.000000e+00 : f32
    %560 = vector.broadcast %cst_123 : f32 to vector<2x16xf32>
    %561 = arith.addf %560, %559 : vector<2x16xf32>
    %562 = arith.divf %560, %561 : vector<2x16xf32>
    %563 = vector.extract_strided_slice %551 {offsets = [0, 16], sizes = [2, 16], strides = [1, 1]} : vector<2x48xf32> to vector<2x16xf32>
    %564 = vector.extract_strided_slice %554 {offsets = [0, 16], sizes = [2, 16], strides = [1, 1]} : vector<2x48xf32> to vector<2x16xf32>
    %565 = arith.addf %563, %564 : vector<2x16xf32>
    %566 = arith.negf %565 : vector<2x16xf32>
    %567 = math.exp %566 : vector<2x16xf32>
    %cst_124 = arith.constant 1.000000e+00 : f32
    %568 = vector.broadcast %cst_124 : f32 to vector<2x16xf32>
    %569 = arith.addf %568, %567 : vector<2x16xf32>
    %570 = arith.divf %568, %569 : vector<2x16xf32>
    %571 = vector.extract_strided_slice %551 {offsets = [0, 32], sizes = [2, 16], strides = [1, 1]} : vector<2x48xf32> to vector<2x16xf32>
    %572 = vector.extract_strided_slice %554 {offsets = [0, 32], sizes = [2, 16], strides = [1, 1]} : vector<2x48xf32> to vector<2x16xf32>
    %573 = arith.mulf %562, %572 : vector<2x16xf32>
    %574 = arith.addf %571, %573 : vector<2x16xf32>
    %575 = math.tanh %574 : vector<2x16xf32>
    %cst_125 = arith.constant 1.000000e+00 : f32
    %576 = vector.broadcast %cst_125 : f32 to vector<2x16xf32>
    %577 = arith.subf %576, %570 : vector<2x16xf32>
    %578 = arith.mulf %577, %575 : vector<2x16xf32>
    %579 = arith.mulf %570, %544 : vector<2x16xf32>
    %580 = arith.addf %578, %579 : vector<2x16xf32>
    %cst_126 = arith.constant dense<0.000000e+00> : vector<2x104xf32>
    %581 = tpu.matmul %580, %9, %cst_126 {dimension_numbers = #tpu.dot_dimension_numbers<[1], [0], [0], [1], [0, 0, 1, 1], [], []>} : vector<2x16xf32>, vector<16x104xf32>, vector<2x104xf32> -> vector<2x104xf32>
    %582 = vector.broadcast %10 : vector<1x104xf32> to vector<2x104xf32>
    %583 = arith.addf %581, %582 : vector<2x104xf32>
    %584 = vector.extract_strided_slice %583 {offsets = [0, 0], sizes = [2, 4], strides = [1, 1]} : vector<2x104xf32> to vector<2x4xf32>
    %585 = vector.extract_strided_slice %583 {offsets = [0, 4], sizes = [2, 4], strides = [1, 1]} : vector<2x104xf32> to vector<2x4xf32>
    %cst_127 = arith.constant 5.000000e-01 : f32
    %586 = vector.broadcast %cst_127 : f32 to vector<2x4xf32>
    %587 = arith.mulf %586, %585 : vector<2x4xf32>
    %588 = math.exp %587 : vector<2x4xf32>
    %589 = vector.extract_strided_slice %583 {offsets = [0, 8], sizes = [2, 96], strides = [1, 1]} : vector<2x104xf32> to vector<2x96xf32>
    %cst_128 = arith.constant dense<0.000000e+00> : vector<2x96xf32>
    %590 = tpu.matmul %541, %11, %cst_128 {dimension_numbers = #tpu.dot_dimension_numbers<[1], [0], [0], [1], [0, 0, 1, 1], [], []>} : vector<2x32xf32>, vector<32x96xf32>, vector<2x96xf32> -> vector<2x96xf32>
    %591 = vector.broadcast %12 : vector<1x96xf32> to vector<2x96xf32>
    %592 = arith.addf %590, %591 : vector<2x96xf32>
    %593 = vector.extract_strided_slice %589 {offsets = [0, 0], sizes = [2, 32], strides = [1, 1]} : vector<2x96xf32> to vector<2x32xf32>
    %594 = vector.extract_strided_slice %592 {offsets = [0, 0], sizes = [2, 32], strides = [1, 1]} : vector<2x96xf32> to vector<2x32xf32>
    %595 = arith.addf %593, %594 : vector<2x32xf32>
    %596 = arith.negf %595 : vector<2x32xf32>
    %597 = math.exp %596 : vector<2x32xf32>
    %cst_129 = arith.constant 1.000000e+00 : f32
    %598 = vector.broadcast %cst_129 : f32 to vector<2x32xf32>
    %599 = arith.addf %598, %597 : vector<2x32xf32>
    %600 = arith.divf %598, %599 : vector<2x32xf32>
    %601 = vector.extract_strided_slice %589 {offsets = [0, 32], sizes = [2, 32], strides = [1, 1]} : vector<2x96xf32> to vector<2x32xf32>
    %602 = vector.extract_strided_slice %592 {offsets = [0, 32], sizes = [2, 32], strides = [1, 1]} : vector<2x96xf32> to vector<2x32xf32>
    %603 = arith.addf %601, %602 : vector<2x32xf32>
    %604 = arith.negf %603 : vector<2x32xf32>
    %605 = math.exp %604 : vector<2x32xf32>
    %cst_130 = arith.constant 1.000000e+00 : f32
    %606 = vector.broadcast %cst_130 : f32 to vector<2x32xf32>
    %607 = arith.addf %606, %605 : vector<2x32xf32>
    %608 = arith.divf %606, %607 : vector<2x32xf32>
    %609 = vector.extract_strided_slice %589 {offsets = [0, 64], sizes = [2, 32], strides = [1, 1]} : vector<2x96xf32> to vector<2x32xf32>
    %610 = vector.extract_strided_slice %592 {offsets = [0, 64], sizes = [2, 32], strides = [1, 1]} : vector<2x96xf32> to vector<2x32xf32>
    %611 = arith.mulf %600, %610 : vector<2x32xf32>
    %612 = arith.addf %609, %611 : vector<2x32xf32>
    %613 = math.tanh %612 : vector<2x32xf32>
    %cst_131 = arith.constant 1.000000e+00 : f32
    %614 = vector.broadcast %cst_131 : f32 to vector<2x32xf32>
    %615 = arith.subf %614, %608 : vector<2x32xf32>
    %616 = arith.mulf %615, %613 : vector<2x32xf32>
    %617 = arith.mulf %608, %541 : vector<2x32xf32>
    %618 = arith.addf %616, %617 : vector<2x32xf32>
    %cst_132 = arith.constant dense<0.000000e+00> : vector<2x24xf32>
    %619 = tpu.matmul %618, %13, %cst_132 {dimension_numbers = #tpu.dot_dimension_numbers<[1], [0], [0], [1], [0, 0, 1, 1], [], []>} : vector<2x32xf32>, vector<32x24xf32>, vector<2x24xf32> -> vector<2x24xf32>
    %620 = vector.broadcast %14 : vector<1x24xf32> to vector<2x24xf32>
    %621 = arith.addf %619, %620 : vector<2x24xf32>
    %622 = vector.extract_strided_slice %621 {offsets = [0, 0], sizes = [2, 8], strides = [1, 1]} : vector<2x24xf32> to vector<2x8xf32>
    %623 = vector.extract_strided_slice %621 {offsets = [0, 8], sizes = [2, 16], strides = [1, 1]} : vector<2x24xf32> to vector<2x16xf32>
    %624 = tpu.concatenate %546, %618, %580, %584, %588, %622, %623, %545 in 1 : vector<2x16xf32>, vector<2x32xf32>, vector<2x16xf32>, vector<2x4xf32>, vector<2x4xf32>, vector<2x8xf32>, vector<2x16xf32>, vector<2x32xf32> -> vector<2x128xf32>
    %c0_133 = arith.constant 0 : index
    %c0_134 = arith.constant 0 : index
    %c0_135 = arith.constant 0 : index
    %625 = vector.load %arg24[%c0_133, %c0_134, %c0_135] : memref<8x2x128xf32, #tpu.memory_space<vmem>>, vector<1x2x128xf32>
    %626 = vector.shape_cast %625 : vector<1x2x128xf32> to vector<2x128xf32>
    %627 = vector.shape_cast %624 : vector<2x128xf32> to vector<1x2x128xf32>
    tpu.vector_store %arg24[%c0_133, %c0_134, %c0_135], %627 {strides = array<i32>} : memref<8x2x128xf32, #tpu.memory_space<vmem>>, vector<1x2x128xf32>,
    %628 = tpu.concatenate %150, %461 in 1 : vector<2x8xf32>, vector<2x8xf32> -> vector<2x16xf32>
    %cst_136 = arith.constant dense<0.000000e+00> : vector<2x48xf32>
    %629 = tpu.matmul %628, %4, %cst_136 {dimension_numbers = #tpu.dot_dimension_numbers<[1], [0], [0], [1], [0, 0, 1, 1], [], []>} : vector<2x16xf32>, vector<16x48xf32>, vector<2x48xf32> -> vector<2x48xf32>
    %cst_137 = arith.constant dense<0.000000e+00> : vector<2x48xf32>
    %630 = tpu.matmul %622, %5, %cst_137 {dimension_numbers = #tpu.dot_dimension_numbers<[1], [0], [0], [1], [0, 0, 1, 1], [], []>} : vector<2x8xf32>, vector<8x48xf32>, vector<2x48xf32> -> vector<2x48xf32>
    %631 = arith.addf %629, %630 : vector<2x48xf32>
    %632 = vector.broadcast %7 : vector<1x48xf32> to vector<2x48xf32>
    %633 = arith.addf %631, %632 : vector<2x48xf32>
    %cst_138 = arith.constant dense<0.000000e+00> : vector<2x48xf32>
    %634 = tpu.matmul %580, %6, %cst_138 {dimension_numbers = #tpu.dot_dimension_numbers<[1], [0], [0], [1], [0, 0, 1, 1], [], []>} : vector<2x16xf32>, vector<16x48xf32>, vector<2x48xf32> -> vector<2x48xf32>
    %635 = vector.broadcast %8 : vector<1x48xf32> to vector<2x48xf32>
    %636 = arith.addf %634, %635 : vector<2x48xf32>
    %637 = vector.extract_strided_slice %633 {offsets = [0, 0], sizes = [2, 16], strides = [1, 1]} : vector<2x48xf32> to vector<2x16xf32>
    %638 = vector.extract_strided_slice %636 {offsets = [0, 0], sizes = [2, 16], strides = [1, 1]} : vector<2x48xf32> to vector<2x16xf32>
    %639 = arith.addf %637, %638 : vector<2x16xf32>
    %640 = arith.negf %639 : vector<2x16xf32>
    %641 = math.exp %640 : vector<2x16xf32>
    %cst_139 = arith.constant 1.000000e+00 : f32
    %642 = vector.broadcast %cst_139 : f32 to vector<2x16xf32>
    %643 = arith.addf %642, %641 : vector<2x16xf32>
    %644 = arith.divf %642, %643 : vector<2x16xf32>
    %645 = vector.extract_strided_slice %633 {offsets = [0, 16], sizes = [2, 16], strides = [1, 1]} : vector<2x48xf32> to vector<2x16xf32>
    %646 = vector.extract_strided_slice %636 {offsets = [0, 16], sizes = [2, 16], strides = [1, 1]} : vector<2x48xf32> to vector<2x16xf32>
    %647 = arith.addf %645, %646 : vector<2x16xf32>
    %648 = arith.negf %647 : vector<2x16xf32>
    %649 = math.exp %648 : vector<2x16xf32>
    %cst_140 = arith.constant 1.000000e+00 : f32
    %650 = vector.broadcast %cst_140 : f32 to vector<2x16xf32>
    %651 = arith.addf %650, %649 : vector<2x16xf32>
    %652 = arith.divf %650, %651 : vector<2x16xf32>
    %653 = vector.extract_strided_slice %633 {offsets = [0, 32], sizes = [2, 16], strides = [1, 1]} : vector<2x48xf32> to vector<2x16xf32>
    %654 = vector.extract_strided_slice %636 {offsets = [0, 32], sizes = [2, 16], strides = [1, 1]} : vector<2x48xf32> to vector<2x16xf32>
    %655 = arith.mulf %644, %654 : vector<2x16xf32>
    %656 = arith.addf %653, %655 : vector<2x16xf32>
    %657 = math.tanh %656 : vector<2x16xf32>
    %cst_141 = arith.constant 1.000000e+00 : f32
    %658 = vector.broadcast %cst_141 : f32 to vector<2x16xf32>
    %659 = arith.subf %658, %652 : vector<2x16xf32>
    %660 = arith.mulf %659, %657 : vector<2x16xf32>
    %661 = arith.mulf %652, %580 : vector<2x16xf32>
    %662 = arith.addf %660, %661 : vector<2x16xf32>
    %cst_142 = arith.constant dense<0.000000e+00> : vector<2x104xf32>
    %663 = tpu.matmul %662, %9, %cst_142 {dimension_numbers = #tpu.dot_dimension_numbers<[1], [0], [0], [1], [0, 0, 1, 1], [], []>} : vector<2x16xf32>, vector<16x104xf32>, vector<2x104xf32> -> vector<2x104xf32>
    %664 = vector.broadcast %10 : vector<1x104xf32> to vector<2x104xf32>
    %665 = arith.addf %663, %664 : vector<2x104xf32>
    %666 = vector.extract_strided_slice %665 {offsets = [0, 0], sizes = [2, 4], strides = [1, 1]} : vector<2x104xf32> to vector<2x4xf32>
    %667 = vector.extract_strided_slice %665 {offsets = [0, 4], sizes = [2, 4], strides = [1, 1]} : vector<2x104xf32> to vector<2x4xf32>
    %cst_143 = arith.constant 5.000000e-01 : f32
    %668 = vector.broadcast %cst_143 : f32 to vector<2x4xf32>
    %669 = arith.mulf %668, %667 : vector<2x4xf32>
    %670 = math.exp %669 : vector<2x4xf32>
    %671 = vector.extract_strided_slice %665 {offsets = [0, 8], sizes = [2, 96], strides = [1, 1]} : vector<2x104xf32> to vector<2x96xf32>
    %cst_144 = arith.constant dense<0.000000e+00> : vector<2x96xf32>
    %672 = tpu.matmul %618, %11, %cst_144 {dimension_numbers = #tpu.dot_dimension_numbers<[1], [0], [0], [1], [0, 0, 1, 1], [], []>} : vector<2x32xf32>, vector<32x96xf32>, vector<2x96xf32> -> vector<2x96xf32>
    %673 = vector.broadcast %12 : vector<1x96xf32> to vector<2x96xf32>
    %674 = arith.addf %672, %673 : vector<2x96xf32>
    %675 = vector.extract_strided_slice %671 {offsets = [0, 0], sizes = [2, 32], strides = [1, 1]} : vector<2x96xf32> to vector<2x32xf32>
    %676 = vector.extract_strided_slice %674 {offsets = [0, 0], sizes = [2, 32], strides = [1, 1]} : vector<2x96xf32> to vector<2x32xf32>
    %677 = arith.addf %675, %676 : vector<2x32xf32>
    %678 = arith.negf %677 : vector<2x32xf32>
    %679 = math.exp %678 : vector<2x32xf32>
    %cst_145 = arith.constant 1.000000e+00 : f32
    %680 = vector.broadcast %cst_145 : f32 to vector<2x32xf32>
    %681 = arith.addf %680, %679 : vector<2x32xf32>
    %682 = arith.divf %680, %681 : vector<2x32xf32>
    %683 = vector.extract_strided_slice %671 {offsets = [0, 32], sizes = [2, 32], strides = [1, 1]} : vector<2x96xf32> to vector<2x32xf32>
    %684 = vector.extract_strided_slice %674 {offsets = [0, 32], sizes = [2, 32], strides = [1, 1]} : vector<2x96xf32> to vector<2x32xf32>
    %685 = arith.addf %683, %684 : vector<2x32xf32>
    %686 = arith.negf %685 : vector<2x32xf32>
    %687 = math.exp %686 : vector<2x32xf32>
    %cst_146 = arith.constant 1.000000e+00 : f32
    %688 = vector.broadcast %cst_146 : f32 to vector<2x32xf32>
    %689 = arith.addf %688, %687 : vector<2x32xf32>
    %690 = arith.divf %688, %689 : vector<2x32xf32>
    %691 = vector.extract_strided_slice %671 {offsets = [0, 64], sizes = [2, 32], strides = [1, 1]} : vector<2x96xf32> to vector<2x32xf32>
    %692 = vector.extract_strided_slice %674 {offsets = [0, 64], sizes = [2, 32], strides = [1, 1]} : vector<2x96xf32> to vector<2x32xf32>
    %693 = arith.mulf %682, %692 : vector<2x32xf32>
    %694 = arith.addf %691, %693 : vector<2x32xf32>
    %695 = math.tanh %694 : vector<2x32xf32>
    %cst_147 = arith.constant 1.000000e+00 : f32
    %696 = vector.broadcast %cst_147 : f32 to vector<2x32xf32>
    %697 = arith.subf %696, %690 : vector<2x32xf32>
    %698 = arith.mulf %697, %695 : vector<2x32xf32>
    %699 = arith.mulf %690, %618 : vector<2x32xf32>
    %700 = arith.addf %698, %699 : vector<2x32xf32>
    %cst_148 = arith.constant dense<0.000000e+00> : vector<2x24xf32>
    %701 = tpu.matmul %700, %13, %cst_148 {dimension_numbers = #tpu.dot_dimension_numbers<[1], [0], [0], [1], [0, 0, 1, 1], [], []>} : vector<2x32xf32>, vector<32x24xf32>, vector<2x24xf32> -> vector<2x24xf32>
    %702 = vector.broadcast %14 : vector<1x24xf32> to vector<2x24xf32>
    %703 = arith.addf %701, %702 : vector<2x24xf32>
    %704 = vector.extract_strided_slice %703 {offsets = [0, 0], sizes = [2, 8], strides = [1, 1]} : vector<2x24xf32> to vector<2x8xf32>
    %705 = vector.extract_strided_slice %703 {offsets = [0, 8], sizes = [2, 16], strides = [1, 1]} : vector<2x24xf32> to vector<2x16xf32>
    %706 = tpu.concatenate %628, %700, %662, %666, %670, %704, %705, %545 in 1 : vector<2x16xf32>, vector<2x32xf32>, vector<2x16xf32>, vector<2x4xf32>, vector<2x4xf32>, vector<2x8xf32>, vector<2x16xf32>, vector<2x32xf32> -> vector<2x128xf32>
    %c1 = arith.constant 1 : index
    %c0_149 = arith.constant 0 : index
    %c0_150 = arith.constant 0 : index
    %707 = vector.load %arg24[%c1, %c0_149, %c0_150] : memref<8x2x128xf32, #tpu.memory_space<vmem>>, vector<1x2x128xf32>
    %708 = vector.shape_cast %707 : vector<1x2x128xf32> to vector<2x128xf32>
    %709 = vector.shape_cast %706 : vector<2x128xf32> to vector<1x2x128xf32>
    tpu.vector_store %arg24[%c1, %c0_149, %c0_150], %709 {strides = array<i32>} : memref<8x2x128xf32, #tpu.memory_space<vmem>>, vector<1x2x128xf32>,
    %710 = tpu.concatenate %212, %399 in 1 : vector<2x8xf32>, vector<2x8xf32> -> vector<2x16xf32>
    %cst_151 = arith.constant dense<0.000000e+00> : vector<2x48xf32>
    %711 = tpu.matmul %710, %4, %cst_151 {dimension_numbers = #tpu.dot_dimension_numbers<[1], [0], [0], [1], [0, 0, 1, 1], [], []>} : vector<2x16xf32>, vector<16x48xf32>, vector<2x48xf32> -> vector<2x48xf32>
    %cst_152 = arith.constant dense<0.000000e+00> : vector<2x48xf32>
    %712 = tpu.matmul %704, %5, %cst_152 {dimension_numbers = #tpu.dot_dimension_numbers<[1], [0], [0], [1], [0, 0, 1, 1], [], []>} : vector<2x8xf32>, vector<8x48xf32>, vector<2x48xf32> -> vector<2x48xf32>
    %713 = arith.addf %711, %712 : vector<2x48xf32>
    %714 = vector.broadcast %7 : vector<1x48xf32> to vector<2x48xf32>
    %715 = arith.addf %713, %714 : vector<2x48xf32>
    %cst_153 = arith.constant dense<0.000000e+00> : vector<2x48xf32>
    %716 = tpu.matmul %662, %6, %cst_153 {dimension_numbers = #tpu.dot_dimension_numbers<[1], [0], [0], [1], [0, 0, 1, 1], [], []>} : vector<2x16xf32>, vector<16x48xf32>, vector<2x48xf32> -> vector<2x48xf32>
    %717 = vector.broadcast %8 : vector<1x48xf32> to vector<2x48xf32>
    %718 = arith.addf %716, %717 : vector<2x48xf32>
    %719 = vector.extract_strided_slice %715 {offsets = [0, 0], sizes = [2, 16], strides = [1, 1]} : vector<2x48xf32> to vector<2x16xf32>
    %720 = vector.extract_strided_slice %718 {offsets = [0, 0], sizes = [2, 16], strides = [1, 1]} : vector<2x48xf32> to vector<2x16xf32>
    %721 = arith.addf %719, %720 : vector<2x16xf32>
    %722 = arith.negf %721 : vector<2x16xf32>
    %723 = math.exp %722 : vector<2x16xf32>
    %cst_154 = arith.constant 1.000000e+00 : f32
    %724 = vector.broadcast %cst_154 : f32 to vector<2x16xf32>
    %725 = arith.addf %724, %723 : vector<2x16xf32>
    %726 = arith.divf %724, %725 : vector<2x16xf32>
    %727 = vector.extract_strided_slice %715 {offsets = [0, 16], sizes = [2, 16], strides = [1, 1]} : vector<2x48xf32> to vector<2x16xf32>
    %728 = vector.extract_strided_slice %718 {offsets = [0, 16], sizes = [2, 16], strides = [1, 1]} : vector<2x48xf32> to vector<2x16xf32>
    %729 = arith.addf %727, %728 : vector<2x16xf32>
    %730 = arith.negf %729 : vector<2x16xf32>
    %731 = math.exp %730 : vector<2x16xf32>
    %cst_155 = arith.constant 1.000000e+00 : f32
    %732 = vector.broadcast %cst_155 : f32 to vector<2x16xf32>
    %733 = arith.addf %732, %731 : vector<2x16xf32>
    %734 = arith.divf %732, %733 : vector<2x16xf32>
    %735 = vector.extract_strided_slice %715 {offsets = [0, 32], sizes = [2, 16], strides = [1, 1]} : vector<2x48xf32> to vector<2x16xf32>
    %736 = vector.extract_strided_slice %718 {offsets = [0, 32], sizes = [2, 16], strides = [1, 1]} : vector<2x48xf32> to vector<2x16xf32>
    %737 = arith.mulf %726, %736 : vector<2x16xf32>
    %738 = arith.addf %735, %737 : vector<2x16xf32>
    %739 = math.tanh %738 : vector<2x16xf32>
    %cst_156 = arith.constant 1.000000e+00 : f32
    %740 = vector.broadcast %cst_156 : f32 to vector<2x16xf32>
    %741 = arith.subf %740, %734 : vector<2x16xf32>
    %742 = arith.mulf %741, %739 : vector<2x16xf32>
    %743 = arith.mulf %734, %662 : vector<2x16xf32>
    %744 = arith.addf %742, %743 : vector<2x16xf32>
    %cst_157 = arith.constant dense<0.000000e+00> : vector<2x104xf32>
    %745 = tpu.matmul %744, %9, %cst_157 {dimension_numbers = #tpu.dot_dimension_numbers<[1], [0], [0], [1], [0, 0, 1, 1], [], []>} : vector<2x16xf32>, vector<16x104xf32>, vector<2x104xf32> -> vector<2x104xf32>
    %746 = vector.broadcast %10 : vector<1x104xf32> to vector<2x104xf32>
    %747 = arith.addf %745, %746 : vector<2x104xf32>
    %748 = vector.extract_strided_slice %747 {offsets = [0, 0], sizes = [2, 4], strides = [1, 1]} : vector<2x104xf32> to vector<2x4xf32>
    %749 = vector.extract_strided_slice %747 {offsets = [0, 4], sizes = [2, 4], strides = [1, 1]} : vector<2x104xf32> to vector<2x4xf32>
    %cst_158 = arith.constant 5.000000e-01 : f32
    %750 = vector.broadcast %cst_158 : f32 to vector<2x4xf32>
    %751 = arith.mulf %750, %749 : vector<2x4xf32>
    %752 = math.exp %751 : vector<2x4xf32>
    %753 = vector.extract_strided_slice %747 {offsets = [0, 8], sizes = [2, 96], strides = [1, 1]} : vector<2x104xf32> to vector<2x96xf32>
    %cst_159 = arith.constant dense<0.000000e+00> : vector<2x96xf32>
    %754 = tpu.matmul %700, %11, %cst_159 {dimension_numbers = #tpu.dot_dimension_numbers<[1], [0], [0], [1], [0, 0, 1, 1], [], []>} : vector<2x32xf32>, vector<32x96xf32>, vector<2x96xf32> -> vector<2x96xf32>
    %755 = vector.broadcast %12 : vector<1x96xf32> to vector<2x96xf32>
    %756 = arith.addf %754, %755 : vector<2x96xf32>
    %757 = vector.extract_strided_slice %753 {offsets = [0, 0], sizes = [2, 32], strides = [1, 1]} : vector<2x96xf32> to vector<2x32xf32>
    %758 = vector.extract_strided_slice %756 {offsets = [0, 0], sizes = [2, 32], strides = [1, 1]} : vector<2x96xf32> to vector<2x32xf32>
    %759 = arith.addf %757, %758 : vector<2x32xf32>
    %760 = arith.negf %759 : vector<2x32xf32>
    %761 = math.exp %760 : vector<2x32xf32>
    %cst_160 = arith.constant 1.000000e+00 : f32
    %762 = vector.broadcast %cst_160 : f32 to vector<2x32xf32>
    %763 = arith.addf %762, %761 : vector<2x32xf32>
    %764 = arith.divf %762, %763 : vector<2x32xf32>
    %765 = vector.extract_strided_slice %753 {offsets = [0, 32], sizes = [2, 32], strides = [1, 1]} : vector<2x96xf32> to vector<2x32xf32>
    %766 = vector.extract_strided_slice %756 {offsets = [0, 32], sizes = [2, 32], strides = [1, 1]} : vector<2x96xf32> to vector<2x32xf32>
    %767 = arith.addf %765, %766 : vector<2x32xf32>
    %768 = arith.negf %767 : vector<2x32xf32>
    %769 = math.exp %768 : vector<2x32xf32>
    %cst_161 = arith.constant 1.000000e+00 : f32
    %770 = vector.broadcast %cst_161 : f32 to vector<2x32xf32>
    %771 = arith.addf %770, %769 : vector<2x32xf32>
    %772 = arith.divf %770, %771 : vector<2x32xf32>
    %773 = vector.extract_strided_slice %753 {offsets = [0, 64], sizes = [2, 32], strides = [1, 1]} : vector<2x96xf32> to vector<2x32xf32>
    %774 = vector.extract_strided_slice %756 {offsets = [0, 64], sizes = [2, 32], strides = [1, 1]} : vector<2x96xf32> to vector<2x32xf32>
    %775 = arith.mulf %764, %774 : vector<2x32xf32>
    %776 = arith.addf %773, %775 : vector<2x32xf32>
    %777 = math.tanh %776 : vector<2x32xf32>
    %cst_162 = arith.constant 1.000000e+00 : f32
    %778 = vector.broadcast %cst_162 : f32 to vector<2x32xf32>
    %779 = arith.subf %778, %772 : vector<2x32xf32>
    %780 = arith.mulf %779, %777 : vector<2x32xf32>
    %781 = arith.mulf %772, %700 : vector<2x32xf32>
    %782 = arith.addf %780, %781 : vector<2x32xf32>
    %cst_163 = arith.constant dense<0.000000e+00> : vector<2x24xf32>
    %783 = tpu.matmul %782, %13, %cst_163 {dimension_numbers = #tpu.dot_dimension_numbers<[1], [0], [0], [1], [0, 0, 1, 1], [], []>} : vector<2x32xf32>, vector<32x24xf32>, vector<2x24xf32> -> vector<2x24xf32>
    %784 = vector.broadcast %14 : vector<1x24xf32> to vector<2x24xf32>
    %785 = arith.addf %783, %784 : vector<2x24xf32>
    %786 = vector.extract_strided_slice %785 {offsets = [0, 0], sizes = [2, 8], strides = [1, 1]} : vector<2x24xf32> to vector<2x8xf32>
    %787 = vector.extract_strided_slice %785 {offsets = [0, 8], sizes = [2, 16], strides = [1, 1]} : vector<2x24xf32> to vector<2x16xf32>
    %788 = tpu.concatenate %710, %782, %744, %748, %752, %786, %787, %545 in 1 : vector<2x16xf32>, vector<2x32xf32>, vector<2x16xf32>, vector<2x4xf32>, vector<2x4xf32>, vector<2x8xf32>, vector<2x16xf32>, vector<2x32xf32> -> vector<2x128xf32>
    %c2 = arith.constant 2 : index
    %c0_164 = arith.constant 0 : index
    %c0_165 = arith.constant 0 : index
    %789 = vector.load %arg24[%c2, %c0_164, %c0_165] : memref<8x2x128xf32, #tpu.memory_space<vmem>>, vector<1x2x128xf32>
    %790 = vector.shape_cast %789 : vector<1x2x128xf32> to vector<2x128xf32>
    %791 = vector.shape_cast %788 : vector<2x128xf32> to vector<1x2x128xf32>
    tpu.vector_store %arg24[%c2, %c0_164, %c0_165], %791 {strides = array<i32>} : memref<8x2x128xf32, #tpu.memory_space<vmem>>, vector<1x2x128xf32>,
    %792 = tpu.concatenate %274, %337 in 1 : vector<2x8xf32>, vector<2x8xf32> -> vector<2x16xf32>
    %cst_166 = arith.constant dense<0.000000e+00> : vector<2x48xf32>
    %793 = tpu.matmul %792, %4, %cst_166 {dimension_numbers = #tpu.dot_dimension_numbers<[1], [0], [0], [1], [0, 0, 1, 1], [], []>} : vector<2x16xf32>, vector<16x48xf32>, vector<2x48xf32> -> vector<2x48xf32>
    %cst_167 = arith.constant dense<0.000000e+00> : vector<2x48xf32>
    %794 = tpu.matmul %786, %5, %cst_167 {dimension_numbers = #tpu.dot_dimension_numbers<[1], [0], [0], [1], [0, 0, 1, 1], [], []>} : vector<2x8xf32>, vector<8x48xf32>, vector<2x48xf32> -> vector<2x48xf32>
    %795 = arith.addf %793, %794 : vector<2x48xf32>
    %796 = vector.broadcast %7 : vector<1x48xf32> to vector<2x48xf32>
    %797 = arith.addf %795, %796 : vector<2x48xf32>
    %cst_168 = arith.constant dense<0.000000e+00> : vector<2x48xf32>
    %798 = tpu.matmul %744, %6, %cst_168 {dimension_numbers = #tpu.dot_dimension_numbers<[1], [0], [0], [1], [0, 0, 1, 1], [], []>} : vector<2x16xf32>, vector<16x48xf32>, vector<2x48xf32> -> vector<2x48xf32>
    %799 = vector.broadcast %8 : vector<1x48xf32> to vector<2x48xf32>
    %800 = arith.addf %798, %799 : vector<2x48xf32>
    %801 = vector.extract_strided_slice %797 {offsets = [0, 0], sizes = [2, 16], strides = [1, 1]} : vector<2x48xf32> to vector<2x16xf32>
    %802 = vector.extract_strided_slice %800 {offsets = [0, 0], sizes = [2, 16], strides = [1, 1]} : vector<2x48xf32> to vector<2x16xf32>
    %803 = arith.addf %801, %802 : vector<2x16xf32>
    %804 = arith.negf %803 : vector<2x16xf32>
    %805 = math.exp %804 : vector<2x16xf32>
    %cst_169 = arith.constant 1.000000e+00 : f32
    %806 = vector.broadcast %cst_169 : f32 to vector<2x16xf32>
    %807 = arith.addf %806, %805 : vector<2x16xf32>
    %808 = arith.divf %806, %807 : vector<2x16xf32>
    %809 = vector.extract_strided_slice %797 {offsets = [0, 16], sizes = [2, 16], strides = [1, 1]} : vector<2x48xf32> to vector<2x16xf32>
    %810 = vector.extract_strided_slice %800 {offsets = [0, 16], sizes = [2, 16], strides = [1, 1]} : vector<2x48xf32> to vector<2x16xf32>
    %811 = arith.addf %809, %810 : vector<2x16xf32>
    %812 = arith.negf %811 : vector<2x16xf32>
    %813 = math.exp %812 : vector<2x16xf32>
    %cst_170 = arith.constant 1.000000e+00 : f32
    %814 = vector.broadcast %cst_170 : f32 to vector<2x16xf32>
    %815 = arith.addf %814, %813 : vector<2x16xf32>
    %816 = arith.divf %814, %815 : vector<2x16xf32>
    %817 = vector.extract_strided_slice %797 {offsets = [0, 32], sizes = [2, 16], strides = [1, 1]} : vector<2x48xf32> to vector<2x16xf32>
    %818 = vector.extract_strided_slice %800 {offsets = [0, 32], sizes = [2, 16], strides = [1, 1]} : vector<2x48xf32> to vector<2x16xf32>
    %819 = arith.mulf %808, %818 : vector<2x16xf32>
    %820 = arith.addf %817, %819 : vector<2x16xf32>
    %821 = math.tanh %820 : vector<2x16xf32>
    %cst_171 = arith.constant 1.000000e+00 : f32
    %822 = vector.broadcast %cst_171 : f32 to vector<2x16xf32>
    %823 = arith.subf %822, %816 : vector<2x16xf32>
    %824 = arith.mulf %823, %821 : vector<2x16xf32>
    %825 = arith.mulf %816, %744 : vector<2x16xf32>
    %826 = arith.addf %824, %825 : vector<2x16xf32>
    %cst_172 = arith.constant dense<0.000000e+00> : vector<2x104xf32>
    %827 = tpu.matmul %826, %9, %cst_172 {dimension_numbers = #tpu.dot_dimension_numbers<[1], [0], [0], [1], [0, 0, 1, 1], [], []>} : vector<2x16xf32>, vector<16x104xf32>, vector<2x104xf32> -> vector<2x104xf32>
    %828 = vector.broadcast %10 : vector<1x104xf32> to vector<2x104xf32>
    %829 = arith.addf %827, %828 : vector<2x104xf32>
    %830 = vector.extract_strided_slice %829 {offsets = [0, 0], sizes = [2, 4], strides = [1, 1]} : vector<2x104xf32> to vector<2x4xf32>
    %831 = vector.extract_strided_slice %829 {offsets = [0, 4], sizes = [2, 4], strides = [1, 1]} : vector<2x104xf32> to vector<2x4xf32>
    %cst_173 = arith.constant 5.000000e-01 : f32
    %832 = vector.broadcast %cst_173 : f32 to vector<2x4xf32>
    %833 = arith.mulf %832, %831 : vector<2x4xf32>
    %834 = math.exp %833 : vector<2x4xf32>
    %835 = vector.extract_strided_slice %829 {offsets = [0, 8], sizes = [2, 96], strides = [1, 1]} : vector<2x104xf32> to vector<2x96xf32>
    %cst_174 = arith.constant dense<0.000000e+00> : vector<2x96xf32>
    %836 = tpu.matmul %782, %11, %cst_174 {dimension_numbers = #tpu.dot_dimension_numbers<[1], [0], [0], [1], [0, 0, 1, 1], [], []>} : vector<2x32xf32>, vector<32x96xf32>, vector<2x96xf32> -> vector<2x96xf32>
    %837 = vector.broadcast %12 : vector<1x96xf32> to vector<2x96xf32>
    %838 = arith.addf %836, %837 : vector<2x96xf32>
    %839 = vector.extract_strided_slice %835 {offsets = [0, 0], sizes = [2, 32], strides = [1, 1]} : vector<2x96xf32> to vector<2x32xf32>
    %840 = vector.extract_strided_slice %838 {offsets = [0, 0], sizes = [2, 32], strides = [1, 1]} : vector<2x96xf32> to vector<2x32xf32>
    %841 = arith.addf %839, %840 : vector<2x32xf32>
    %842 = arith.negf %841 : vector<2x32xf32>
    %843 = math.exp %842 : vector<2x32xf32>
    %cst_175 = arith.constant 1.000000e+00 : f32
    %844 = vector.broadcast %cst_175 : f32 to vector<2x32xf32>
    %845 = arith.addf %844, %843 : vector<2x32xf32>
    %846 = arith.divf %844, %845 : vector<2x32xf32>
    %847 = vector.extract_strided_slice %835 {offsets = [0, 32], sizes = [2, 32], strides = [1, 1]} : vector<2x96xf32> to vector<2x32xf32>
    %848 = vector.extract_strided_slice %838 {offsets = [0, 32], sizes = [2, 32], strides = [1, 1]} : vector<2x96xf32> to vector<2x32xf32>
    %849 = arith.addf %847, %848 : vector<2x32xf32>
    %850 = arith.negf %849 : vector<2x32xf32>
    %851 = math.exp %850 : vector<2x32xf32>
    %cst_176 = arith.constant 1.000000e+00 : f32
    %852 = vector.broadcast %cst_176 : f32 to vector<2x32xf32>
    %853 = arith.addf %852, %851 : vector<2x32xf32>
    %854 = arith.divf %852, %853 : vector<2x32xf32>
    %855 = vector.extract_strided_slice %835 {offsets = [0, 64], sizes = [2, 32], strides = [1, 1]} : vector<2x96xf32> to vector<2x32xf32>
    %856 = vector.extract_strided_slice %838 {offsets = [0, 64], sizes = [2, 32], strides = [1, 1]} : vector<2x96xf32> to vector<2x32xf32>
    %857 = arith.mulf %846, %856 : vector<2x32xf32>
    %858 = arith.addf %855, %857 : vector<2x32xf32>
    %859 = math.tanh %858 : vector<2x32xf32>
    %cst_177 = arith.constant 1.000000e+00 : f32
    %860 = vector.broadcast %cst_177 : f32 to vector<2x32xf32>
    %861 = arith.subf %860, %854 : vector<2x32xf32>
    %862 = arith.mulf %861, %859 : vector<2x32xf32>
    %863 = arith.mulf %854, %782 : vector<2x32xf32>
    %864 = arith.addf %862, %863 : vector<2x32xf32>
    %cst_178 = arith.constant dense<0.000000e+00> : vector<2x24xf32>
    %865 = tpu.matmul %864, %13, %cst_178 {dimension_numbers = #tpu.dot_dimension_numbers<[1], [0], [0], [1], [0, 0, 1, 1], [], []>} : vector<2x32xf32>, vector<32x24xf32>, vector<2x24xf32> -> vector<2x24xf32>
    %866 = vector.broadcast %14 : vector<1x24xf32> to vector<2x24xf32>
    %867 = arith.addf %865, %866 : vector<2x24xf32>
    %868 = vector.extract_strided_slice %867 {offsets = [0, 0], sizes = [2, 8], strides = [1, 1]} : vector<2x24xf32> to vector<2x8xf32>
    %869 = vector.extract_strided_slice %867 {offsets = [0, 8], sizes = [2, 16], strides = [1, 1]} : vector<2x24xf32> to vector<2x16xf32>
    %870 = tpu.concatenate %792, %864, %826, %830, %834, %868, %869, %545 in 1 : vector<2x16xf32>, vector<2x32xf32>, vector<2x16xf32>, vector<2x4xf32>, vector<2x4xf32>, vector<2x8xf32>, vector<2x16xf32>, vector<2x32xf32> -> vector<2x128xf32>
    %c3 = arith.constant 3 : index
    %c0_179 = arith.constant 0 : index
    %c0_180 = arith.constant 0 : index
    %871 = vector.load %arg24[%c3, %c0_179, %c0_180] : memref<8x2x128xf32, #tpu.memory_space<vmem>>, vector<1x2x128xf32>
    %872 = vector.shape_cast %871 : vector<1x2x128xf32> to vector<2x128xf32>
    %873 = vector.shape_cast %870 : vector<2x128xf32> to vector<1x2x128xf32>
    tpu.vector_store %arg24[%c3, %c0_179, %c0_180], %873 {strides = array<i32>} : memref<8x2x128xf32, #tpu.memory_space<vmem>>, vector<1x2x128xf32>,
    %874 = tpu.concatenate %336, %275 in 1 : vector<2x8xf32>, vector<2x8xf32> -> vector<2x16xf32>
    %cst_181 = arith.constant dense<0.000000e+00> : vector<2x48xf32>
    %875 = tpu.matmul %874, %4, %cst_181 {dimension_numbers = #tpu.dot_dimension_numbers<[1], [0], [0], [1], [0, 0, 1, 1], [], []>} : vector<2x16xf32>, vector<16x48xf32>, vector<2x48xf32> -> vector<2x48xf32>
    %cst_182 = arith.constant dense<0.000000e+00> : vector<2x48xf32>
    %876 = tpu.matmul %868, %5, %cst_182 {dimension_numbers = #tpu.dot_dimension_numbers<[1], [0], [0], [1], [0, 0, 1, 1], [], []>} : vector<2x8xf32>, vector<8x48xf32>, vector<2x48xf32> -> vector<2x48xf32>
    %877 = arith.addf %875, %876 : vector<2x48xf32>
    %878 = vector.broadcast %7 : vector<1x48xf32> to vector<2x48xf32>
    %879 = arith.addf %877, %878 : vector<2x48xf32>
    %cst_183 = arith.constant dense<0.000000e+00> : vector<2x48xf32>
    %880 = tpu.matmul %826, %6, %cst_183 {dimension_numbers = #tpu.dot_dimension_numbers<[1], [0], [0], [1], [0, 0, 1, 1], [], []>} : vector<2x16xf32>, vector<16x48xf32>, vector<2x48xf32> -> vector<2x48xf32>
    %881 = vector.broadcast %8 : vector<1x48xf32> to vector<2x48xf32>
    %882 = arith.addf %880, %881 : vector<2x48xf32>
    %883 = vector.extract_strided_slice %879 {offsets = [0, 0], sizes = [2, 16], strides = [1, 1]} : vector<2x48xf32> to vector<2x16xf32>
    %884 = vector.extract_strided_slice %882 {offsets = [0, 0], sizes = [2, 16], strides = [1, 1]} : vector<2x48xf32> to vector<2x16xf32>
    %885 = arith.addf %883, %884 : vector<2x16xf32>
    %886 = arith.negf %885 : vector<2x16xf32>
    %887 = math.exp %886 : vector<2x16xf32>
    %cst_184 = arith.constant 1.000000e+00 : f32
    %888 = vector.broadcast %cst_184 : f32 to vector<2x16xf32>
    %889 = arith.addf %888, %887 : vector<2x16xf32>
    %890 = arith.divf %888, %889 : vector<2x16xf32>
    %891 = vector.extract_strided_slice %879 {offsets = [0, 16], sizes = [2, 16], strides = [1, 1]} : vector<2x48xf32> to vector<2x16xf32>
    %892 = vector.extract_strided_slice %882 {offsets = [0, 16], sizes = [2, 16], strides = [1, 1]} : vector<2x48xf32> to vector<2x16xf32>
    %893 = arith.addf %891, %892 : vector<2x16xf32>
    %894 = arith.negf %893 : vector<2x16xf32>
    %895 = math.exp %894 : vector<2x16xf32>
    %cst_185 = arith.constant 1.000000e+00 : f32
    %896 = vector.broadcast %cst_185 : f32 to vector<2x16xf32>
    %897 = arith.addf %896, %895 : vector<2x16xf32>
    %898 = arith.divf %896, %897 : vector<2x16xf32>
    %899 = vector.extract_strided_slice %879 {offsets = [0, 32], sizes = [2, 16], strides = [1, 1]} : vector<2x48xf32> to vector<2x16xf32>
    %900 = vector.extract_strided_slice %882 {offsets = [0, 32], sizes = [2, 16], strides = [1, 1]} : vector<2x48xf32> to vector<2x16xf32>
    %901 = arith.mulf %890, %900 : vector<2x16xf32>
    %902 = arith.addf %899, %901 : vector<2x16xf32>
    %903 = math.tanh %902 : vector<2x16xf32>
    %cst_186 = arith.constant 1.000000e+00 : f32
    %904 = vector.broadcast %cst_186 : f32 to vector<2x16xf32>
    %905 = arith.subf %904, %898 : vector<2x16xf32>
    %906 = arith.mulf %905, %903 : vector<2x16xf32>
    %907 = arith.mulf %898, %826 : vector<2x16xf32>
    %908 = arith.addf %906, %907 : vector<2x16xf32>
    %cst_187 = arith.constant dense<0.000000e+00> : vector<2x104xf32>
    %909 = tpu.matmul %908, %9, %cst_187 {dimension_numbers = #tpu.dot_dimension_numbers<[1], [0], [0], [1], [0, 0, 1, 1], [], []>} : vector<2x16xf32>, vector<16x104xf32>, vector<2x104xf32> -> vector<2x104xf32>
    %910 = vector.broadcast %10 : vector<1x104xf32> to vector<2x104xf32>
    %911 = arith.addf %909, %910 : vector<2x104xf32>
    %912 = vector.extract_strided_slice %911 {offsets = [0, 0], sizes = [2, 4], strides = [1, 1]} : vector<2x104xf32> to vector<2x4xf32>
    %913 = vector.extract_strided_slice %911 {offsets = [0, 4], sizes = [2, 4], strides = [1, 1]} : vector<2x104xf32> to vector<2x4xf32>
    %cst_188 = arith.constant 5.000000e-01 : f32
    %914 = vector.broadcast %cst_188 : f32 to vector<2x4xf32>
    %915 = arith.mulf %914, %913 : vector<2x4xf32>
    %916 = math.exp %915 : vector<2x4xf32>
    %917 = vector.extract_strided_slice %911 {offsets = [0, 8], sizes = [2, 96], strides = [1, 1]} : vector<2x104xf32> to vector<2x96xf32>
    %cst_189 = arith.constant dense<0.000000e+00> : vector<2x96xf32>
    %918 = tpu.matmul %864, %11, %cst_189 {dimension_numbers = #tpu.dot_dimension_numbers<[1], [0], [0], [1], [0, 0, 1, 1], [], []>} : vector<2x32xf32>, vector<32x96xf32>, vector<2x96xf32> -> vector<2x96xf32>
    %919 = vector.broadcast %12 : vector<1x96xf32> to vector<2x96xf32>
    %920 = arith.addf %918, %919 : vector<2x96xf32>
    %921 = vector.extract_strided_slice %917 {offsets = [0, 0], sizes = [2, 32], strides = [1, 1]} : vector<2x96xf32> to vector<2x32xf32>
    %922 = vector.extract_strided_slice %920 {offsets = [0, 0], sizes = [2, 32], strides = [1, 1]} : vector<2x96xf32> to vector<2x32xf32>
    %923 = arith.addf %921, %922 : vector<2x32xf32>
    %924 = arith.negf %923 : vector<2x32xf32>
    %925 = math.exp %924 : vector<2x32xf32>
    %cst_190 = arith.constant 1.000000e+00 : f32
    %926 = vector.broadcast %cst_190 : f32 to vector<2x32xf32>
    %927 = arith.addf %926, %925 : vector<2x32xf32>
    %928 = arith.divf %926, %927 : vector<2x32xf32>
    %929 = vector.extract_strided_slice %917 {offsets = [0, 32], sizes = [2, 32], strides = [1, 1]} : vector<2x96xf32> to vector<2x32xf32>
    %930 = vector.extract_strided_slice %920 {offsets = [0, 32], sizes = [2, 32], strides = [1, 1]} : vector<2x96xf32> to vector<2x32xf32>
    %931 = arith.addf %929, %930 : vector<2x32xf32>
    %932 = arith.negf %931 : vector<2x32xf32>
    %933 = math.exp %932 : vector<2x32xf32>
    %cst_191 = arith.constant 1.000000e+00 : f32
    %934 = vector.broadcast %cst_191 : f32 to vector<2x32xf32>
    %935 = arith.addf %934, %933 : vector<2x32xf32>
    %936 = arith.divf %934, %935 : vector<2x32xf32>
    %937 = vector.extract_strided_slice %917 {offsets = [0, 64], sizes = [2, 32], strides = [1, 1]} : vector<2x96xf32> to vector<2x32xf32>
    %938 = vector.extract_strided_slice %920 {offsets = [0, 64], sizes = [2, 32], strides = [1, 1]} : vector<2x96xf32> to vector<2x32xf32>
    %939 = arith.mulf %928, %938 : vector<2x32xf32>
    %940 = arith.addf %937, %939 : vector<2x32xf32>
    %941 = math.tanh %940 : vector<2x32xf32>
    %cst_192 = arith.constant 1.000000e+00 : f32
    %942 = vector.broadcast %cst_192 : f32 to vector<2x32xf32>
    %943 = arith.subf %942, %936 : vector<2x32xf32>
    %944 = arith.mulf %943, %941 : vector<2x32xf32>
    %945 = arith.mulf %936, %864 : vector<2x32xf32>
    %946 = arith.addf %944, %945 : vector<2x32xf32>
    %cst_193 = arith.constant dense<0.000000e+00> : vector<2x24xf32>
    %947 = tpu.matmul %946, %13, %cst_193 {dimension_numbers = #tpu.dot_dimension_numbers<[1], [0], [0], [1], [0, 0, 1, 1], [], []>} : vector<2x32xf32>, vector<32x24xf32>, vector<2x24xf32> -> vector<2x24xf32>
    %948 = vector.broadcast %14 : vector<1x24xf32> to vector<2x24xf32>
    %949 = arith.addf %947, %948 : vector<2x24xf32>
    %950 = vector.extract_strided_slice %949 {offsets = [0, 0], sizes = [2, 8], strides = [1, 1]} : vector<2x24xf32> to vector<2x8xf32>
    %951 = vector.extract_strided_slice %949 {offsets = [0, 8], sizes = [2, 16], strides = [1, 1]} : vector<2x24xf32> to vector<2x16xf32>
    %952 = tpu.concatenate %874, %946, %908, %912, %916, %950, %951, %545 in 1 : vector<2x16xf32>, vector<2x32xf32>, vector<2x16xf32>, vector<2x4xf32>, vector<2x4xf32>, vector<2x8xf32>, vector<2x16xf32>, vector<2x32xf32> -> vector<2x128xf32>
    %c4 = arith.constant 4 : index
    %c0_194 = arith.constant 0 : index
    %c0_195 = arith.constant 0 : index
    %953 = vector.load %arg24[%c4, %c0_194, %c0_195] : memref<8x2x128xf32, #tpu.memory_space<vmem>>, vector<1x2x128xf32>
    %954 = vector.shape_cast %953 : vector<1x2x128xf32> to vector<2x128xf32>
    %955 = vector.shape_cast %952 : vector<2x128xf32> to vector<1x2x128xf32>
    tpu.vector_store %arg24[%c4, %c0_194, %c0_195], %955 {strides = array<i32>} : memref<8x2x128xf32, #tpu.memory_space<vmem>>, vector<1x2x128xf32>,
    %956 = tpu.concatenate %398, %213 in 1 : vector<2x8xf32>, vector<2x8xf32> -> vector<2x16xf32>
    %cst_196 = arith.constant dense<0.000000e+00> : vector<2x48xf32>
    %957 = tpu.matmul %956, %4, %cst_196 {dimension_numbers = #tpu.dot_dimension_numbers<[1], [0], [0], [1], [0, 0, 1, 1], [], []>} : vector<2x16xf32>, vector<16x48xf32>, vector<2x48xf32> -> vector<2x48xf32>
    %cst_197 = arith.constant dense<0.000000e+00> : vector<2x48xf32>
    %958 = tpu.matmul %950, %5, %cst_197 {dimension_numbers = #tpu.dot_dimension_numbers<[1], [0], [0], [1], [0, 0, 1, 1], [], []>} : vector<2x8xf32>, vector<8x48xf32>, vector<2x48xf32> -> vector<2x48xf32>
    %959 = arith.addf %957, %958 : vector<2x48xf32>
    %960 = vector.broadcast %7 : vector<1x48xf32> to vector<2x48xf32>
    %961 = arith.addf %959, %960 : vector<2x48xf32>
    %cst_198 = arith.constant dense<0.000000e+00> : vector<2x48xf32>
    %962 = tpu.matmul %908, %6, %cst_198 {dimension_numbers = #tpu.dot_dimension_numbers<[1], [0], [0], [1], [0, 0, 1, 1], [], []>} : vector<2x16xf32>, vector<16x48xf32>, vector<2x48xf32> -> vector<2x48xf32>
    %963 = vector.broadcast %8 : vector<1x48xf32> to vector<2x48xf32>
    %964 = arith.addf %962, %963 : vector<2x48xf32>
    %965 = vector.extract_strided_slice %961 {offsets = [0, 0], sizes = [2, 16], strides = [1, 1]} : vector<2x48xf32> to vector<2x16xf32>
    %966 = vector.extract_strided_slice %964 {offsets = [0, 0], sizes = [2, 16], strides = [1, 1]} : vector<2x48xf32> to vector<2x16xf32>
    %967 = arith.addf %965, %966 : vector<2x16xf32>
    %968 = arith.negf %967 : vector<2x16xf32>
    %969 = math.exp %968 : vector<2x16xf32>
    %cst_199 = arith.constant 1.000000e+00 : f32
    %970 = vector.broadcast %cst_199 : f32 to vector<2x16xf32>
    %971 = arith.addf %970, %969 : vector<2x16xf32>
    %972 = arith.divf %970, %971 : vector<2x16xf32>
    %973 = vector.extract_strided_slice %961 {offsets = [0, 16], sizes = [2, 16], strides = [1, 1]} : vector<2x48xf32> to vector<2x16xf32>
    %974 = vector.extract_strided_slice %964 {offsets = [0, 16], sizes = [2, 16], strides = [1, 1]} : vector<2x48xf32> to vector<2x16xf32>
    %975 = arith.addf %973, %974 : vector<2x16xf32>
    %976 = arith.negf %975 : vector<2x16xf32>
    %977 = math.exp %976 : vector<2x16xf32>
    %cst_200 = arith.constant 1.000000e+00 : f32
    %978 = vector.broadcast %cst_200 : f32 to vector<2x16xf32>
    %979 = arith.addf %978, %977 : vector<2x16xf32>
    %980 = arith.divf %978, %979 : vector<2x16xf32>
    %981 = vector.extract_strided_slice %961 {offsets = [0, 32], sizes = [2, 16], strides = [1, 1]} : vector<2x48xf32> to vector<2x16xf32>
    %982 = vector.extract_strided_slice %964 {offsets = [0, 32], sizes = [2, 16], strides = [1, 1]} : vector<2x48xf32> to vector<2x16xf32>
    %983 = arith.mulf %972, %982 : vector<2x16xf32>
    %984 = arith.addf %981, %983 : vector<2x16xf32>
    %985 = math.tanh %984 : vector<2x16xf32>
    %cst_201 = arith.constant 1.000000e+00 : f32
    %986 = vector.broadcast %cst_201 : f32 to vector<2x16xf32>
    %987 = arith.subf %986, %980 : vector<2x16xf32>
    %988 = arith.mulf %987, %985 : vector<2x16xf32>
    %989 = arith.mulf %980, %908 : vector<2x16xf32>
    %990 = arith.addf %988, %989 : vector<2x16xf32>
    %cst_202 = arith.constant dense<0.000000e+00> : vector<2x104xf32>
    %991 = tpu.matmul %990, %9, %cst_202 {dimension_numbers = #tpu.dot_dimension_numbers<[1], [0], [0], [1], [0, 0, 1, 1], [], []>} : vector<2x16xf32>, vector<16x104xf32>, vector<2x104xf32> -> vector<2x104xf32>
    %992 = vector.broadcast %10 : vector<1x104xf32> to vector<2x104xf32>
    %993 = arith.addf %991, %992 : vector<2x104xf32>
    %994 = vector.extract_strided_slice %993 {offsets = [0, 0], sizes = [2, 4], strides = [1, 1]} : vector<2x104xf32> to vector<2x4xf32>
    %995 = vector.extract_strided_slice %993 {offsets = [0, 4], sizes = [2, 4], strides = [1, 1]} : vector<2x104xf32> to vector<2x4xf32>
    %cst_203 = arith.constant 5.000000e-01 : f32
    %996 = vector.broadcast %cst_203 : f32 to vector<2x4xf32>
    %997 = arith.mulf %996, %995 : vector<2x4xf32>
    %998 = math.exp %997 : vector<2x4xf32>
    %999 = vector.extract_strided_slice %993 {offsets = [0, 8], sizes = [2, 96], strides = [1, 1]} : vector<2x104xf32> to vector<2x96xf32>
    %cst_204 = arith.constant dense<0.000000e+00> : vector<2x96xf32>
    %1000 = tpu.matmul %946, %11, %cst_204 {dimension_numbers = #tpu.dot_dimension_numbers<[1], [0], [0], [1], [0, 0, 1, 1], [], []>} : vector<2x32xf32>, vector<32x96xf32>, vector<2x96xf32> -> vector<2x96xf32>
    %1001 = vector.broadcast %12 : vector<1x96xf32> to vector<2x96xf32>
    %1002 = arith.addf %1000, %1001 : vector<2x96xf32>
    %1003 = vector.extract_strided_slice %999 {offsets = [0, 0], sizes = [2, 32], strides = [1, 1]} : vector<2x96xf32> to vector<2x32xf32>
    %1004 = vector.extract_strided_slice %1002 {offsets = [0, 0], sizes = [2, 32], strides = [1, 1]} : vector<2x96xf32> to vector<2x32xf32>
    %1005 = arith.addf %1003, %1004 : vector<2x32xf32>
    %1006 = arith.negf %1005 : vector<2x32xf32>
    %1007 = math.exp %1006 : vector<2x32xf32>
    %cst_205 = arith.constant 1.000000e+00 : f32
    %1008 = vector.broadcast %cst_205 : f32 to vector<2x32xf32>
    %1009 = arith.addf %1008, %1007 : vector<2x32xf32>
    %1010 = arith.divf %1008, %1009 : vector<2x32xf32>
    %1011 = vector.extract_strided_slice %999 {offsets = [0, 32], sizes = [2, 32], strides = [1, 1]} : vector<2x96xf32> to vector<2x32xf32>
    %1012 = vector.extract_strided_slice %1002 {offsets = [0, 32], sizes = [2, 32], strides = [1, 1]} : vector<2x96xf32> to vector<2x32xf32>
    %1013 = arith.addf %1011, %1012 : vector<2x32xf32>
    %1014 = arith.negf %1013 : vector<2x32xf32>
    %1015 = math.exp %1014 : vector<2x32xf32>
    %cst_206 = arith.constant 1.000000e+00 : f32
    %1016 = vector.broadcast %cst_206 : f32 to vector<2x32xf32>
    %1017 = arith.addf %1016, %1015 : vector<2x32xf32>
    %1018 = arith.divf %1016, %1017 : vector<2x32xf32>
    %1019 = vector.extract_strided_slice %999 {offsets = [0, 64], sizes = [2, 32], strides = [1, 1]} : vector<2x96xf32> to vector<2x32xf32>
    %1020 = vector.extract_strided_slice %1002 {offsets = [0, 64], sizes = [2, 32], strides = [1, 1]} : vector<2x96xf32> to vector<2x32xf32>
    %1021 = arith.mulf %1010, %1020 : vector<2x32xf32>
    %1022 = arith.addf %1019, %1021 : vector<2x32xf32>
    %1023 = math.tanh %1022 : vector<2x32xf32>
    %cst_207 = arith.constant 1.000000e+00 : f32
    %1024 = vector.broadcast %cst_207 : f32 to vector<2x32xf32>
    %1025 = arith.subf %1024, %1018 : vector<2x32xf32>
    %1026 = arith.mulf %1025, %1023 : vector<2x32xf32>
    %1027 = arith.mulf %1018, %946 : vector<2x32xf32>
    %1028 = arith.addf %1026, %1027 : vector<2x32xf32>
    %cst_208 = arith.constant dense<0.000000e+00> : vector<2x24xf32>
    %1029 = tpu.matmul %1028, %13, %cst_208 {dimension_numbers = #tpu.dot_dimension_numbers<[1], [0], [0], [1], [0, 0, 1, 1], [], []>} : vector<2x32xf32>, vector<32x24xf32>, vector<2x24xf32> -> vector<2x24xf32>
    %1030 = vector.broadcast %14 : vector<1x24xf32> to vector<2x24xf32>
    %1031 = arith.addf %1029, %1030 : vector<2x24xf32>
    %1032 = vector.extract_strided_slice %1031 {offsets = [0, 0], sizes = [2, 8], strides = [1, 1]} : vector<2x24xf32> to vector<2x8xf32>
    %1033 = vector.extract_strided_slice %1031 {offsets = [0, 8], sizes = [2, 16], strides = [1, 1]} : vector<2x24xf32> to vector<2x16xf32>
    %1034 = tpu.concatenate %956, %1028, %990, %994, %998, %1032, %1033, %545 in 1 : vector<2x16xf32>, vector<2x32xf32>, vector<2x16xf32>, vector<2x4xf32>, vector<2x4xf32>, vector<2x8xf32>, vector<2x16xf32>, vector<2x32xf32> -> vector<2x128xf32>
    %c5 = arith.constant 5 : index
    %c0_209 = arith.constant 0 : index
    %c0_210 = arith.constant 0 : index
    %1035 = vector.load %arg24[%c5, %c0_209, %c0_210] : memref<8x2x128xf32, #tpu.memory_space<vmem>>, vector<1x2x128xf32>
    %1036 = vector.shape_cast %1035 : vector<1x2x128xf32> to vector<2x128xf32>
    %1037 = vector.shape_cast %1034 : vector<2x128xf32> to vector<1x2x128xf32>
    tpu.vector_store %arg24[%c5, %c0_209, %c0_210], %1037 {strides = array<i32>} : memref<8x2x128xf32, #tpu.memory_space<vmem>>, vector<1x2x128xf32>,
    %1038 = tpu.concatenate %460, %151 in 1 : vector<2x8xf32>, vector<2x8xf32> -> vector<2x16xf32>
    %cst_211 = arith.constant dense<0.000000e+00> : vector<2x48xf32>
    %1039 = tpu.matmul %1038, %4, %cst_211 {dimension_numbers = #tpu.dot_dimension_numbers<[1], [0], [0], [1], [0, 0, 1, 1], [], []>} : vector<2x16xf32>, vector<16x48xf32>, vector<2x48xf32> -> vector<2x48xf32>
    %cst_212 = arith.constant dense<0.000000e+00> : vector<2x48xf32>
    %1040 = tpu.matmul %1032, %5, %cst_212 {dimension_numbers = #tpu.dot_dimension_numbers<[1], [0], [0], [1], [0, 0, 1, 1], [], []>} : vector<2x8xf32>, vector<8x48xf32>, vector<2x48xf32> -> vector<2x48xf32>
    %1041 = arith.addf %1039, %1040 : vector<2x48xf32>
    %1042 = vector.broadcast %7 : vector<1x48xf32> to vector<2x48xf32>
    %1043 = arith.addf %1041, %1042 : vector<2x48xf32>
    %cst_213 = arith.constant dense<0.000000e+00> : vector<2x48xf32>
    %1044 = tpu.matmul %990, %6, %cst_213 {dimension_numbers = #tpu.dot_dimension_numbers<[1], [0], [0], [1], [0, 0, 1, 1], [], []>} : vector<2x16xf32>, vector<16x48xf32>, vector<2x48xf32> -> vector<2x48xf32>
    %1045 = vector.broadcast %8 : vector<1x48xf32> to vector<2x48xf32>
    %1046 = arith.addf %1044, %1045 : vector<2x48xf32>
    %1047 = vector.extract_strided_slice %1043 {offsets = [0, 0], sizes = [2, 16], strides = [1, 1]} : vector<2x48xf32> to vector<2x16xf32>
    %1048 = vector.extract_strided_slice %1046 {offsets = [0, 0], sizes = [2, 16], strides = [1, 1]} : vector<2x48xf32> to vector<2x16xf32>
    %1049 = arith.addf %1047, %1048 : vector<2x16xf32>
    %1050 = arith.negf %1049 : vector<2x16xf32>
    %1051 = math.exp %1050 : vector<2x16xf32>
    %cst_214 = arith.constant 1.000000e+00 : f32
    %1052 = vector.broadcast %cst_214 : f32 to vector<2x16xf32>
    %1053 = arith.addf %1052, %1051 : vector<2x16xf32>
    %1054 = arith.divf %1052, %1053 : vector<2x16xf32>
    %1055 = vector.extract_strided_slice %1043 {offsets = [0, 16], sizes = [2, 16], strides = [1, 1]} : vector<2x48xf32> to vector<2x16xf32>
    %1056 = vector.extract_strided_slice %1046 {offsets = [0, 16], sizes = [2, 16], strides = [1, 1]} : vector<2x48xf32> to vector<2x16xf32>
    %1057 = arith.addf %1055, %1056 : vector<2x16xf32>
    %1058 = arith.negf %1057 : vector<2x16xf32>
    %1059 = math.exp %1058 : vector<2x16xf32>
    %cst_215 = arith.constant 1.000000e+00 : f32
    %1060 = vector.broadcast %cst_215 : f32 to vector<2x16xf32>
    %1061 = arith.addf %1060, %1059 : vector<2x16xf32>
    %1062 = arith.divf %1060, %1061 : vector<2x16xf32>
    %1063 = vector.extract_strided_slice %1043 {offsets = [0, 32], sizes = [2, 16], strides = [1, 1]} : vector<2x48xf32> to vector<2x16xf32>
    %1064 = vector.extract_strided_slice %1046 {offsets = [0, 32], sizes = [2, 16], strides = [1, 1]} : vector<2x48xf32> to vector<2x16xf32>
    %1065 = arith.mulf %1054, %1064 : vector<2x16xf32>
    %1066 = arith.addf %1063, %1065 : vector<2x16xf32>
    %1067 = math.tanh %1066 : vector<2x16xf32>
    %cst_216 = arith.constant 1.000000e+00 : f32
    %1068 = vector.broadcast %cst_216 : f32 to vector<2x16xf32>
    %1069 = arith.subf %1068, %1062 : vector<2x16xf32>
    %1070 = arith.mulf %1069, %1067 : vector<2x16xf32>
    %1071 = arith.mulf %1062, %990 : vector<2x16xf32>
    %1072 = arith.addf %1070, %1071 : vector<2x16xf32>
    %cst_217 = arith.constant dense<0.000000e+00> : vector<2x104xf32>
    %1073 = tpu.matmul %1072, %9, %cst_217 {dimension_numbers = #tpu.dot_dimension_numbers<[1], [0], [0], [1], [0, 0, 1, 1], [], []>} : vector<2x16xf32>, vector<16x104xf32>, vector<2x104xf32> -> vector<2x104xf32>
    %1074 = vector.broadcast %10 : vector<1x104xf32> to vector<2x104xf32>
    %1075 = arith.addf %1073, %1074 : vector<2x104xf32>
    %1076 = vector.extract_strided_slice %1075 {offsets = [0, 0], sizes = [2, 4], strides = [1, 1]} : vector<2x104xf32> to vector<2x4xf32>
    %1077 = vector.extract_strided_slice %1075 {offsets = [0, 4], sizes = [2, 4], strides = [1, 1]} : vector<2x104xf32> to vector<2x4xf32>
    %cst_218 = arith.constant 5.000000e-01 : f32
    %1078 = vector.broadcast %cst_218 : f32 to vector<2x4xf32>
    %1079 = arith.mulf %1078, %1077 : vector<2x4xf32>
    %1080 = math.exp %1079 : vector<2x4xf32>
    %1081 = vector.extract_strided_slice %1075 {offsets = [0, 8], sizes = [2, 96], strides = [1, 1]} : vector<2x104xf32> to vector<2x96xf32>
    %cst_219 = arith.constant dense<0.000000e+00> : vector<2x96xf32>
    %1082 = tpu.matmul %1028, %11, %cst_219 {dimension_numbers = #tpu.dot_dimension_numbers<[1], [0], [0], [1], [0, 0, 1, 1], [], []>} : vector<2x32xf32>, vector<32x96xf32>, vector<2x96xf32> -> vector<2x96xf32>
    %1083 = vector.broadcast %12 : vector<1x96xf32> to vector<2x96xf32>
    %1084 = arith.addf %1082, %1083 : vector<2x96xf32>
    %1085 = vector.extract_strided_slice %1081 {offsets = [0, 0], sizes = [2, 32], strides = [1, 1]} : vector<2x96xf32> to vector<2x32xf32>
    %1086 = vector.extract_strided_slice %1084 {offsets = [0, 0], sizes = [2, 32], strides = [1, 1]} : vector<2x96xf32> to vector<2x32xf32>
    %1087 = arith.addf %1085, %1086 : vector<2x32xf32>
    %1088 = arith.negf %1087 : vector<2x32xf32>
    %1089 = math.exp %1088 : vector<2x32xf32>
    %cst_220 = arith.constant 1.000000e+00 : f32
    %1090 = vector.broadcast %cst_220 : f32 to vector<2x32xf32>
    %1091 = arith.addf %1090, %1089 : vector<2x32xf32>
    %1092 = arith.divf %1090, %1091 : vector<2x32xf32>
    %1093 = vector.extract_strided_slice %1081 {offsets = [0, 32], sizes = [2, 32], strides = [1, 1]} : vector<2x96xf32> to vector<2x32xf32>
    %1094 = vector.extract_strided_slice %1084 {offsets = [0, 32], sizes = [2, 32], strides = [1, 1]} : vector<2x96xf32> to vector<2x32xf32>
    %1095 = arith.addf %1093, %1094 : vector<2x32xf32>
    %1096 = arith.negf %1095 : vector<2x32xf32>
    %1097 = math.exp %1096 : vector<2x32xf32>
    %cst_221 = arith.constant 1.000000e+00 : f32
    %1098 = vector.broadcast %cst_221 : f32 to vector<2x32xf32>
    %1099 = arith.addf %1098, %1097 : vector<2x32xf32>
    %1100 = arith.divf %1098, %1099 : vector<2x32xf32>
    %1101 = vector.extract_strided_slice %1081 {offsets = [0, 64], sizes = [2, 32], strides = [1, 1]} : vector<2x96xf32> to vector<2x32xf32>
    %1102 = vector.extract_strided_slice %1084 {offsets = [0, 64], sizes = [2, 32], strides = [1, 1]} : vector<2x96xf32> to vector<2x32xf32>
    %1103 = arith.mulf %1092, %1102 : vector<2x32xf32>
    %1104 = arith.addf %1101, %1103 : vector<2x32xf32>
    %1105 = math.tanh %1104 : vector<2x32xf32>
    %cst_222 = arith.constant 1.000000e+00 : f32
    %1106 = vector.broadcast %cst_222 : f32 to vector<2x32xf32>
    %1107 = arith.subf %1106, %1100 : vector<2x32xf32>
    %1108 = arith.mulf %1107, %1105 : vector<2x32xf32>
    %1109 = arith.mulf %1100, %1028 : vector<2x32xf32>
    %1110 = arith.addf %1108, %1109 : vector<2x32xf32>
    %cst_223 = arith.constant dense<0.000000e+00> : vector<2x24xf32>
    %1111 = tpu.matmul %1110, %13, %cst_223 {dimension_numbers = #tpu.dot_dimension_numbers<[1], [0], [0], [1], [0, 0, 1, 1], [], []>} : vector<2x32xf32>, vector<32x24xf32>, vector<2x24xf32> -> vector<2x24xf32>
    %1112 = vector.broadcast %14 : vector<1x24xf32> to vector<2x24xf32>
    %1113 = arith.addf %1111, %1112 : vector<2x24xf32>
    %1114 = vector.extract_strided_slice %1113 {offsets = [0, 0], sizes = [2, 8], strides = [1, 1]} : vector<2x24xf32> to vector<2x8xf32>
    %1115 = vector.extract_strided_slice %1113 {offsets = [0, 8], sizes = [2, 16], strides = [1, 1]} : vector<2x24xf32> to vector<2x16xf32>
    %1116 = tpu.concatenate %1038, %1110, %1072, %1076, %1080, %1114, %1115, %545 in 1 : vector<2x16xf32>, vector<2x32xf32>, vector<2x16xf32>, vector<2x4xf32>, vector<2x4xf32>, vector<2x8xf32>, vector<2x16xf32>, vector<2x32xf32> -> vector<2x128xf32>
    %c6 = arith.constant 6 : index
    %c0_224 = arith.constant 0 : index
    %c0_225 = arith.constant 0 : index
    %1117 = vector.load %arg24[%c6, %c0_224, %c0_225] : memref<8x2x128xf32, #tpu.memory_space<vmem>>, vector<1x2x128xf32>
    %1118 = vector.shape_cast %1117 : vector<1x2x128xf32> to vector<2x128xf32>
    %1119 = vector.shape_cast %1116 : vector<2x128xf32> to vector<1x2x128xf32>
    tpu.vector_store %arg24[%c6, %c0_224, %c0_225], %1119 {strides = array<i32>} : memref<8x2x128xf32, #tpu.memory_space<vmem>>, vector<1x2x128xf32>,
    %1120 = tpu.concatenate %522, %89 in 1 : vector<2x8xf32>, vector<2x8xf32> -> vector<2x16xf32>
    %cst_226 = arith.constant dense<0.000000e+00> : vector<2x48xf32>
    %1121 = tpu.matmul %1120, %4, %cst_226 {dimension_numbers = #tpu.dot_dimension_numbers<[1], [0], [0], [1], [0, 0, 1, 1], [], []>} : vector<2x16xf32>, vector<16x48xf32>, vector<2x48xf32> -> vector<2x48xf32>
    %cst_227 = arith.constant dense<0.000000e+00> : vector<2x48xf32>
    %1122 = tpu.matmul %1114, %5, %cst_227 {dimension_numbers = #tpu.dot_dimension_numbers<[1], [0], [0], [1], [0, 0, 1, 1], [], []>} : vector<2x8xf32>, vector<8x48xf32>, vector<2x48xf32> -> vector<2x48xf32>
    %1123 = arith.addf %1121, %1122 : vector<2x48xf32>
    %1124 = vector.broadcast %7 : vector<1x48xf32> to vector<2x48xf32>
    %1125 = arith.addf %1123, %1124 : vector<2x48xf32>
    %cst_228 = arith.constant dense<0.000000e+00> : vector<2x48xf32>
    %1126 = tpu.matmul %1072, %6, %cst_228 {dimension_numbers = #tpu.dot_dimension_numbers<[1], [0], [0], [1], [0, 0, 1, 1], [], []>} : vector<2x16xf32>, vector<16x48xf32>, vector<2x48xf32> -> vector<2x48xf32>
    %1127 = vector.broadcast %8 : vector<1x48xf32> to vector<2x48xf32>
    %1128 = arith.addf %1126, %1127 : vector<2x48xf32>
    %1129 = vector.extract_strided_slice %1125 {offsets = [0, 0], sizes = [2, 16], strides = [1, 1]} : vector<2x48xf32> to vector<2x16xf32>
    %1130 = vector.extract_strided_slice %1128 {offsets = [0, 0], sizes = [2, 16], strides = [1, 1]} : vector<2x48xf32> to vector<2x16xf32>
    %1131 = arith.addf %1129, %1130 : vector<2x16xf32>
    %1132 = arith.negf %1131 : vector<2x16xf32>
    %1133 = math.exp %1132 : vector<2x16xf32>
    %cst_229 = arith.constant 1.000000e+00 : f32
    %1134 = vector.broadcast %cst_229 : f32 to vector<2x16xf32>
    %1135 = arith.addf %1134, %1133 : vector<2x16xf32>
    %1136 = arith.divf %1134, %1135 : vector<2x16xf32>
    %1137 = vector.extract_strided_slice %1125 {offsets = [0, 16], sizes = [2, 16], strides = [1, 1]} : vector<2x48xf32> to vector<2x16xf32>
    %1138 = vector.extract_strided_slice %1128 {offsets = [0, 16], sizes = [2, 16], strides = [1, 1]} : vector<2x48xf32> to vector<2x16xf32>
    %1139 = arith.addf %1137, %1138 : vector<2x16xf32>
    %1140 = arith.negf %1139 : vector<2x16xf32>
    %1141 = math.exp %1140 : vector<2x16xf32>
    %cst_230 = arith.constant 1.000000e+00 : f32
    %1142 = vector.broadcast %cst_230 : f32 to vector<2x16xf32>
    %1143 = arith.addf %1142, %1141 : vector<2x16xf32>
    %1144 = arith.divf %1142, %1143 : vector<2x16xf32>
    %1145 = vector.extract_strided_slice %1125 {offsets = [0, 32], sizes = [2, 16], strides = [1, 1]} : vector<2x48xf32> to vector<2x16xf32>
    %1146 = vector.extract_strided_slice %1128 {offsets = [0, 32], sizes = [2, 16], strides = [1, 1]} : vector<2x48xf32> to vector<2x16xf32>
    %1147 = arith.mulf %1136, %1146 : vector<2x16xf32>
    %1148 = arith.addf %1145, %1147 : vector<2x16xf32>
    %1149 = math.tanh %1148 : vector<2x16xf32>
    %cst_231 = arith.constant 1.000000e+00 : f32
    %1150 = vector.broadcast %cst_231 : f32 to vector<2x16xf32>
    %1151 = arith.subf %1150, %1144 : vector<2x16xf32>
    %1152 = arith.mulf %1151, %1149 : vector<2x16xf32>
    %1153 = arith.mulf %1144, %1072 : vector<2x16xf32>
    %1154 = arith.addf %1152, %1153 : vector<2x16xf32>
    %cst_232 = arith.constant dense<0.000000e+00> : vector<2x104xf32>
    %1155 = tpu.matmul %1154, %9, %cst_232 {dimension_numbers = #tpu.dot_dimension_numbers<[1], [0], [0], [1], [0, 0, 1, 1], [], []>} : vector<2x16xf32>, vector<16x104xf32>, vector<2x104xf32> -> vector<2x104xf32>
    %1156 = vector.broadcast %10 : vector<1x104xf32> to vector<2x104xf32>
    %1157 = arith.addf %1155, %1156 : vector<2x104xf32>
    %1158 = vector.extract_strided_slice %1157 {offsets = [0, 0], sizes = [2, 4], strides = [1, 1]} : vector<2x104xf32> to vector<2x4xf32>
    %1159 = vector.extract_strided_slice %1157 {offsets = [0, 4], sizes = [2, 4], strides = [1, 1]} : vector<2x104xf32> to vector<2x4xf32>
    %cst_233 = arith.constant 5.000000e-01 : f32
    %1160 = vector.broadcast %cst_233 : f32 to vector<2x4xf32>
    %1161 = arith.mulf %1160, %1159 : vector<2x4xf32>
    %1162 = math.exp %1161 : vector<2x4xf32>
    %1163 = vector.extract_strided_slice %1157 {offsets = [0, 8], sizes = [2, 96], strides = [1, 1]} : vector<2x104xf32> to vector<2x96xf32>
    %cst_234 = arith.constant dense<0.000000e+00> : vector<2x96xf32>
    %1164 = tpu.matmul %1110, %11, %cst_234 {dimension_numbers = #tpu.dot_dimension_numbers<[1], [0], [0], [1], [0, 0, 1, 1], [], []>} : vector<2x32xf32>, vector<32x96xf32>, vector<2x96xf32> -> vector<2x96xf32>
    %1165 = vector.broadcast %12 : vector<1x96xf32> to vector<2x96xf32>
    %1166 = arith.addf %1164, %1165 : vector<2x96xf32>
    %1167 = vector.extract_strided_slice %1163 {offsets = [0, 0], sizes = [2, 32], strides = [1, 1]} : vector<2x96xf32> to vector<2x32xf32>
    %1168 = vector.extract_strided_slice %1166 {offsets = [0, 0], sizes = [2, 32], strides = [1, 1]} : vector<2x96xf32> to vector<2x32xf32>
    %1169 = arith.addf %1167, %1168 : vector<2x32xf32>
    %1170 = arith.negf %1169 : vector<2x32xf32>
    %1171 = math.exp %1170 : vector<2x32xf32>
    %cst_235 = arith.constant 1.000000e+00 : f32
    %1172 = vector.broadcast %cst_235 : f32 to vector<2x32xf32>
    %1173 = arith.addf %1172, %1171 : vector<2x32xf32>
    %1174 = arith.divf %1172, %1173 : vector<2x32xf32>
    %1175 = vector.extract_strided_slice %1163 {offsets = [0, 32], sizes = [2, 32], strides = [1, 1]} : vector<2x96xf32> to vector<2x32xf32>
    %1176 = vector.extract_strided_slice %1166 {offsets = [0, 32], sizes = [2, 32], strides = [1, 1]} : vector<2x96xf32> to vector<2x32xf32>
    %1177 = arith.addf %1175, %1176 : vector<2x32xf32>
    %1178 = arith.negf %1177 : vector<2x32xf32>
    %1179 = math.exp %1178 : vector<2x32xf32>
    %cst_236 = arith.constant 1.000000e+00 : f32
    %1180 = vector.broadcast %cst_236 : f32 to vector<2x32xf32>
    %1181 = arith.addf %1180, %1179 : vector<2x32xf32>
    %1182 = arith.divf %1180, %1181 : vector<2x32xf32>
    %1183 = vector.extract_strided_slice %1163 {offsets = [0, 64], sizes = [2, 32], strides = [1, 1]} : vector<2x96xf32> to vector<2x32xf32>
    %1184 = vector.extract_strided_slice %1166 {offsets = [0, 64], sizes = [2, 32], strides = [1, 1]} : vector<2x96xf32> to vector<2x32xf32>
    %1185 = arith.mulf %1174, %1184 : vector<2x32xf32>
    %1186 = arith.addf %1183, %1185 : vector<2x32xf32>
    %1187 = math.tanh %1186 : vector<2x32xf32>
    %cst_237 = arith.constant 1.000000e+00 : f32
    %1188 = vector.broadcast %cst_237 : f32 to vector<2x32xf32>
    %1189 = arith.subf %1188, %1182 : vector<2x32xf32>
    %1190 = arith.mulf %1189, %1187 : vector<2x32xf32>
    %1191 = arith.mulf %1182, %1110 : vector<2x32xf32>
    %1192 = arith.addf %1190, %1191 : vector<2x32xf32>
    %cst_238 = arith.constant dense<0.000000e+00> : vector<2x24xf32>
    %1193 = tpu.matmul %1192, %13, %cst_238 {dimension_numbers = #tpu.dot_dimension_numbers<[1], [0], [0], [1], [0, 0, 1, 1], [], []>} : vector<2x32xf32>, vector<32x24xf32>, vector<2x24xf32> -> vector<2x24xf32>
    %1194 = vector.broadcast %14 : vector<1x24xf32> to vector<2x24xf32>
    %1195 = arith.addf %1193, %1194 : vector<2x24xf32>
    %1196 = vector.extract_strided_slice %1195 {offsets = [0, 0], sizes = [2, 8], strides = [1, 1]} : vector<2x24xf32> to vector<2x8xf32>
    %1197 = vector.extract_strided_slice %1195 {offsets = [0, 8], sizes = [2, 16], strides = [1, 1]} : vector<2x24xf32> to vector<2x16xf32>
    %1198 = tpu.concatenate %1120, %1192, %1154, %1158, %1162, %1196, %1197, %545 in 1 : vector<2x16xf32>, vector<2x32xf32>, vector<2x16xf32>, vector<2x4xf32>, vector<2x4xf32>, vector<2x8xf32>, vector<2x16xf32>, vector<2x32xf32> -> vector<2x128xf32>
    %c7 = arith.constant 7 : index
    %c0_239 = arith.constant 0 : index
    %c0_240 = arith.constant 0 : index
    %1199 = vector.load %arg24[%c7, %c0_239, %c0_240] : memref<8x2x128xf32, #tpu.memory_space<vmem>>, vector<1x2x128xf32>
    %1200 = vector.shape_cast %1199 : vector<1x2x128xf32> to vector<2x128xf32>
    %1201 = vector.shape_cast %1198 : vector<2x128xf32> to vector<1x2x128xf32>
    tpu.vector_store %arg24[%c7, %c0_239, %c0_240], %1201 {strides = array<i32>} : memref<8x2x128xf32, #tpu.memory_space<vmem>>, vector<1x2x128xf32>,
    %cst_241 = arith.constant 0.000000e+00 : f32
    %1202 = vector.broadcast %cst_241 : f32 to vector<2x80xf32>
    %1203 = tpu.concatenate %532, %536, %541, %1202 in 1 : vector<2x8xf32>, vector<2x8xf32>, vector<2x32xf32>, vector<2x80xf32> -> vector<2x128xf32>
    %c0_242 = arith.constant 0 : index
    %c0_243 = arith.constant 0 : index
    %1204 = vector.load %arg25[%c0_242, %c0_243] : memref<2x128xf32, #tpu.memory_space<vmem>>, vector<2x128xf32>
    tpu.vector_store %arg25[%c0_242, %c0_243], %1203 {strides = array<i32>} : memref<2x128xf32, #tpu.memory_space<vmem>>, vector<2x128xf32>,
    return
  }
}

</mosaic_0001>

<bundles_post_ra>
// kernel: lfads_forward.1
= control target key start
LH: loop header
LB: loop body
LE: loop exit
PB: predicated region body
PF: predicated region fallthrough
CT: control target
= control target key end

     0   :  { %s9815_s0 = inlined_call_operand.vmem [shape: f32[16,16], index: 0, kind: input, shape index: {}]   ;;  %s9816_s1 = inlined_call_operand.vmem [shape: f32[16,72], index: 1, kind: input, shape index: {}]   ;;  %s9817_s2 = inlined_call_operand.vmem [shape: f32[24,72], index: 2, kind: input, shape index: {}]   ;;  %s9818_s3 = inlined_call_operand.hbm [shape: f32[1,72], index: 3, kind: input, shape index: {}]   ;;  %s9819_s4 = inlined_call_operand.hbm [shape: f32[1,72], index: 4, kind: input, shape index: {}]   ;;  %s9820_s5 = inlined_call_operand.vmem [shape: f32[16,72], index: 5, kind: input, shape index: {}]   ;;  %s9821_s6 = inlined_call_operand.vmem [shape: f32[24,72], index: 6, kind: input, shape index: {}]   ;;  %s9822_s7 = inlined_call_operand.hbm [shape: f32[1,72], index: 7, kind: input, shape index: {}]   ;;  %s9823_s8 = inlined_call_operand.hbm [shape: f32[1,72], index: 8, kind: input, shape index: {}]   ;;  %s9824_s9 = inlined_call_operand.vmem [shape: f32[32,16], index: 9, kind: input, shape index: {}]   ;;  %s9825_s10 = inlined_call_operand.hbm [shape: f32[1,16], index: 10, kind: input, shape index: {}]   ;;  %s9826_s11 = inlined_call_operand.hbm [shape: f32[8,32], index: 11, kind: input, shape index: {}]   ;;  %s9827_s12 = inlined_call_operand.hbm [shape: f32[1,32], index: 12, kind: input, shape index: {}]   ;;  %s9828_s13 = inlined_call_operand.vmem [shape: f32[16,48], index: 13, kind: input, shape index: {}]   ;;  %s9829_s14 = inlined_call_operand.hbm [shape: f32[8,48], index: 14, kind: input, shape index: {}]   ;;  %s9830_s15 = inlined_call_operand.vmem [shape: f32[16,48], index: 15, kind: input, shape index: {}]   ;;  %s9831_s16 = inlined_call_operand.vmem [shape: f32[1,48], index: 16, kind: input, shape index: {}]   ;;  %s9832_s17 = inlined_call_operand.vmem [shape: f32[1,48], index: 17, kind: input, shape index: {}]   ;;  %s9833_s18 = inlined_call_operand.vmem [shape: f32[16,104], index: 18, kind: input, shape index: {}]   ;;  %s9834_s19 = inlined_call_operand.vmem [shape: f32[1,104], index: 19, kind: input, shape index: {}]   ;;  %s9835_s20 = inlined_call_operand.vmem [shape: f32[32,96], index: 20, kind: input, shape index: {}]   ;;  %s9836_s21 = inlined_call_operand.hbm [shape: f32[1,96], index: 21, kind: input, shape index: {}]   ;;  %s9837_s22 = inlined_call_operand.vmem [shape: f32[32,24], index: 22, kind: input, shape index: {}]   ;;  %s9838_s23 = inlined_call_operand.hbm [shape: f32[1,24], index: 23, kind: input, shape index: {}]   ;;  %s9839_s24 = inlined_call_operand.vmem [shape: f32[8,2,128], index: 24, kind: output, shape index: {0}]   ;;  %s9840_s25 = inlined_call_operand.vmem [shape: f32[2,128], index: 25, kind: output, shape index: {1}]  }
   0x1   :  { %9851 = sst [smem:[#allocation24_spill]] %s9815_s0 }
   0x2   :  { %9852 = sst [smem:[#allocation25_spill]] %s9816_s1 }
   0x3   :  { %9853 = sst [smem:[#allocation26_spill]] %s9817_s2 }
   0x4   :  { %9854 = sst [smem:[#allocation27_spill]] %s9818_s3 }
   0x5   :  { %9855 = sst [smem:[#allocation28_spill]] %s9819_s4 }
   0x6   :  { %9856 = sst [smem:[#allocation29_spill]] %s9820_s5 }
   0x7   :  { %9857 = sst [smem:[#allocation30_spill]] %s9821_s6 }
   0x8   :  { %9858 = sst [smem:[#allocation31_spill]] %s9822_s7 }
   0x9   :  { %9859 = sst [smem:[#allocation32_spill]] %s9823_s8 }
   0xa   :  { %9860 = sst [smem:[#allocation33_spill]] %s9824_s9 }
   0xb   :  { %31 = vsyncpa [#allocation3], 0 }
   0xc   :  { %32 = vsyncpa [#allocation5], 0 }
   0xd   :  { %33 = vsyncpa [#allocation8], 0 }
   0xe   :  { %34 = vsyncpa [#allocation11], 0 }
   0xf   :  { %35 = vsyncpa [#allocation14], 0 }
  0x10   :  { %36 = vsyncpa [#allocation17], 0  ;;  %s8307_s29 = smov [#allocation4]   ;;  %s8308_s6 = smov [#allocation7]  }
  0x11   :  { %s59_s2 = sshll.u32 %s8307_s29, 4  ;;  %s83_s30 = sshll.u32 %s8308_s6, 4  ;;  %s60_s2 = int_to_ptr.vmem [resolvable:$true] %s59_s2  ;;  %s84_s30 = int_to_ptr.vmem [resolvable:$true] %s83_s30 }
  0x12   :  { %s9861_s26 = sld [smem:[#allocation28_spill]] }
  0x18   :  { %s8075_s1 = scalar_lea.hbm %s9861_s26, 16 }
  0x19   :  { %p8076_p0 = scmp.ne.s32.totalorder %s9861_s26, %s8075_s1  ;;  %p8079_p1 = scmp.lt.u32.totalorder %s8075_s1, %s9861_s26 }
  0x1b   :  { %p8081_p2 = pnand %p8079_p1, %p8076_p0 }
  0x1d   :  { %8084 = shalt.err (!%p8081_p2)
}
  0x1e   :  { %s8085_s9 = scalar_lea.vmem %s60_s2, 16  ;;  %s8089_s5 = scalar_lea.vmem %s60_s2, 32 }
  0x1f   :  { %p8086_p3 = scmp.ne.s32.totalorder %s60_s2, %s8085_s9  ;;  %p8090_p4 = scmp.lt.s32.totalorder %s60_s2, %s60_s2 }
  0x20   :  { %p8091_p5 = scmp.lt.s32.totalorder %s8089_s5, %s8085_s9 }
  0x22   :  { %p8092_p6 = por %p8091_p5, %p8090_p4 }
  0x24   :  { %p8093_p7 = pnand %p8092_p6, %p8086_p3 }
  0x26   :  { %8096 = shalt.err (!%p8093_p7)
}
  0x27   :  { %62 = dma.hbm_to_vmem [thread:$0]  %s9861_s26, 16, %s60_s2, [#allocation5]  }
  0x28   :  { %s9862_s3 = sld [smem:[#allocation32_spill]] }
  0x2e   :  { %s8097_s8 = scalar_lea.hbm %s9862_s3, 16 }
  0x2f   :  { %p8098_p8 = scmp.ne.s32.totalorder %s9862_s3, %s8097_s8  ;;  %p8101_p9 = scmp.lt.u32.totalorder %s8097_s8, %s9862_s3 }
  0x31   :  { %p8103_p10 = pnand %p8101_p9, %p8098_p8 }
  0x33   :  { %8106 = shalt.err (!%p8103_p10)
}
  0x34   :  { %s8107_s9 = scalar_lea.vmem %s84_s30, 16  ;;  %s8111_s5 = scalar_lea.vmem %s84_s30, 32 }
  0x35   :  { %p8108_p11 = scmp.ne.s32.totalorder %s84_s30, %s8107_s9  ;;  %p8112_p12 = scmp.lt.s32.totalorder %s84_s30, %s84_s30 }
  0x36   :  { %p8113_p13 = scmp.lt.s32.totalorder %s8111_s5, %s8107_s9 }
  0x38   :  { %p8114_p0 = por %p8113_p13, %p8112_p12 }
  0x3a   :  { %p8115_p1 = pnand %p8114_p0, %p8108_p11 }
  0x3c   :  { %8118 = shalt.err (!%p8115_p1)
}
  0x3d   :  { %86 = dma.hbm_to_vmem [thread:$0]  %s9862_s3, 16, %s84_s30, [#allocation8]  }
  0x3e   :  { %s8309_s0 = smov [#allocation10]   ;;  %s8310_s6 = smov [#allocation13]  }
  0x3f   :  { %s105_s29 = sshll.u32 %s8309_s0, 4  ;;  %s127_s7 = sshll.u32 %s8310_s6, 4  ;;  %s106_s29 = int_to_ptr.vmem [resolvable:$true] %s105_s29  ;;  %s128_s7 = int_to_ptr.vmem [resolvable:$true] %s127_s7 }
  0x40   :  { %s8119_s1 = scalar_lea.hbm %s9826_s11, 128 }
  0x41   :  { %p8120_p2 = scmp.ne.s32.totalorder %s9826_s11, %s8119_s1  ;;  %p8123_p3 = scmp.lt.u32.totalorder %s8119_s1, %s9826_s11 }
  0x43   :  { %p8125_p4 = pnand %p8123_p3, %p8120_p2 }
  0x45   :  { %8128 = shalt.err (!%p8125_p4)
}
  0x46   :  { %s8129_s30 = scalar_lea.vmem %s106_s29, 128  ;;  %p8134_p6 = scmp.lt.s32.totalorder %s106_s29, %s106_s29 }
  0x47   :  { %p8130_p5 = scmp.ne.s32.totalorder %s106_s29, %s8129_s30  ;;  %p8135_p7 = scmp.lt.s32.totalorder %s8129_s30, %s8129_s30 }
  0x49   :  { %p8136_p8 = por %p8135_p7, %p8134_p6 }
  0x4b   :  { %p8137_p9 = pnand %p8136_p8, %p8130_p5 }
  0x4d   :  { %8140 = shalt.err (!%p8137_p9)
}
  0x4e   :  { %108 = dma.hbm_to_vmem [thread:$0]  %s9826_s11, 128, %s106_s29, [#allocation11]  }
  0x4f   :  { %s8141_s6 = scalar_lea.hbm %s9829_s14, 128 }
  0x50   :  { %p8142_p10 = scmp.ne.s32.totalorder %s9829_s14, %s8141_s6  ;;  %p8145_p11 = scmp.lt.u32.totalorder %s8141_s6, %s9829_s14 }
  0x52   :  { %p8147_p12 = pnand %p8145_p11, %p8142_p10 }
  0x54   :  { %8150 = shalt.err (!%p8147_p12)
}
  0x55   :  { %s8151_s28 = scalar_lea.vmem %s128_s7, 128  ;;  %p8156_p0 = scmp.lt.s32.totalorder %s128_s7, %s128_s7 }
  0x56   :  { %p8152_p13 = scmp.ne.s32.totalorder %s128_s7, %s8151_s28  ;;  %p8157_p1 = scmp.lt.s32.totalorder %s8151_s28, %s8151_s28 }
  0x58   :  { %p8158_p2 = por %p8157_p1, %p8156_p0 }
  0x5a   :  { %p8159_p3 = pnand %p8158_p2, %p8152_p13 }
  0x5c   :  { %8162 = shalt.err (!%p8159_p3)
}
  0x5d   :  { %130 = dma.hbm_to_vmem [thread:$0]  %s9829_s14, 128, %s128_s7, [#allocation14]  }
  0x5e   :  { %s8311_s9 = smov [#allocation2]   ;;  %s8312_s30 = smov [#allocation6]  }
  0x5f   :  { %s49_s5 = sshll.u32 %s8311_s9, 4  ;;  %s73_s3 = sshll.u32 %s8312_s30, 4  ;;  %s50_s5 = int_to_ptr.vmem [resolvable:$true] %s49_s5  ;;  %s74_s3 = int_to_ptr.vmem [resolvable:$true] %s73_s3 }
  0x60   :  { %s9863_s0 = sld [smem:[#allocation27_spill]] }
  0x66   :  { %s8163_s6 = scalar_lea.hbm %s9863_s0, 16 }
  0x67   :  { %p8164_p4 = scmp.ne.s32.totalorder %s9863_s0, %s8163_s6  ;;  %p8167_p5 = scmp.lt.u32.totalorder %s8163_s6, %s9863_s0 }
  0x69   :  { %p8169_p6 = pnand %p8167_p5, %p8164_p4 }
  0x6b   :  { %8172 = shalt.err (!%p8169_p6)
}
  0x6c   :  { %s8173_s14 = scalar_lea.vmem %s50_s5, 16  ;;  %s8177_s7 = scalar_lea.vmem %s50_s5, 32 }
  0x6d   :  { %p8174_p7 = scmp.ne.s32.totalorder %s50_s5, %s8173_s14  ;;  %p8178_p8 = scmp.lt.s32.totalorder %s50_s5, %s50_s5 }
  0x6e   :  { %p8179_p9 = scmp.lt.s32.totalorder %s8177_s7, %s8173_s14 }
  0x70   :  { %p8180_p10 = por %p8179_p9, %p8178_p8 }
  0x72   :  { %p8181_p11 = pnand %p8180_p10, %p8174_p7 }
  0x74   :  { %8184 = shalt.err (!%p8181_p11)
}
  0x75   :  { %52 = dma.hbm_to_vmem [thread:$0]  %s9863_s0, 16, %s50_s5, [#allocation3]  }
  0x76   :  { %s9864_s30 = sld [smem:[#allocation31_spill]] }
  0x7c   :  { %s8185_s2 = scalar_lea.hbm %s9864_s30, 16 }
  0x7d   :  { %p8186_p12 = scmp.ne.s32.totalorder %s9864_s30, %s8185_s2  ;;  %p8189_p13 = scmp.lt.u32.totalorder %s8185_s2, %s9864_s30 }
  0x7f   :  { %p8191_p0 = pnand %p8189_p13, %p8186_p12 }
  0x81   :  { %8194 = shalt.err (!%p8191_p0)
}
  0x82   :  { %s8195_s1 = scalar_lea.vmem %s74_s3, 16  ;;  %s8199_s4 = scalar_lea.vmem %s74_s3, 32 }
  0x83   :  { %p8196_p1 = scmp.ne.s32.totalorder %s74_s3, %s8195_s1  ;;  %p8200_p2 = scmp.lt.s32.totalorder %s74_s3, %s74_s3 }
  0x84   :  { %p8201_p3 = scmp.lt.s32.totalorder %s8199_s4, %s8195_s1 }
  0x86   :  { %p8202_p4 = por %p8201_p3, %p8200_p2 }
  0x88   :  { %p8203_p5 = pnand %p8202_p4, %p8196_p1 }
  0x8a   :  { %8206 = shalt.err (!%p8203_p5)
}
  0x8b   :  { %76 = dma.hbm_to_vmem [thread:$0]  %s9864_s30, 16, %s74_s3, [#allocation5]  }
  0x8c   :  { %s8313_s14 = smov [#allocation9]   ;;  %s8314_s28 = smov [#allocation12]  }
  0x8d   :  { %s95_s7 = sshll.u32 %s8313_s14, 4  ;;  %s115_s11 = sshll.u32 %s8314_s28, 4  ;;  %s96_s7 = int_to_ptr.vmem [resolvable:$true] %s95_s7  ;;  %s116_s11 = int_to_ptr.vmem [resolvable:$true] %s115_s11 }
  0x8e   :  { %s8207_s2 = scalar_lea.hbm %s9825_s10, 16 }
  0x8f   :  { %p8208_p6 = scmp.ne.s32.totalorder %s9825_s10, %s8207_s2  ;;  %p8211_p7 = scmp.lt.u32.totalorder %s8207_s2, %s9825_s10 }
  0x91   :  { %p8213_p8 = pnand %p8211_p7, %p8208_p6 }
  0x93   :  { %8216 = shalt.err (!%p8213_p8)
}
  0x94   :  { %s8217_s3 = scalar_lea.vmem %s96_s7, 16  ;;  %s8221_s30 = scalar_lea.vmem %s96_s7, 32 }
  0x95   :  { %p8218_p9 = scmp.ne.s32.totalorder %s96_s7, %s8217_s3  ;;  %p8222_p10 = scmp.lt.s32.totalorder %s96_s7, %s96_s7 }
  0x96   :  { %p8223_p11 = scmp.lt.s32.totalorder %s8221_s30, %s8217_s3 }
  0x98   :  { %p8224_p12 = por %p8223_p11, %p8222_p10 }
  0x9a   :  { %p8225_p13 = pnand %p8224_p12, %p8218_p9 }
  0x9c   :  { %8228 = shalt.err (!%p8225_p13)
}
  0x9d   :  { %98 = dma.hbm_to_vmem [thread:$0]  %s9825_s10, 16, %s96_s7, [#allocation8]  }
  0x9e   :  { %s8229_s14 = scalar_lea.hbm %s9827_s12, 16 }
  0x9f   :  { %p8230_p0 = scmp.ne.s32.totalorder %s9827_s12, %s8229_s14  ;;  %p8233_p1 = scmp.lt.u32.totalorder %s8229_s14, %s9827_s12 }
  0xa1   :  { %p8235_p2 = pnand %p8233_p1, %p8230_p0 }
  0xa3   :  { %8238 = shalt.err (!%p8235_p2)
}
  0xa4   :  { %s8239_s26 = scalar_lea.vmem %s116_s11, 16  ;;  %s8243_s6 = scalar_lea.vmem %s116_s11, 32 }
  0xa5   :  { %p8240_p3 = scmp.ne.s32.totalorder %s116_s11, %s8239_s26  ;;  %p8244_p4 = scmp.lt.s32.totalorder %s116_s11, %s116_s11 }
  0xa6   :  { %p8245_p5 = scmp.lt.s32.totalorder %s8243_s6, %s8239_s26 }
  0xa8   :  { %p8246_p6 = por %p8245_p5, %p8244_p4 }
  0xaa   :  { %p8247_p7 = pnand %p8246_p6, %p8240_p3 }
  0xac   :  { %8250 = shalt.err (!%p8247_p7)
}
  0xad   :  { %118 = dma.hbm_to_vmem [thread:$0]  %s9827_s12, 16, %s116_s11, [#allocation11]  }
  0xae   :  { %s8315_s8 = smov [#allocation15]   ;;  %s8316_s3 = smov [#allocation16]  }
  0xaf   :  { %s149_s27 = sshll.u32 %s8315_s8, 4  ;;  %s161_s30 = sshll.u32 %s8316_s3, 4  ;;  %s150_s27 = int_to_ptr.vmem [resolvable:$true] %s149_s27  ;;  %s162_s30 = int_to_ptr.vmem [resolvable:$true] %s161_s30 }
  0xb0   :  { %s8251_s5 = scalar_lea.hbm %s9836_s21, 16 }
  0xb1   :  { %p8252_p8 = scmp.ne.s32.totalorder %s9836_s21, %s8251_s5  ;;  %p8255_p9 = scmp.lt.u32.totalorder %s8251_s5, %s9836_s21 }
  0xb3   :  { %p8257_p10 = pnand %p8255_p9, %p8252_p8 }
  0xb5   :  { %8260 = shalt.err (!%p8257_p10)
}
  0xb6   :  { %s8261_s12 = scalar_lea.vmem %s150_s27, 16  ;;  %s8265_s11 = scalar_lea.vmem %s150_s27, 32 }
  0xb7   :  { %p8262_p11 = scmp.ne.s32.totalorder %s150_s27, %s8261_s12  ;;  %p8266_p12 = scmp.lt.s32.totalorder %s150_s27, %s150_s27 }
  0xb8   :  { %p8267_p13 = scmp.lt.s32.totalorder %s8265_s11, %s8261_s12 }
  0xba   :  { %p8268_p0 = por %p8267_p13, %p8266_p12 }
  0xbc   :  { %p8269_p1 = pnand %p8268_p0, %p8262_p11 }
  0xbe   :  { %8272 = shalt.err (!%p8269_p1)
}
  0xbf   :  { %152 = dma.hbm_to_vmem [thread:$0]  %s9836_s21, 16, %s150_s27, [#allocation14]  }
  0xc0   :  { %s8273_s10 = scalar_lea.hbm %s9838_s23, 16 }
  0xc1   :  { %p8274_p2 = scmp.ne.s32.totalorder %s9838_s23, %s8273_s10  ;;  %p8277_p3 = scmp.lt.u32.totalorder %s8273_s10, %s9838_s23 }
  0xc3   :  { %p8279_p4 = pnand %p8277_p3, %p8274_p2 }
  0xc5   :  { %8282 = shalt.err (!%p8279_p4)
}
  0xc6   :  { %s8283_s4 = scalar_lea.vmem %s162_s30, 16  ;;  %s8287_s5 = scalar_lea.vmem %s162_s30, 32 }
  0xc7   :  { %p8284_p5 = scmp.ne.s32.totalorder %s162_s30, %s8283_s4  ;;  %p8288_p6 = scmp.lt.s32.totalorder %s162_s30, %s162_s30 }
  0xc8   :  { %p8289_p7 = scmp.lt.s32.totalorder %s8287_s5, %s8283_s4 }
  0xca   :  { %p8290_p8 = por %p8289_p7, %p8288_p6 }
  0xcc   :  { %p8291_p9 = pnand %p8290_p8, %p8284_p5 }
  0xce   :  { %8294 = shalt.err (!%p8291_p9)
}
  0xcf   :  { %164 = dma.hbm_to_vmem [thread:$0]  %s9838_s23, 16, %s162_s30, [#allocation17]  }
  0xd0   :  { %8295 = dma.done.wait [#allocation3], 16  }
  0xd1   :  { %8296 = vsyncadd [#allocation3], 4294967280 }
  0xd2   :  { %8297 = dma.done.wait [#allocation5], 32  }
  0xd3   :  { %8298 = vsyncadd [#allocation5], 4294967264 }
  0xd4   :  { %8299 = dma.done.wait [#allocation8], 32  }
  0xd5   :  { %8300 = vsyncadd [#allocation8], 4294967264 }
  0xd6   :  { %8301 = dma.done.wait [#allocation11], 144  }
  0xd7   :  { %8302 = vsyncadd [#allocation11], 4294967152 }
  0xd8   :  { %8303 = dma.done.wait [#allocation14], 144  }
  0xd9   :  { %8304 = vsyncadd [#allocation14], 4294967152 }
  0xda   :  { %8305 = dma.done.wait [#allocation17], 16  }
  0xdb   :  { %8306 = vsyncadd [#allocation17], 4294967280  ;;  %vm234_vm0 = vcmask 130048   ;;  %s9865_s28 = sld [smem:[#allocation29_spill]]  ;;  %s9866_s11 = sld [smem:[#allocation25_spill]]  ;;  %v8317_v13 = vmov 0.0|0.0  }
  0xdc   :  { %s9867_s10 = sld [smem:[#allocation24_spill]]  ;;  %s9868_s3 = sld [smem:[#allocation30_spill]]  ;;  %v8318_v15 = vmov 0.0   ;;  %vm8319_vm1 = vmmov 0   ;;  %v6661_v18 = vld [vmem:[#allocation6] ss:$0 sm:$0xff] }
  0xdd   :  { %s9869_s27 = sld [smem:[#allocation26_spill]]  ;;  %v6658_v19 = vld [vmem:[#allocation2] ss:$0 sm:$0xff]  ;;  %v8663_v26 = vld [vmem:[#allocation7] ss:$0 sm:$0xff]  ;;  %s8320_s9 = smov 80  }
  0xde   :  { %v8666_v33 = vld [vmem:[#allocation4] ss:$0 sm:$0xff]  ;;  %s8321_s2 = smov 48   ;;  %s8322_s26 = smov 104   ;;  %vm406_vm2 = vcmask 195584   ;;  %vm2105_vm3 = vcmask 261120  }
  0xdf   :  { %s9870_s7 = sld [smem:[#allocation33_spill]]  ;;  %s8324_s0 = smov 96   ;;  %vm2189_vm4 = vcmask 64512   ;;  %vm2892_vm5 = vcmask 392192   ;;  %vm2894_vm6 = vcmask 523264   ;;  %vm2896_vm7 = vcmask 556032  }
  0xe0   :  { %s8325_s14 = smov 88   ;;  %s8328_s8 = smov 8   ;;  %vm2898_vm8 = vcmask 588800   ;;  %vm2900_vm9 = vcmask 654336   ;;  %vm2902_vm10 = vcmask 785408  }
  0xe1   :  { %v316_v0 = vld [vmem:[%s9865_s28] sm:$0xff]  ;;  %v317_v1 = vld [vmem:[%s9865_s28 + $0x8] sm:$0xff]  ;;  %s8330_s4 = smov 64  }
  0xe2   :  { %v225_v2 = vld [vmem:[%s9866_s11] sm:$0xff]  ;;  %v7601_v3 = vpack.c.bf16 %v317_v1, %v316_v0  ;;  %v226_v4 = vld [vmem:[%s9866_s11 + $0x8] sm:$0xff]  ;;  %v8629_v16 = vld [vmem:[%s9868_s3 + $0x10] sm:$0xff] }
  0xe3   :  { %v223_v5 = vld [vmem:[%s9867_s10] sm:$0xff]  ;;  %v7597_v6 = vpack.c.bf16 %v226_v4, %v225_v2  ;;  %v200_v8 = vld [vmem:[%s9868_s3 + $0x8] sm:$0xff]  ;;  %v8637_v17 = vld [vmem:[%s9869_s27 + $0x10] sm:$0xff] }
  0xe4   :  { %7039 = vmatprep.mubr.msk.f32.mxu1 %vm234_vm0, %v223_v5  ;;  %7032 = vmatprep.mubr.msk.f32.mxu0 %vm234_vm0, %v223_v5  ;;  %v199_v7 = vld [vmem:[%s9868_s3] sm:$0xff]  ;;  %v196_v10 = vld [vmem:[%s9869_s27 + $0x8] sm:$0xff] }
  0xe5   :  { %v195_v9 = vld [vmem:[%s9869_s27] sm:$0xff]  ;;  %7602 = vmatprep.subr.bf16.mxu1 %v7601_v3  ;;  %7598 = vmatprep.subr.bf16.mxu0 %v7597_v6  ;;  %v224_v11 = vld [vmem:[%s9867_s10 + $0x8] sm:$0xff]  ;;  %v8615_v12 = vpack.c.bf16 %v200_v8, %v199_v7  ;;  %s8323_s27 = smov 120  }
  0xe6   :  { %7604 = vmatpush3.bf16.msra.mxu1 %v7601_v3  ;;  %7600 = vmatpush3.bf16.msra.mxu0 %v7597_v6  ;;  %v8618_v14 = vpack.c.bf16 %v196_v10, %v195_v9 }
  0xe7   :  { %7608 = vmatprep.subr.bf16.mxu1 %v8317_v13  ;;  %7605 = vmatprep.subr.bf16.mxu0 %v8317_v13 }
  0xe9   :  { %7040 = vmatmul.mubr.msk.f32.vlgmr.msra.gmra.mrb[0].mxu1 %vm234_vm0, %v224_v11  ;;  %7033 = vmatmul.mubr.msk.f32.vlgmr.msra.gmra.mrb[0].mxu0 %vm234_vm0, %v224_v11 }
  0xea   :  { %7610 = vmatpush3.bf16.msra.mxu1 %v8615_v12  ;;  %7607 = vmatpush3.bf16.msra.mxu0 %v8618_v14 }
  0xeb   :  { %7055 = vmatprep.subr.mxu1 %v8318_v15  ;;  %7046 = vmatprep.subr.mxu0 %v8318_v15 }
  0xec   :  { %7057 = vmatprep.mubr.msk.f32.mxu1 %vm8319_vm1, %v8318_v15  ;;  %7048 = vmatprep.mubr.msk.f32.mxu0 %vm8319_vm1, %v8318_v15 }
  0xee   :  { %7056 = vmatpush3.msra.mxu1 %v8629_v16  ;;  %7047 = vmatpush3.msra.mxu0 %v8637_v17 }
  0xef   :  { %7058 = vmatmul.mubr.f32.vlgmr.msra.gmra.mrb[2].mxu1 %v8318_v15  ;;  %7049 = vmatmul.mubr.f32.vlgmr.msra.gmra.mrb[2].mxu0 %v8318_v15 }
  0xf0   :  { %7614 = vmatprep.subr.bf16.mxu1 %v8317_v13  ;;  %7611 = vmatprep.subr.bf16.mxu0 %v8317_v13 }
  0xf1   :  { %7616 = vmatpush3.bf16.msra.mxu1 %v8615_v12  ;;  %7613 = vmatpush3.bf16.msra.mxu0 %v8618_v14 }
  0xf2   :  { %7073 = vmatprep.subr.mxu1 %v8318_v15  ;;  %7075 = vmatprep.mubr.msk.f32.mxu1 %vm8319_vm1, %v8318_v15 }
  0xf3   :  { %7064 = vmatprep.subr.mxu0 %v8318_v15  ;;  %7066 = vmatprep.mubr.msk.f32.mxu0 %vm8319_vm1, %v8318_v15 }
  0xf5   :  { %7074 = vmatpush3.msra.mxu1 %v8629_v16  ;;  %7065 = vmatpush3.msra.mxu0 %v8637_v17 }
  0xf6   :  { %7620 = vmatprep.subr.bf16.mxu1 %v8317_v13  ;;  %7617 = vmatprep.subr.bf16.mxu0 %v8317_v13 }
 0x1bc   :  { %v7041_v20 = vpop.f32.mrb[0].mxu1  ;;  %v7034_v22 = vpop.f32.mrb[0].mxu0 }
 0x1bd   :  { %v391_v21 = vpop.f32.mrb[1].mxu1  ;;  %v8661_v24 = vadd.f32 %v7034_v22, %v6658_v19  ;;  %v307_v25 = vpop.f32.mrb[1].mxu0  ;;  %v8671_v35 = vadd.f32 %v7041_v20, %v6661_v18 }
 0x1be   :  { %v8659_v23 = vadd.f32 %v6661_v18, %v391_v21  ;;  %v8673_v36 = vadd.f32 %v6658_v19, %v307_v25 }
 0x1c2   :  { %v578_v27 = vpop.f32.mrb[2].mxu1  ;;  %v476_v29 = vpop.f32.mrb[2].mxu0 }
 0x1c3   :  { %v579_v28 = vadd.f32 %v8663_v26, %v578_v27  ;;  %v7059_v30 = vpop.f32.mrb[3].mxu1  ;;  %v7050_v31 = vpop.f32.mrb[3].mxu0  ;;  %v477_v34 = vadd.f32 %v8666_v33, %v476_v29 }
 0x1c5   :  { %v583_v32 = vrot.slane %v579_v28, 2  ;;  %v480_v39 = vadd.f32 %v477_v34, %v8673_v36 }
 0x1c7   :  { %592 = vrot.lane.b32.xlu0 %v583_v32, %s8320_s9  ;;  %v585_v37 = vadd.f32 %v583_v32, %v8671_v35  ;;  %v6665_v40 = vmul.f32 -1.442695, %v480_v39 }
 0x1c9   :  { %v6667_v38 = vmul.f32 -1.442695, %v585_v37 }
 0x1cb   :  { %488 = vrot.lane.b32.xlu0 %v477_v34, %s8320_s9  ;;  %7859 = vpow2.f32 %v6667_v38 }
 0x1cc   :  { %7861 = vpow2.f32 %v6665_v40 }
 0x1d5   :  { %v7860_v41 = vpop.eup %7859 }
 0x1d6   :  { %v589_v42 = vadd.f32 1.0, %v7860_v41  ;;  %v7862_v43 = vpop.eup %7861 }
 0x1d7   :  { %v484_v44 = vadd.f32 1.0, %v7862_v43 }
 0x1d8   :  { %7863 = vrcp.f32 %v589_v42 }
 0x1d9   :  { %7865 = vrcp.f32 %v484_v44 }
 0x1e2   :  { %v7864_v45 = vpop.eup %7863 }
 0x1e3   :  { %v7866_v48 = vpop.eup %7865  ;;  %v602_v57 = vsub.f32 1.0, %v7864_v45  ;;  %v608_v59 = vmul.f32 0.0, %v7864_v45 }
 0x1e4   :  { %v498_v62 = vsub.f32 1.0, %v7866_v48  ;;  %v504_v0 = vmul.f32 0.0, %v7866_v48 }
 0x239   :  { %v593_v46 = vpop.permute.xlu0 %592 }
 0x23a   :  { %v595_v47 = vmul.f32 %v7864_v45, %v593_v46 }
 0x23c   :  { %597 = vrot.lane.b32.xlu1 %v595_v47, %s8321_s2 }
 0x23d   :  { %v489_v49 = vpop.permute.xlu0 %488 }
 0x23e   :  { %v491_v50 = vmul.f32 %v7866_v48, %v489_v49 }
 0x240   :  { %493 = vrot.lane.b32.xlu1 %v491_v50, %s8321_s2 }
 0x2ae   :  { %v598_v51 = vpop.permute.xlu1 %597 }
 0x2af   :  { %v600_v52 = vadd.f32 %v598_v51, %v8671_v35 }
 0x2b1   :  { %7867 = vtanh.f32 %v600_v52 }
 0x2b2   :  { %v494_v53 = vpop.permute.xlu1 %493 }
 0x2b3   :  { %v496_v54 = vadd.f32 %v494_v53, %v8673_v36 }
 0x2b5   :  { %7869 = vtanh.f32 %v496_v54 }
 0x2bb   :  { %v7868_v55 = vpop.eup %7867 }
 0x2bc   :  { %604 = vrot.lane.b32.xlu0 %v7868_v55, %s8322_s26 }
 0x2bf   :  { %v7870_v56 = vpop.eup %7869 }
 0x2c0   :  { %500 = vrot.lane.b32.xlu1 %v7870_v56, %s8322_s26 }
 0x32e   :  { %v605_v58 = vpop.permute.xlu0 %604 }
 0x32f   :  { %v607_v60 = vmul.f32 %v605_v58, %v602_v57 }
 0x331   :  { %v8683_v61 = vadd.f32 %v608_v59, %v607_v60 }
 0x332   :  { %v501_v63 = vpop.permute.xlu1 %500 }
 0x333   :  { %v503_v1 = vmul.f32 %v501_v63, %v498_v62  ;;  %v716_v2 = vrot.slane %v8683_v61, 6  ;;  %v817_v47 = vrot.slane %v8683_v61, 2 }
 0x335   :  { %v8686_v3 = vadd.f32 %v504_v0, %v503_v1  ;;  %717 = vrot.lane.b32.xlu1 %v716_v2, %s8322_s26 }
 0x337   :  { %611 = vrot.lane.b32.xlu0 %v8686_v3, %s8322_s26  ;;  %v711_v52 = vrot.slane %v8686_v3, 6 }
 0x3a7   :  { %v718_v4 = vpop.permute.xlu1 %717 }
 0x3a8   :  { %7076 = vmatmul.mubr.msk.f32.vlgmr.msra.gmra.mrb[4].mxu1 %vm406_vm2, %v718_v4 }
 0x3a9   :  { %v612_v5 = vpop.permute.xlu0 %611  ;;  %7622 = vmatpush3.bf16.msra.mxu1 %v8615_v12  ;;  %7093 = vmatprep.mubr.msk.f32.mxu1 %vm8319_vm1, %v8318_v15 }
 0x3aa   :  { %7067 = vmatmul.mubr.msk.f32.vlgmr.msra.gmra.mrb[4].mxu0 %vm406_vm2, %v612_v5  ;;  %7091 = vmatprep.subr.mxu1 %v8318_v15 }
 0x3ab   :  { %7619 = vmatpush3.bf16.msra.mxu0 %v8618_v14  ;;  %7084 = vmatprep.mubr.msk.f32.mxu0 %vm8319_vm1, %v8318_v15 }
 0x3ac   :  { %7082 = vmatprep.subr.mxu0 %v8318_v15 }
 0x3ad   :  { %7092 = vmatpush3.msra.mxu1 %v8629_v16 }
 0x3ae   :  { %7626 = vmatprep.subr.bf16.mxu1 %v8317_v13 }
 0x3af   :  { %7083 = vmatpush3.msra.mxu0 %v8637_v17 }
 0x3b0   :  { %7623 = vmatprep.subr.bf16.mxu0 %v8317_v13 }
 0x47b   :  { %v787_v6 = vpop.f32.mrb[4].mxu1 }
 0x47c   :  { %v788_v7 = vadd.f32 %v8663_v26, %v787_v6  ;;  %v7077_v8 = vpop.f32.mrb[5].mxu1 }
 0x47d   :  { %v681_v9 = vpop.f32.mrb[4].mxu0 }
 0x47e   :  { %v792_v10 = vrot.slane %v788_v7, 4  ;;  %v682_v11 = vadd.f32 %v8666_v33, %v681_v9  ;;  %v7068_v18 = vpop.f32.mrb[5].mxu0 }
 0x480   :  { %v686_v19 = vrot.slane %v682_v11, 6  ;;  %801 = vrot.lane.b32.xlu1 %v792_v10, %s8320_s9  ;;  %v794_v20 = vadd.f32 %v792_v10, %v8671_v35 }
 0x482   :  { %695 = vrot.lane.b32.xlu0 %v686_v19, %s8320_s9  ;;  %v688_v21 = vadd.f32 %v686_v19, %v8673_v36  ;;  %v6671_v22 = vmul.f32 -1.442695, %v794_v20 }
 0x484   :  { %v6669_v25 = vmul.f32 -1.442695, %v688_v21  ;;  %7871 = vpow2.f32 %v6671_v22 }
 0x486   :  { %7873 = vpow2.f32 %v6669_v25 }
 0x48e   :  { %v7872_v27 = vpop.eup %7871 }
 0x48f   :  { %v798_v29 = vadd.f32 1.0, %v7872_v27 }
 0x490   :  { %v7874_v28 = vpop.eup %7873 }
 0x491   :  { %v692_v30 = vadd.f32 1.0, %v7874_v28  ;;  %7875 = vrcp.f32 %v798_v29 }
 0x493   :  { %7877 = vrcp.f32 %v692_v30 }
 0x49b   :  { %v7876_v31 = vpop.eup %7875 }
 0x49c   :  { %v811_v46 = vsub.f32 1.0, %v7876_v31  ;;  %v819_v49 = vmul.f32 %v7876_v31, %v817_v47 }
 0x49d   :  { %v7878_v37 = vpop.eup %7877 }
 0x49e   :  { %v705_v51 = vsub.f32 1.0, %v7878_v37  ;;  %v713_v55 = vmul.f32 %v7878_v37, %v711_v52 }
 0x4f2   :  { %v802_v32 = vpop.permute.xlu1 %801 }
 0x4f3   :  { %v804_v34 = vmul.f32 %v7876_v31, %v802_v32 }
 0x4f4   :  { %v696_v38 = vpop.permute.xlu0 %695 }
 0x4f5   :  { %v698_v39 = vmul.f32 %v7878_v37, %v696_v38  ;;  %806 = vrot.lane.b32.xlu1 %v804_v34, %s8321_s2 }
 0x4f7   :  { %700 = vrot.lane.b32.xlu0 %v698_v39, %s8321_s2 }
 0x567   :  { %v807_v40 = vpop.permute.xlu1 %806 }
 0x568   :  { %v809_v41 = vadd.f32 %v807_v40, %v8671_v35 }
 0x569   :  { %v701_v42 = vpop.permute.xlu0 %700 }
 0x56a   :  { %7879 = vtanh.f32 %v809_v41  ;;  %v703_v43 = vadd.f32 %v701_v42, %v8673_v36 }
 0x56c   :  { %7881 = vtanh.f32 %v703_v43 }
 0x574   :  { %v7880_v44 = vpop.eup %7879 }
 0x575   :  { %813 = vrot.lane.b32.xlu1 %v7880_v44, %s8322_s26 }
 0x576   :  { %v7882_v45 = vpop.eup %7881 }
 0x577   :  { %707 = vrot.lane.b32.xlu0 %v7882_v45, %s8322_s26 }
 0x5e7   :  { %v814_v48 = vpop.permute.xlu1 %813 }
 0x5e8   :  { %v816_v50 = vmul.f32 %v814_v48, %v811_v46 }
 0x5e9   :  { %v708_v53 = vpop.permute.xlu0 %707 }
 0x5ea   :  { %v8719_v54 = vadd.f32 %v819_v49, %v816_v50  ;;  %v710_v56 = vmul.f32 %v708_v53, %v705_v51 }
 0x5ec   :  { %v8721_v57 = vadd.f32 %v713_v55, %v710_v56  ;;  %v928_v58 = vrot.slane %v8719_v54, 4  ;;  %v1029_v41 = vrot.slane %v8719_v54, 2 }
 0x5ee   :  { %929 = vrot.lane.b32.xlu1 %v928_v58, %s8322_s26  ;;  %v822_v59 = vrot.slane %v8721_v57, 2  ;;  %v923_v46 = vrot.slane %v8721_v57, 6 }
 0x5f0   :  { %823 = vrot.lane.b32.xlu0 %v822_v59, %s8322_s26 }
 0x660   :  { %v930_v60 = vpop.permute.xlu1 %929 }
 0x661   :  { %7094 = vmatmul.mubr.msk.f32.vlgmr.msra.gmra.mrb[6].mxu1 %vm406_vm2, %v930_v60 }
 0x662   :  { %v824_v62 = vpop.permute.xlu0 %823  ;;  %7628 = vmatpush3.bf16.msra.mxu1 %v8615_v12  ;;  %7111 = vmatprep.mubr.msk.f32.mxu1 %vm8319_vm1, %v8318_v15 }
 0x663   :  { %7085 = vmatmul.mubr.msk.f32.vlgmr.msra.gmra.mrb[6].mxu0 %vm406_vm2, %v824_v62  ;;  %7109 = vmatprep.subr.mxu1 %v8318_v15 }
 0x664   :  { %7625 = vmatpush3.bf16.msra.mxu0 %v8618_v14  ;;  %7102 = vmatprep.mubr.msk.f32.mxu0 %vm8319_vm1, %v8318_v15 }
 0x665   :  { %7100 = vmatprep.subr.mxu0 %v8318_v15 }
 0x666   :  { %7110 = vmatpush3.msra.mxu1 %v8629_v16 }
 0x667   :  { %7632 = vmatprep.subr.bf16.mxu1 %v8317_v13 }
 0x668   :  { %7101 = vmatpush3.msra.mxu0 %v8637_v17 }
 0x669   :  { %7629 = vmatprep.subr.bf16.mxu0 %v8317_v13 }
 0x734   :  { %v999_v63 = vpop.f32.mrb[6].mxu1 }
 0x735   :  { %v1000_v0 = vadd.f32 %v8663_v26, %v999_v63  ;;  %v7095_v1 = vpop.f32.mrb[7].mxu1 }
 0x736   :  { %v893_v2 = vpop.f32.mrb[6].mxu0 }
 0x737   :  { %v1004_v4 = vrot.slane %v1000_v0, 6  ;;  %v894_v5 = vadd.f32 %v8666_v33, %v893_v2  ;;  %v7086_v6 = vpop.f32.mrb[7].mxu0 }
 0x739   :  { %v898_v7 = vrot.slane %v894_v5, 4  ;;  %1013 = vrot.lane.b32.xlu1 %v1004_v4, %s8320_s9  ;;  %v1006_v8 = vadd.f32 %v1004_v4, %v8671_v35 }
 0x73b   :  { %907 = vrot.lane.b32.xlu0 %v898_v7, %s8320_s9  ;;  %v900_v9 = vadd.f32 %v898_v7, %v8673_v36  ;;  %v6675_v10 = vmul.f32 -1.442695, %v1006_v8 }
 0x73d   :  { %v6673_v11 = vmul.f32 -1.442695, %v900_v9  ;;  %7883 = vpow2.f32 %v6675_v10 }
 0x73f   :  { %7885 = vpow2.f32 %v6673_v11 }
 0x747   :  { %v7884_v18 = vpop.eup %7883 }
 0x748   :  { %v1010_v20 = vadd.f32 1.0, %v7884_v18 }
 0x749   :  { %v7886_v19 = vpop.eup %7885 }
 0x74a   :  { %v904_v21 = vadd.f32 1.0, %v7886_v19  ;;  %7887 = vrcp.f32 %v1010_v20 }
 0x74c   :  { %7889 = vrcp.f32 %v904_v21 }
 0x754   :  { %v7888_v22 = vpop.eup %7887 }
 0x755   :  { %v1023_v40 = vsub.f32 1.0, %v7888_v22  ;;  %v1031_v43 = vmul.f32 %v7888_v22, %v1029_v41 }
 0x756   :  { %v7890_v28 = vpop.eup %7889 }
 0x757   :  { %v917_v45 = vsub.f32 1.0, %v7890_v28  ;;  %v925_v49 = vmul.f32 %v7890_v28, %v923_v46 }
 0x7ab   :  { %v1014_v25 = vpop.permute.xlu1 %1013 }
 0x7ac   :  { %v1016_v27 = vmul.f32 %v7888_v22, %v1014_v25 }
 0x7ad   :  { %v908_v29 = vpop.permute.xlu0 %907 }
 0x7ae   :  { %v910_v30 = vmul.f32 %v7890_v28, %v908_v29  ;;  %1018 = vrot.lane.b32.xlu1 %v1016_v27, %s8321_s2 }
 0x7b0   :  { %912 = vrot.lane.b32.xlu0 %v910_v30, %s8321_s2 }
 0x820   :  { %v1019_v31 = vpop.permute.xlu1 %1018 }
 0x821   :  { %v1021_v32 = vadd.f32 %v1019_v31, %v8671_v35 }
 0x822   :  { %v913_v34 = vpop.permute.xlu0 %912 }
 0x823   :  { %7891 = vtanh.f32 %v1021_v32  ;;  %v915_v37 = vadd.f32 %v913_v34, %v8673_v36 }
 0x825   :  { %7893 = vtanh.f32 %v915_v37 }
 0x82d   :  { %v7892_v38 = vpop.eup %7891 }
 0x82e   :  { %1025 = vrot.lane.b32.xlu1 %v7892_v38, %s8322_s26 }
 0x82f   :  { %v7894_v39 = vpop.eup %7893 }
 0x830   :  { %919 = vrot.lane.b32.xlu0 %v7894_v39, %s8322_s26 }
 0x8a0   :  { %v1026_v42 = vpop.permute.xlu1 %1025 }
 0x8a1   :  { %v1028_v44 = vmul.f32 %v1026_v42, %v1023_v40 }
 0x8a2   :  { %v920_v47 = vpop.permute.xlu0 %919 }
 0x8a3   :  { %v8755_v48 = vadd.f32 %v1031_v43, %v1028_v44  ;;  %v922_v50 = vmul.f32 %v920_v47, %v917_v45 }
 0x8a5   :  { %v8757_v51 = vadd.f32 %v925_v49, %v922_v50  ;;  %v1140_v52 = vrot.slane %v8755_v48, 2 }
 0x8a7   :  { %1141 = vrot.lane.b32.xlu1 %v1140_v52, %s8322_s26  ;;  %v1034_v53 = vrot.slane %v8757_v51, 4 }
 0x8a9   :  { %1035 = vrot.lane.b32.xlu0 %v1034_v53, %s8322_s26 }
 0x919   :  { %v1142_v55 = vpop.permute.xlu1 %1141 }
 0x91a   :  { %7112 = vmatmul.mubr.msk.f32.vlgmr.msra.gmra.mrb[8].mxu1 %vm406_vm2, %v1142_v55 }
 0x91b   :  { %v1036_v56 = vpop.permute.xlu0 %1035  ;;  %7634 = vmatpush3.bf16.msra.mxu1 %v8615_v12  ;;  %7129 = vmatprep.mubr.msk.f32.mxu1 %vm8319_vm1, %v8318_v15 }
 0x91c   :  { %7103 = vmatmul.mubr.msk.f32.vlgmr.msra.gmra.mrb[8].mxu0 %vm406_vm2, %v1036_v56  ;;  %7127 = vmatprep.subr.mxu1 %v8318_v15 }
 0x91d   :  { %7631 = vmatpush3.bf16.msra.mxu0 %v8618_v14  ;;  %7120 = vmatprep.mubr.msk.f32.mxu0 %vm8319_vm1, %v8318_v15 }
 0x91e   :  { %7118 = vmatprep.subr.mxu0 %v8318_v15 }
 0x91f   :  { %7128 = vmatpush3.msra.mxu1 %v8629_v16 }
 0x920   :  { %7638 = vmatprep.subr.bf16.mxu1 %v8317_v13 }
 0x921   :  { %7119 = vmatpush3.msra.mxu0 %v8637_v17 }
 0x922   :  { %7635 = vmatprep.subr.bf16.mxu0 %v8317_v13 }
 0x9ed   :  { %v1211_v58 = vpop.f32.mrb[8].mxu1 }
 0x9ee   :  { %v1212_v59 = vadd.f32 %v8663_v26, %v1211_v58  ;;  %v7113_v60 = vpop.f32.mrb[9].mxu1 }
 0x9ef   :  { %v1105_v62 = vpop.f32.mrb[8].mxu0 }
 0x9f0   :  { %v1106_v63 = vadd.f32 %v8666_v33, %v1105_v62  ;;  %1223 = vrot.lane.b32.xlu0 %v1212_v59, %s8320_s9  ;;  %v7104_v0 = vpop.f32.mrb[9].mxu0  ;;  %v1215_v2 = vadd.f32 %v1212_v59, %v8671_v35 }
 0x9f2   :  { %v1110_v1 = vrot.slane %v1106_v63, 2  ;;  %v6679_v4 = vmul.f32 -1.442695, %v1215_v2 }
 0x9f4   :  { %1119 = vrot.lane.b32.xlu1 %v1110_v1, %s8320_s9  ;;  %v1112_v5 = vadd.f32 %v1110_v1, %v8673_v36  ;;  %7895 = vpow2.f32 %v6679_v4 }
 0x9f6   :  { %v6677_v6 = vmul.f32 -1.442695, %v1112_v5 }
 0x9f8   :  { %7897 = vpow2.f32 %v6677_v6 }
 0x9fe   :  { %v7896_v7 = vpop.eup %7895 }
 0x9ff   :  { %v1219_v8 = vadd.f32 1.0, %v7896_v7 }
 0xa01   :  { %7899 = vrcp.f32 %v1219_v8 }
 0xa02   :  { %v7898_v9 = vpop.eup %7897 }
 0xa03   :  { %v1116_v10 = vadd.f32 1.0, %v7898_v9 }
 0xa05   :  { %7901 = vrcp.f32 %v1116_v10 }
 0xa0b   :  { %v7900_v11 = vpop.eup %7899 }
 0xa0c   :  { %v1233_v32 = vsub.f32 1.0, %v7900_v11  ;;  %v1240_v37 = vmul.f32 %v7900_v11, %v1140_v52 }
 0xa0f   :  { %v7902_v20 = vpop.eup %7901 }
 0xa10   :  { %v1129_v40 = vsub.f32 1.0, %v7902_v20 }
 0xa62   :  { %v1224_v18 = vpop.permute.xlu0 %1223 }
 0xa63   :  { %v1226_v19 = vmul.f32 %v7900_v11, %v1224_v18 }
 0xa65   :  { %1228 = vrot.lane.b32.xlu0 %v1226_v19, %s8321_s2 }
 0xa66   :  { %v1120_v21 = vpop.permute.xlu1 %1119 }
 0xa67   :  { %v1122_v22 = vmul.f32 %v7902_v20, %v1120_v21 }
 0xa69   :  { %1124 = vrot.lane.b32.xlu1 %v1122_v22, %s8321_s2 }
 0xad7   :  { %v1229_v25 = vpop.permute.xlu0 %1228 }
 0xad8   :  { %v1231_v27 = vadd.f32 %v1229_v25, %v8671_v35  ;;  %v1135_v35 = vrot.slane %v8757_v51, 6 }
 0xada   :  { %7903 = vtanh.f32 %v1231_v27  ;;  %v1137_v42 = vmul.f32 %v7902_v20, %v1135_v35 }
 0xadb   :  { %v1125_v28 = vpop.permute.xlu1 %1124 }
 0xadc   :  { %v1127_v29 = vadd.f32 %v1125_v28, %v8673_v36 }
 0xade   :  { %7905 = vtanh.f32 %v1127_v29 }
 0xae4   :  { %v7904_v30 = vpop.eup %7903 }
 0xae5   :  { %1235 = vrot.lane.b32.xlu0 %v7904_v30, %s8322_s26 }
 0xae8   :  { %v7906_v31 = vpop.eup %7905 }
 0xae9   :  { %1131 = vrot.lane.b32.xlu1 %v7906_v31, %s8322_s26 }
 0xb57   :  { %v1236_v34 = vpop.permute.xlu0 %1235 }
 0xb58   :  { %v1238_v38 = vmul.f32 %v1236_v34, %v1233_v32 }
 0xb5a   :  { %v8789_v39 = vadd.f32 %v1240_v37, %v1238_v38 }
 0xb5b   :  { %v1132_v41 = vpop.permute.xlu1 %1131 }
 0xb5c   :  { %v1134_v43 = vmul.f32 %v1132_v41, %v1129_v40  ;;  %1346 = vrot.lane.b32.xlu0 %v8789_v39, %s8322_s26  ;;  %v1446_v25 = vrot.slane %v8789_v39, 2 }
 0xb5e   :  { %v8794_v36 = vadd.f32 %v1137_v42, %v1134_v43 }
 0xb60   :  { %v1243_v44 = vrot.slane %v8794_v36, 6 }
 0xb62   :  { %1244 = vrot.lane.b32.xlu1 %v1243_v44, %s8322_s26 }
 0xbce   :  { %v1347_v45 = vpop.permute.xlu0 %1346 }
 0xbcf   :  { %7130 = vmatmul.mubr.msk.f32.vlgmr.msra.gmra.mrb[10].mxu1 %vm406_vm2, %v1347_v45 }
 0xbd0   :  { %7640 = vmatpush3.bf16.msra.mxu1 %v8615_v12  ;;  %7147 = vmatprep.mubr.msk.f32.mxu1 %vm8319_vm1, %v8318_v15 }
 0xbd1   :  { %7145 = vmatprep.subr.mxu1 %v8318_v15 }
 0xbd4   :  { %v1245_v46 = vpop.permute.xlu1 %1244  ;;  %7146 = vmatpush3.msra.mxu1 %v8629_v16 }
 0xbd5   :  { %7121 = vmatmul.mubr.msk.f32.vlgmr.msra.gmra.mrb[10].mxu0 %vm406_vm2, %v1245_v46  ;;  %7644 = vmatprep.subr.bf16.mxu1 %v8317_v13 }
 0xbd6   :  { %7637 = vmatpush3.bf16.msra.mxu0 %v8618_v14  ;;  %7138 = vmatprep.mubr.msk.f32.mxu0 %vm8319_vm1, %v8318_v15 }
 0xbd7   :  { %7136 = vmatprep.subr.mxu0 %v8318_v15 }
 0xbda   :  { %7137 = vmatpush3.msra.mxu0 %v8637_v17 }
 0xbdb   :  { %7641 = vmatprep.subr.bf16.mxu0 %v8317_v13 }
 0xca2   :  { %v1416_v47 = vpop.f32.mrb[10].mxu1 }
 0xca3   :  { %v1417_v49 = vadd.f32 %v8663_v26, %v1416_v47  ;;  %v7131_v50 = vpop.f32.mrb[11].mxu1 }
 0xca5   :  { %v1421_v52 = vrot.slane %v1417_v49, 2 }
 0xca7   :  { %1430 = vrot.lane.b32.xlu0 %v1421_v52, %s8320_s9  ;;  %v1423_v58 = vadd.f32 %v1421_v52, %v8659_v23 }
 0xca8   :  { %v1314_v53 = vpop.f32.mrb[10].mxu0 }
 0xca9   :  { %v1315_v55 = vadd.f32 %v8666_v33, %v1314_v53  ;;  %v7122_v56 = vpop.f32.mrb[11].mxu0  ;;  %v6683_v59 = vmul.f32 -1.442695, %v1423_v58 }
 0xcab   :  { %1326 = vrot.lane.b32.xlu1 %v1315_v55, %s8320_s9  ;;  %v1318_v60 = vadd.f32 %v1315_v55, %v8661_v24  ;;  %7907 = vpow2.f32 %v6683_v59 }
 0xcad   :  { %v6681_v62 = vmul.f32 -1.442695, %v1318_v60 }
 0xcaf   :  { %7909 = vpow2.f32 %v6681_v62 }
 0xcb5   :  { %v7908_v63 = vpop.eup %7907 }
 0xcb6   :  { %v1427_v0 = vadd.f32 1.0, %v7908_v63 }
 0xcb8   :  { %7911 = vrcp.f32 %v1427_v0 }
 0xcb9   :  { %v7910_v1 = vpop.eup %7909 }
 0xcba   :  { %v1322_v2 = vadd.f32 1.0, %v7910_v1 }
 0xcbc   :  { %7913 = vrcp.f32 %v1322_v2 }
 0xcc2   :  { %v7912_v4 = vpop.eup %7911 }
 0xcc3   :  { %v1440_v22 = vsub.f32 1.0, %v7912_v4  ;;  %v1448_v29 = vmul.f32 %v7912_v4, %v1446_v25 }
 0xcc6   :  { %v7914_v7 = vpop.eup %7913 }
 0xcc7   :  { %v1336_v31 = vsub.f32 1.0, %v7914_v7  ;;  %v1343_v34 = vmul.f32 %v7914_v7, %v1243_v44 }
 0xd19   :  { %v1431_v5 = vpop.permute.xlu0 %1430 }
 0xd1a   :  { %v1433_v6 = vmul.f32 %v7912_v4, %v1431_v5 }
 0xd1c   :  { %1435 = vrot.lane.b32.xlu0 %v1433_v6, %s8321_s2 }
 0xd1d   :  { %v1327_v8 = vpop.permute.xlu1 %1326 }
 0xd1e   :  { %v1329_v9 = vmul.f32 %v7914_v7, %v1327_v8 }
 0xd20   :  { %1331 = vrot.lane.b32.xlu1 %v1329_v9, %s8321_s2 }
 0xd8e   :  { %v1436_v10 = vpop.permute.xlu0 %1435 }
 0xd8f   :  { %v1438_v11 = vadd.f32 %v1436_v10, %v8659_v23 }
 0xd91   :  { %7915 = vtanh.f32 %v1438_v11 }
 0xd92   :  { %v1332_v18 = vpop.permute.xlu1 %1331 }
 0xd93   :  { %v1334_v19 = vadd.f32 %v1332_v18, %v8661_v24 }
 0xd95   :  { %7917 = vtanh.f32 %v1334_v19 }
 0xd9b   :  { %v7916_v20 = vpop.eup %7915 }
 0xd9c   :  { %1442 = vrot.lane.b32.xlu0 %v7916_v20, %s8322_s26 }
 0xd9f   :  { %v7918_v21 = vpop.eup %7917 }
 0xda0   :  { %1338 = vrot.lane.b32.xlu1 %v7918_v21, %s8322_s26 }
 0xe0e   :  { %v1443_v27 = vpop.permute.xlu0 %1442 }
 0xe0f   :  { %v1445_v28 = vmul.f32 %v1443_v27, %v1440_v22 }
 0xe11   :  { %v8827_v30 = vadd.f32 %v1448_v29, %v1445_v28 }
 0xe12   :  { %v1339_v32 = vpop.permute.xlu1 %1338 }
 0xe13   :  { %v1341_v37 = vmul.f32 %v1339_v32, %v1336_v31  ;;  %v1556_v38 = vrot.slane %v8827_v30, 6  ;;  %v1657_v19 = vrot.slane %v8827_v30, 2 }
 0xe15   :  { %v8832_v40 = vadd.f32 %v1343_v34, %v1341_v37  ;;  %1557 = vrot.lane.b32.xlu1 %v1556_v38, %s8322_s26 }
 0xe17   :  { %1451 = vrot.lane.b32.xlu0 %v8832_v40, %s8322_s26  ;;  %v1551_v27 = vrot.slane %v8832_v40, 6 }
 0xe87   :  { %v1558_v35 = vpop.permute.xlu1 %1557 }
 0xe88   :  { %7148 = vmatmul.mubr.msk.f32.vlgmr.msra.gmra.mrb[12].mxu1 %vm406_vm2, %v1558_v35 }
 0xe89   :  { %v1452_v41 = vpop.permute.xlu0 %1451  ;;  %7646 = vmatpush3.bf16.msra.mxu1 %v8615_v12  ;;  %7165 = vmatprep.mubr.msk.f32.mxu1 %vm8319_vm1, %v8318_v15 }
 0xe8a   :  { %7139 = vmatmul.mubr.msk.f32.vlgmr.msra.gmra.mrb[12].mxu0 %vm406_vm2, %v1452_v41  ;;  %7163 = vmatprep.subr.mxu1 %v8318_v15 }
 0xe8b   :  { %7643 = vmatpush3.bf16.msra.mxu0 %v8618_v14  ;;  %7156 = vmatprep.mubr.msk.f32.mxu0 %vm8319_vm1, %v8318_v15 }
 0xe8c   :  { %7154 = vmatprep.subr.mxu0 %v8318_v15 }
 0xe8d   :  { %7164 = vmatpush3.msra.mxu1 %v8629_v16 }
 0xe8e   :  { %7650 = vmatprep.subr.bf16.mxu1 %v8317_v13 }
 0xe8f   :  { %7155 = vmatpush3.msra.mxu0 %v8637_v17 }
 0xe90   :  { %7647 = vmatprep.subr.bf16.mxu0 %v8317_v13 }
 0xf5b   :  { %v1627_v42 = vpop.f32.mrb[12].mxu1 }
 0xf5c   :  { %v1628_v43 = vadd.f32 %v8663_v26, %v1627_v42  ;;  %v7149_v44 = vpop.f32.mrb[13].mxu1 }
 0xf5d   :  { %v1521_v45 = vpop.f32.mrb[12].mxu0 }
 0xf5e   :  { %v1632_v46 = vrot.slane %v1628_v43, 4  ;;  %v1522_v47 = vadd.f32 %v8666_v33, %v1521_v45  ;;  %v7140_v49 = vpop.f32.mrb[13].mxu0 }
 0xf60   :  { %v1526_v50 = vrot.slane %v1522_v47, 6  ;;  %1641 = vrot.lane.b32.xlu1 %v1632_v46, %s8320_s9  ;;  %v1634_v52 = vadd.f32 %v1632_v46, %v8659_v23 }
 0xf62   :  { %1535 = vrot.lane.b32.xlu0 %v1526_v50, %s8320_s9  ;;  %v1528_v53 = vadd.f32 %v1526_v50, %v8661_v24  ;;  %v6687_v55 = vmul.f32 -1.442695, %v1634_v52 }
 0xf64   :  { %v6685_v56 = vmul.f32 -1.442695, %v1528_v53  ;;  %7919 = vpow2.f32 %v6687_v55 }
 0xf66   :  { %7921 = vpow2.f32 %v6685_v56 }
 0xf6e   :  { %v7920_v58 = vpop.eup %7919 }
 0xf6f   :  { %v1638_v60 = vadd.f32 1.0, %v7920_v58 }
 0xf70   :  { %v7922_v59 = vpop.eup %7921 }
 0xf71   :  { %v1532_v62 = vadd.f32 1.0, %v7922_v59  ;;  %7923 = vrcp.f32 %v1638_v60 }
 0xf73   :  { %7925 = vrcp.f32 %v1532_v62 }
 0xf7b   :  { %v7924_v63 = vpop.eup %7923 }
 0xf7c   :  { %v1651_v18 = vsub.f32 1.0, %v7924_v63  ;;  %v1659_v21 = vmul.f32 %v7924_v63, %v1657_v19 }
 0xf7d   :  { %v7926_v2 = vpop.eup %7925 }
 0xf7e   :  { %v1545_v25 = vsub.f32 1.0, %v7926_v2  ;;  %v1553_v31 = vmul.f32 %v7926_v2, %v1551_v27 }
 0xfd2   :  { %v1642_v0 = vpop.permute.xlu1 %1641 }
 0xfd3   :  { %v1644_v1 = vmul.f32 %v7924_v63, %v1642_v0 }
 0xfd4   :  { %v1536_v4 = vpop.permute.xlu0 %1535 }
 0xfd5   :  { %v1538_v5 = vmul.f32 %v7926_v2, %v1536_v4  ;;  %1646 = vrot.lane.b32.xlu1 %v1644_v1, %s8321_s2 }
 0xfd7   :  { %1540 = vrot.lane.b32.xlu0 %v1538_v5, %s8321_s2 }
0x1047   :  { %v1647_v6 = vpop.permute.xlu1 %1646 }
0x1048   :  { %v1649_v7 = vadd.f32 %v1647_v6, %v8659_v23 }
0x1049   :  { %v1541_v8 = vpop.permute.xlu0 %1540 }
0x104a   :  { %7927 = vtanh.f32 %v1649_v7  ;;  %v1543_v9 = vadd.f32 %v1541_v8, %v8661_v24 }
0x104c   :  { %7929 = vtanh.f32 %v1543_v9 }
0x1054   :  { %v7928_v10 = vpop.eup %7927 }
0x1055   :  { %1653 = vrot.lane.b32.xlu1 %v7928_v10, %s8322_s26 }
0x1056   :  { %v7930_v11 = vpop.eup %7929 }
0x1057   :  { %1547 = vrot.lane.b32.xlu0 %v7930_v11, %s8322_s26 }
0x10c7   :  { %v1654_v20 = vpop.permute.xlu1 %1653 }
0x10c8   :  { %v1656_v22 = vmul.f32 %v1654_v20, %v1651_v18 }
0x10c9   :  { %v1548_v28 = vpop.permute.xlu0 %1547 }
0x10ca   :  { %v8865_v29 = vadd.f32 %v1659_v21, %v1656_v22  ;;  %v1550_v32 = vmul.f32 %v1548_v28, %v1545_v25 }
0x10cc   :  { %v8867_v34 = vadd.f32 %v1553_v31, %v1550_v32  ;;  %v1768_v37 = vrot.slane %v8865_v29, 4  ;;  %v1869_v9 = vrot.slane %v8865_v29, 2 }
0x10ce   :  { %1769 = vrot.lane.b32.xlu1 %v1768_v37, %s8322_s26  ;;  %v1662_v38 = vrot.slane %v8867_v34, 2  ;;  %v1763_v20 = vrot.slane %v8867_v34, 6 }
0x10d0   :  { %1663 = vrot.lane.b32.xlu0 %v1662_v38, %s8322_s26 }
0x1140   :  { %v1770_v35 = vpop.permute.xlu1 %1769 }
0x1141   :  { %7166 = vmatmul.mubr.msk.f32.vlgmr.msra.gmra.mrb[14].mxu1 %vm406_vm2, %v1770_v35 }
0x1142   :  { %v1664_v41 = vpop.permute.xlu0 %1663  ;;  %7652 = vmatpush3.bf16.msra.mxu1 %v8615_v12  ;;  %7183 = vmatprep.mubr.msk.f32.mxu1 %vm8319_vm1, %v8318_v15 }
0x1143   :  { %7157 = vmatmul.mubr.msk.f32.vlgmr.msra.gmra.mrb[14].mxu0 %vm406_vm2, %v1664_v41  ;;  %7181 = vmatprep.subr.mxu1 %v8318_v15 }
0x1144   :  { %7649 = vmatpush3.bf16.msra.mxu0 %v8618_v14  ;;  %7174 = vmatprep.mubr.msk.f32.mxu0 %vm8319_vm1, %v8318_v15 }
0x1145   :  { %7172 = vmatprep.subr.mxu0 %v8318_v15 }
0x1146   :  { %7182 = vmatpush3.msra.mxu1 %v8629_v16 }
0x1147   :  { %7197 = vmatprep.subr.mxu1 %v8318_v15 }
0x1148   :  { %7173 = vmatpush3.msra.mxu0 %v8637_v17 }
0x1149   :  { %7653 = vmatprep.subr.bf16.mxu0 %v8317_v13 }
0x1214   :  { %v1839_v12 = vpop.f32.mrb[14].mxu1 }
0x1215   :  { %v1840_v42 = vadd.f32 %v8663_v26, %v1839_v12  ;;  %v7167_v43 = vpop.f32.mrb[15].mxu1 }
0x1216   :  { %v1733_v44 = vpop.f32.mrb[14].mxu0 }
0x1217   :  { %v1844_v45 = vrot.slane %v1840_v42, 6  ;;  %v1734_v14 = vadd.f32 %v8666_v33, %v1733_v44  ;;  %v7158_v46 = vpop.f32.mrb[15].mxu0 }
0x1219   :  { %v1738_v47 = vrot.slane %v1734_v14, 4  ;;  %1853 = vrot.lane.b32.xlu1 %v1844_v45, %s8320_s9  ;;  %v1846_v16 = vadd.f32 %v1844_v45, %v8659_v23 }
0x121b   :  { %1747 = vrot.lane.b32.xlu0 %v1738_v47, %s8320_s9  ;;  %v1740_v17 = vadd.f32 %v1738_v47, %v8661_v24  ;;  %v6691_v49 = vmul.f32 -1.442695, %v1846_v16 }
0x121d   :  { %v6689_v50 = vmul.f32 -1.442695, %v1740_v17  ;;  %7931 = vpow2.f32 %v6691_v49 }
0x121f   :  { %7933 = vpow2.f32 %v6689_v50 }
0x1227   :  { %v7932_v52 = vpop.eup %7931 }
0x1228   :  { %v1850_v55 = vadd.f32 1.0, %v7932_v52 }
0x1229   :  { %v7934_v53 = vpop.eup %7933 }
0x122a   :  { %v1744_v56 = vadd.f32 1.0, %v7934_v53  ;;  %7935 = vrcp.f32 %v1850_v55 }
0x122c   :  { %7937 = vrcp.f32 %v1744_v56 }
0x1234   :  { %v7936_v58 = vpop.eup %7935 }
0x1235   :  { %v1863_v8 = vsub.f32 1.0, %v7936_v58  ;;  %v1871_v11 = vmul.f32 %v7936_v58, %v1869_v9 }
0x1236   :  { %v7938_v62 = vpop.eup %7937 }
0x1237   :  { %v1757_v19 = vsub.f32 1.0, %v7938_v62  ;;  %v1765_v25 = vmul.f32 %v7938_v62, %v1763_v20 }
0x128b   :  { %v1854_v59 = vpop.permute.xlu1 %1853 }
0x128c   :  { %v1856_v60 = vmul.f32 %v7936_v58, %v1854_v59 }
0x128d   :  { %v1748_v63 = vpop.permute.xlu0 %1747 }
0x128e   :  { %v1750_v0 = vmul.f32 %v7938_v62, %v1748_v63  ;;  %1858 = vrot.lane.b32.xlu1 %v1856_v60, %s8321_s2 }
0x1290   :  { %1752 = vrot.lane.b32.xlu0 %v1750_v0, %s8321_s2 }
0x1300   :  { %v1859_v1 = vpop.permute.xlu1 %1858 }
0x1301   :  { %v1861_v2 = vadd.f32 %v1859_v1, %v8659_v23  ;;  %v2092_v1 = vld [vmem:[%s9870_s7] sm:$0xff] }
0x1302   :  { %v1753_v4 = vpop.permute.xlu0 %1752 }
0x1303   :  { %7939 = vtanh.f32 %v1861_v2  ;;  %v1755_v5 = vadd.f32 %v1753_v4, %v8661_v24  ;;  %v2093_v2 = vld [vmem:[%s9870_s7 + $0x8] sm:$0xff] }
0x1304   :  { %v7654_v4 = vpack.c.bf16 %v2093_v2, %v2092_v1  ;;  %v204_v1 = vld [vmem:[%s9828_s13 + $0x8] sm:$0xff] }
0x1305   :  { %7941 = vtanh.f32 %v1755_v5 }
0x130d   :  { %v7940_v6 = vpop.eup %7939 }
0x130e   :  { %1865 = vrot.lane.b32.xlu1 %v7940_v6, %s8322_s26 }
0x130f   :  { %v7942_v7 = vpop.eup %7941 }
0x1310   :  { %1759 = vrot.lane.b32.xlu0 %v7942_v7, %s8322_s26 }
0x1380   :  { %v1866_v10 = vpop.permute.xlu1 %1865 }
0x1381   :  { %v1868_v18 = vmul.f32 %v1866_v10, %v1863_v8 }
0x1382   :  { %v1760_v21 = vpop.permute.xlu0 %1759 }
0x1383   :  { %v8901_v22 = vadd.f32 %v1871_v11, %v1868_v18  ;;  %v1762_v27 = vmul.f32 %v1760_v21, %v1757_v19 }
0x1385   :  { %v8903_v28 = vadd.f32 %v1765_v25, %v1762_v27  ;;  %v1980_v31 = vrot.slane %v8901_v22, 2 }
0x1387   :  { %1981 = vrot.lane.b32.xlu1 %v1980_v31, %s8322_s26  ;;  %v1874_v32 = vrot.slane %v8903_v28, 4  ;;  %v1975_v19 = vrot.slane %v8903_v28, 6 }
0x1389   :  { %1875 = vrot.lane.b32.xlu0 %v1874_v32, %s8322_s26 }
0x13f9   :  { %v1982_v37 = vpop.permute.xlu1 %1981 }
0x13fa   :  { %7184 = vmatmul.mubr.msk.f32.vlgmr.msra.gmra.mrb[16].mxu1 %vm406_vm2, %v1982_v37 }
0x13fb   :  { %v1876_v38 = vpop.permute.xlu0 %1875  ;;  %7199 = vmatprep.mubr.msk.f32.mxu1 %vm8319_vm1, %v8318_v15 }
0x13fc   :  { %7175 = vmatmul.mubr.msk.f32.vlgmr.msra.gmra.mrb[16].mxu0 %vm406_vm2, %v1876_v38 }
0x13fd   :  { %7194 = vmatprep.mubr.msk.f32.mxu0 %vm8319_vm1, %v8318_v15  ;;  %7655 = vmatpush3.bf16.msra.mxu0 %v7654_v4 }
0x13fe   :  { %7656 = vmatprep.subr.bf16.mxu0 %v8317_v13 }
0x14cd   :  { %v2051_v35 = vpop.f32.mrb[16].mxu1 }
0x14ce   :  { %v2052_v41 = vadd.f32 %v8663_v26, %v2051_v35  ;;  %v7185_v12 = vpop.f32.mrb[17].mxu1 }
0x14cf   :  { %v1945_v42 = vpop.f32.mrb[16].mxu0  ;;  %v218_v12 = vld [vmem:[%s9837_s22] sm:$0xff] }
0x14d0   :  { %v1946_v43 = vadd.f32 %v8666_v33, %v1945_v42  ;;  %2063 = vrot.lane.b32.xlu0 %v2052_v41, %s8320_s9  ;;  %v7176_v44 = vpop.f32.mrb[17].mxu0  ;;  %v2055_v14 = vadd.f32 %v2052_v41, %v8659_v23  ;;  %v2181_v41 = vld [vmem:[#allocation10] sm:$0xff]  ;;  %v6696_v42 = vld [vmem:[#allocation9] ss:$0 sm:$0xff] }
0x14d1   :  { %7198 = vmatpush3.msra.mxu1 %v2181_v41 }
0x14d2   :  { %v1950_v45 = vrot.slane %v1946_v43, 2  ;;  %v6695_v46 = vmul.f32 -1.442695, %v2055_v14  ;;  %7659 = vmatprep.subr.bf16.mxu1 %v8317_v13 }
0x14d4   :  { %1959 = vrot.lane.b32.xlu1 %v1950_v45, %s8320_s9  ;;  %v1952_v47 = vadd.f32 %v1950_v45, %v8661_v24  ;;  %7943 = vpow2.f32 %v6695_v46  ;;  %v220_v46 = vld [vmem:[%s9837_s22 + $0x10] sm:$0xff]  ;;  %s8326_s9 = smov 32  }
0x14d6   :  { %v6693_v16 = vmul.f32 -1.442695, %v1952_v47  ;;  %v221_v47 = vld [vmem:[%s9837_s22 + $0x18] sm:$0xff] }
0x14d8   :  { %7945 = vpow2.f32 %v6693_v16  ;;  %v8973_v16 = vpack.c.bf16 %v221_v47, %v220_v46  ;;  %v210_v47 = vld [vmem:[%s9833_s18] sm:$0xff] }
0x14de   :  { %v7944_v17 = vpop.eup %7943 }
0x14df   :  { %v2059_v26 = vadd.f32 1.0, %v7944_v17  ;;  %v8980_v17 = vld [vmem:[#allocation13] sm:$0xff] }
0x14e1   :  { %7947 = vrcp.f32 %v2059_v26  ;;  %v206_v26 = vld [vmem:[%s9830_s15] sm:$0xff] }
0x14e2   :  { %v7946_v49 = vpop.eup %7945 }
0x14e3   :  { %v1956_v50 = vadd.f32 1.0, %v7946_v49  ;;  %v207_v49 = vld [vmem:[%s9830_s15 + $0x8] sm:$0xff]  ;;  %s8331_s15 = smov 40  }
0x14e5   :  { %7949 = vrcp.f32 %v1956_v50  ;;  %v6698_v50 = vld [vmem:[#allocation12] ss:$0 sm:$0xff] }
0x14eb   :  { %v7948_v33 = vpop.eup %7947 }
0x14ec   :  { %v2073_v7 = vsub.f32 1.0, %v7948_v33  ;;  %v2080_v9 = vmul.f32 %v7948_v33, %v1980_v31 }
0x14ef   :  { %v7950_v55 = vpop.eup %7949 }
0x14f0   :  { %v1969_v18 = vsub.f32 1.0, %v7950_v55  ;;  %v1977_v21 = vmul.f32 %v7950_v55, %v1975_v19 }
0x1542   :  { %v2064_v52 = vpop.permute.xlu0 %2063 }
0x1543   :  { %v2066_v53 = vmul.f32 %v7948_v33, %v2064_v52  ;;  %v8990_v52 = vpack.c.bf16 %v207_v49, %v206_v26  ;;  %v211_v26 = vld [vmem:[%s9833_s18 + $0x8] sm:$0xff]  ;;  %s8329_s18 = smov 72  }
0x1544   :  { %v9069_v49 = vpack.c.bf16 %v211_v26, %v210_v47 }
0x1545   :  { %2068 = vrot.lane.b32.xlu0 %v2066_v53, %s8321_s2 }
0x1546   :  { %v1960_v56 = vpop.permute.xlu1 %1959 }
0x1547   :  { %v1962_v58 = vmul.f32 %v7950_v55, %v1960_v56  ;;  %v213_v56 = vld [vmem:[%s9835_s20] sm:$0xff] }
0x1549   :  { %1964 = vrot.lane.b32.xlu1 %v1962_v58, %s8321_s2  ;;  %v214_v58 = vld [vmem:[%s9835_s20 + $0x8] sm:$0xff] }
0x15b7   :  { %v2069_v59 = vpop.permute.xlu0 %2068 }
0x15b8   :  { %v2071_v60 = vadd.f32 %v2069_v59, %v8659_v23  ;;  %v2094_v23 = vld [vmem:[%s9870_s7 + $0x10] sm:$0xff]  ;;  %v9005_v59 = vpack.c.bf16 %v214_v58, %v213_v56 }
0x15ba   :  { %7951 = vtanh.f32 %v2071_v60  ;;  %v215_v60 = vld [vmem:[%s9835_s20 + $0x10] sm:$0xff] }
0x15bb   :  { %v1965_v62 = vpop.permute.xlu1 %1964 }
0x15bc   :  { %v1967_v63 = vadd.f32 %v1965_v62, %v8661_v24  ;;  %v2095_v24 = vld [vmem:[%s9870_s7 + $0x18] sm:$0xff]  ;;  %s8327_s7 = smov 112  }
0x15bd   :  { %v7657_v6 = vpack.c.bf16 %v2095_v24, %v2094_v23  ;;  %v216_v62 = vld [vmem:[%s9835_s20 + $0x18] sm:$0xff]  ;;  %v9044_v24 = vld [vmem:[%s9832_s17] ss:$0 sm:$0xff] }
0x15be   :  { %7953 = vtanh.f32 %v1967_v63  ;;  %v9016_v63 = vpack.c.bf16 %v216_v62, %v215_v60 }
0x15bf   :  { %7658 = vmatpush3.bf16.msra.mxu0 %v7657_v6 }
0x15c0   :  { %7213 = vmatprep.subr.mxu0 %v8318_v15 }
0x15c4   :  { %v7952_v0 = vpop.eup %7951 }
0x15c5   :  { %2075 = vrot.lane.b32.xlu0 %v7952_v0, %s8322_s26  ;;  %v203_v0 = vld [vmem:[%s9828_s13] sm:$0xff] }
0x15c6   :  { %v9035_v2 = vpack.c.bf16 %v204_v1, %v203_v0 }
0x15c8   :  { %v7954_v5 = vpop.eup %7953 }
0x15c9   :  { %1971 = vrot.lane.b32.xlu1 %v7954_v5, %s8322_s26 }
0x1637   :  { %v2076_v8 = vpop.permute.xlu0 %2075 }
0x1638   :  { %v2078_v10 = vmul.f32 %v2076_v8, %v2073_v7 }
0x163a   :  { %v2081_v11 = vadd.f32 %v2080_v9, %v2078_v10 }
0x163b   :  { %v1972_v20 = vpop.permute.xlu1 %1971 }
0x163c   :  { %v1974_v25 = vmul.f32 %v1972_v20, %v1969_v18  ;;  %v2087_v27 = vrot.slane %v2081_v11, 2 }
0x163e   :  { %v8942_v32 = vadd.f32 %v1977_v21, %v1974_v25  ;;  %2088 = vrot.lane.b32.xlu1 %v2087_v27, %s8323_s27  ;;  %v9059_v21 = vld [vmem:[%s9831_s16] ss:$0 sm:$0xff] }
0x1640   :  { %2083 = vrot.lane.b32.xlu0 %v8942_v32, %s8322_s26 }
0x1642   :  { %2339 = vrot.lane.b32.xlu1 %v2081_v11, %s8324_s0 }
0x1644   :  { %2336 = vrot.lane.b32.xlu0 %v8686_v3, %s8325_s14  ;;  %v219_v3 = vld [vmem:[%s9837_s22 + $0x8] sm:$0xff] }
0x1645   :  { %v8960_v44 = vpack.c.bf16 %v219_v3, %v218_v12 }
0x16b0   :  { %v2089_v31 = vpop.permute.xlu1 %2088 }
0x16b2   :  { %v2084_v37 = vpop.permute.xlu0 %2083 }
0x16b3   :  { %v2091_v38 = vsel %vm234_vm0, %v2084_v37, %v2089_v31 }
0x16b4   :  { %v2104_v35 = vrot.slane %v2091_v38, 6  ;;  %v2340_v6 = vpop.permute.xlu1 %2339 }
0x16b6   :  { %7195 = vmatmul.mubr.msk.f32.vlgmr.msra.gmra.mrb[18].mxu0 %vm2105_vm3, %v2104_v35  ;;  %v2337_v5 = vpop.permute.xlu0 %2336 }
0x16b7   :  { %7215 = vmatprep.mubr.msk.f32.mxu0 %vm8319_vm1, %v8318_v15  ;;  %7214 = vmatpush3.msra.mxu0 %v8980_v17  ;;  %v9048_v7 = vsel %vm2189_vm4, %v2337_v5, %v2340_v6 }
0x16b8   :  { %7665 = vmatprep.subr.bf16.mxu0 %v8317_v13 }
0x1789   :  { %v2174_v43 = vpop.f32.mrb[18].mxu0 }
0x178a   :  { %v8962_v45 = vadd.f32 %v6696_v42, %v2174_v43  ;;  %v7196_v14 = vpop.f32.mrb[19].mxu0 }
0x178c   :  { %7200 = vmatmul.mubr.msk.f32.vlgmr.msra.gmra.mrb[18].mxu1 %vm2189_vm4, %v8962_v45 }
0x178d   :  { %7661 = vmatpush3.bf16.msra.mxu1 %v8960_v44  ;;  %7210 = vmatprep.mubr.msk.f32.mxu1 %vm8319_vm1, %v8318_v15 }
0x178e   :  { %7662 = vmatprep.subr.bf16.mxu1 %v8317_v13 }
0x1791   :  { %7664 = vmatpush3.bf16.msra.mxu1 %v8973_v16 }
0x1792   :  { %7668 = vmatprep.subr.bf16.mxu1 %v8317_v13 }
0x185f   :  { %v2259_v33 = vpop.f32.mrb[18].mxu1 }
0x1860   :  { %v8992_v53 = vadd.f32 %v6698_v50, %v2259_v33  ;;  %v7201_v55 = vpop.f32.mrb[19].mxu1  ;;  %v9072_v33 = vld [vmem:[#allocation15] ss:$0 sm:$0xff] }
0x1862   :  { %7211 = vmatmul.mubr.msk.f32.vlgmr.msra.gmra.mrb[20].mxu1 %vm2105_vm3, %v8992_v53 }
0x1863   :  { %7670 = vmatpush3.bf16.msra.mxu1 %v8990_v52  ;;  %7229 = vmatprep.mubr.msk.f32.mxu1 %vm8319_vm1, %v8318_v15 }
0x1864   :  { %7674 = vmatprep.subr.bf16.mxu1 %v8317_v13 }
0x1866   :  { %7230 = vmatmul.mubr.f32.vlgmr.msra.gmra.mrb[22].mxu1 %v8318_v15 }
0x1867   :  { %7676 = vmatpush3.bf16.msra.mxu1 %v9005_v59  ;;  %7247 = vmatprep.mubr.msk.f32.mxu1 %vm8319_vm1, %v8318_v15 }
0x1868   :  { %7677 = vmatprep.subr.bf16.mxu1 %v8317_v13 }
0x186b   :  { %7679 = vmatpush3.bf16.msra.mxu1 %v9016_v63 }
0x186c   :  { %7261 = vmatprep.subr.mxu1 %v8318_v15 }
0x186e   :  { %7248 = vmatmul.mubr.msk.f32.vlgmr.msra.gmra.mrb[24].mxu1 %vm2105_vm3, %v8992_v53 }
0x186f   :  { %7262 = vmatpush3.msra.mxu1 %v8980_v17  ;;  %7263 = vmatprep.mubr.msk.f32.mxu1 %vm8319_vm1, %v8318_v15 }
0x1870   :  { %7689 = vmatprep.subr.bf16.mxu1 %v8317_v13 }
0x1935   :  { %v2332_v4 = vpop.f32.mrb[20].mxu1 }
0x1936   :  { %v7212_v23 = vpop.f32.mrb[21].mxu1  ;;  %7216 = vmatmul.mubr.msk.f32.vlgmr.msra.gmra.mrb[20].mxu0 %vm2189_vm4, %v2332_v4  ;;  %v9093_v4 = vld [vmem:[%s9834_s19] ss:$0 sm:$0xff] }
0x1937   :  { %7667 = vmatpush3.bf16.msra.mxu0 %v9035_v2  ;;  %7222 = vmatprep.mubr.msk.f32.mxu0 %vm8319_vm1, %v8318_v15 }
0x1938   :  { %7671 = vmatprep.subr.bf16.mxu0 %v8317_v13 }
0x1939   :  { %v2570_v8 = vpop.f32.mrb[22].mxu1 }
0x193a   :  { %7223 = vmatmul.mubr.msk.f32.vlgmr.msra.gmra.mrb[22].mxu0 %vm234_vm0, %v9048_v7  ;;  %v2571_v9 = vadd.f32 %v9044_v24, %v2570_v8  ;;  %v7231_v10 = vpop.f32.mrb[23].mxu1 }
0x193b   :  { %7236 = vmatprep.mubr.msk.f32.mxu0 %vm8319_vm1, %v8318_v15  ;;  %7673 = vmatpush3.bf16.msra.mxu0 %v9069_v49 }
0x193c   :  { %2582 = vrot.lane.b32.xlu0 %v2571_v9, %s8324_s0  ;;  %7680 = vmatprep.subr.bf16.mxu0 %v8317_v13 }
0x1941   :  { %v2756_v11 = vpop.f32.mrb[24].mxu1 }
0x1942   :  { %v7249_v18 = vpop.f32.mrb[25].mxu1  ;;  %v2757_v55 = vadd.f32 %v9072_v33, %v2756_v11 }
0x19ae   :  { %v2583_v3 = vpop.permute.xlu0 %2582 }
0x1a09   :  { %v2412_v19 = vpop.f32.mrb[20].mxu0 }
0x1a0a   :  { %v7217_v20 = vpop.f32.mrb[21].mxu0 }
0x1a0d   :  { %v2485_v25 = vpop.f32.mrb[22].mxu0 }
0x1a0e   :  { %v2486_v27 = vadd.f32 %v2485_v25, %v2412_v19  ;;  %v7224_v31 = vpop.f32.mrb[23].mxu0 }
0x1a10   :  { %v2495_v37 = vadd.f32 %v9059_v21, %v2486_v27 }
0x1a12   :  { %v2574_v38 = vadd.f32 %v2571_v9, %v2495_v37 }
0x1a14   :  { %v6705_v35 = vmul.f32 -1.442695, %v2574_v38 }
0x1a16   :  { %7955 = vpow2.f32 %v6705_v35 }
0x1a20   :  { %v7956_v41 = vpop.eup %7955 }
0x1a21   :  { %v2578_v12 = vadd.f32 1.0, %v7956_v41 }
0x1a23   :  { %7957 = vrcp.f32 %v2578_v12 }
0x1a2d   :  { %v7958_v42 = vpop.eup %7957 }
0x1a2e   :  { %v2585_v43 = vmul.f32 %v7958_v42, %v2583_v3  ;;  %v2592_v56 = vsub.f32 1.0, %v7958_v42  ;;  %v2598_v60 = vmul.f32 0.0, %v7958_v42 }
0x1a30   :  { %2587 = vrot.lane.b32.xlu1 %v2585_v43, %s8326_s9 }
0x1aa2   :  { %v2588_v14 = vpop.permute.xlu1 %2587 }
0x1aa3   :  { %v2590_v46 = vadd.f32 %v2588_v14, %v2495_v37 }
0x1aa5   :  { %7959 = vtanh.f32 %v2590_v46 }
0x1aaf   :  { %v7960_v50 = vpop.eup %7959 }
0x1ab0   :  { %2594 = vrot.lane.b32.xlu0 %v7960_v50, %s8327_s7 }
0x1ab4   :  { %2761 = vrot.lane.b32.xlu0 %v2757_v55, %s8328_s8 }
0x1b22   :  { %v2595_v58 = vpop.permute.xlu0 %2594 }
0x1b23   :  { %v2597_v62 = vmul.f32 %v2595_v58, %v2592_v56 }
0x1b25   :  { %v9078_v0 = vadd.f32 %v2598_v60, %v2597_v62 }
0x1b26   :  { %v2762_v8 = vpop.permute.xlu0 %2761 }
0x1b27   :  { %2607 = vrot.lane.b32.xlu1 %v9078_v0, %s8327_s7 }
0x1b2b   :  { %2771 = vrot.lane.b32.xlu1 %v2757_v55, %s8329_s18 }
0x1b99   :  { %v2608_v1 = vpop.permute.xlu1 %2607 }
0x1b9a   :  { %7237 = vmatmul.mubr.msk.f32.vlgmr.msra.gmra.mrb[24].mxu0 %vm234_vm0, %v2608_v1 }
0x1b9b   :  { %7682 = vmatpush3.bf16.msra.mxu0 %v8960_v44  ;;  %7258 = vmatprep.mubr.msk.f32.mxu0 %vm8319_vm1, %v8318_v15 }
0x1b9c   :  { %7683 = vmatprep.subr.bf16.mxu0 %v8317_v13 }
0x1b9d   :  { %v2772_v20 = vpop.permute.xlu1 %2771 }
0x1b9f   :  { %7685 = vmatpush3.bf16.msra.mxu0 %v8973_v16 }
0x1ba0   :  { %7686 = vmatprep.subr.bf16.mxu0 %v8317_v13 }
0x1c6d   :  { %v2677_v5 = vpop.f32.mrb[24].mxu0 }
0x1c6e   :  { %v9096_v23 = vadd.f32 %v9093_v4, %v2677_v5  ;;  %v7238_v6 = vpop.f32.mrb[25].mxu0 }
0x1c70   :  { %v2764_v9 = vadd.f32 %v2762_v8, %v9096_v23 }
0x1c72   :  { %v6710_v10 = vmul.f32 -1.442695, %v2764_v9 }
0x1c74   :  { %7961 = vpow2.f32 %v6710_v10 }
0x1c7e   :  { %v7962_v11 = vpop.eup %7961 }
0x1c7f   :  { %v2768_v18 = vadd.f32 1.0, %v7962_v11 }
0x1c81   :  { %7963 = vrcp.f32 %v2768_v18 }
0x1c8b   :  { %v7964_v19 = vpop.eup %7963 }
0x1c8c   :  { %v2774_v25 = vmul.f32 %v7964_v19, %v2772_v20  ;;  %v2781_v35 = vsub.f32 1.0, %v7964_v19 }
0x1c8e   :  { %2776 = vrot.lane.b32.xlu0 %v2774_v25, %s8330_s4 }
0x1c92   :  { %2787 = vrot.lane.b32.xlu0 %v8992_v53, %s8331_s15 }
0x1c96   :  { %2905 = vrot.lane.b32.xlu0 %v8721_v57, %s8325_s14 }
0x1d00   :  { %v2777_v27 = vpop.permute.xlu0 %2776 }
0x1d01   :  { %v2779_v31 = vadd.f32 %v2777_v27, %v9096_v23 }
0x1d03   :  { %7965 = vtanh.f32 %v2779_v31 }
0x1d04   :  { %v2788_v38 = vpop.permute.xlu0 %2787 }
0x1d05   :  { %v2790_v12 = vmul.f32 %v7964_v19, %v2788_v38 }
0x1d08   :  { %v2906_v43 = vpop.permute.xlu0 %2905 }
0x1d0d   :  { %v7966_v37 = vpop.eup %7965 }
0x1d0e   :  { %2783 = vrot.lane.b32.xlu1 %v7966_v37, %s8324_s0 }
0x1d80   :  { %v2784_v41 = vpop.permute.xlu1 %2783 }
0x1d81   :  { %v2786_v3 = vmul.f32 %v2784_v41, %v2781_v35 }
0x1d83   :  { %v9105_v42 = vadd.f32 %v2790_v12, %v2786_v3 }
0x1d85   :  { %2799 = vrot.lane.b32.xlu1 %v9105_v42, %s8325_s14 }
0x1d89   :  { %2908 = vrot.lane.b32.xlu1 %v8901_v22, %s8324_s0  ;;  %v9125_v22 = vld [vmem:[#allocation16] ss:$0 sm:$0xff] }
0x1df7   :  { %v2800_v57 = vpop.permute.xlu1 %2799 }
0x1df8   :  { %7259 = vmatmul.mubr.msk.f32.vlgmr.msra.gmra.mrb[26].mxu0 %vm2105_vm3, %v2800_v57 }
0x1df9   :  { %7688 = vmatpush3.bf16.msra.mxu0 %v9035_v2  ;;  %7270 = vmatprep.mubr.msk.f32.mxu0 %vm8319_vm1, %v8318_v15 }
0x1dfa   :  { %7692 = vmatprep.subr.bf16.mxu0 %v8317_v13 }
0x1dfb   :  { %v2909_v14 = vpop.permute.xlu1 %2908 }
0x1dfc   :  { %v9117_v46 = vsel %vm2189_vm4, %v2906_v43, %v2909_v14 }
0x1dfd   :  { %v2985_v47 = vrot.slane %v9117_v46, 2 }
0x1dff   :  { %7271 = vmatmul.mubr.msk.f32.vlgmr.msra.gmra.mrb[28].mxu0 %vm234_vm0, %v2985_v47 }
0x1e00   :  { %7694 = vmatpush3.bf16.msra.mxu0 %v9069_v49  ;;  %7284 = vmatprep.mubr.msk.f32.mxu0 %vm8319_vm1, %v8318_v15 }
0x1e01   :  { %7701 = vmatprep.subr.bf16.mxu0 %v8317_v13 }
0x1ecb   :  { %v2869_v26 = vpop.f32.mrb[26].mxu0 }
0x1ecc   :  { %v9128_v50 = vadd.f32 %v9125_v22, %v2869_v26  ;;  %v7260_v55 = vpop.f32.mrb[27].mxu0 }
0x1ece   :  { %7264 = vmatmul.mubr.msk.f32.vlgmr.msra.gmra.mrb[26].mxu1 %vm2189_vm4, %v9128_v50 }
0x1ecf   :  { %7691 = vmatpush3.bf16.msra.mxu1 %v8990_v52  ;;  %7277 = vmatprep.mubr.msk.f32.mxu1 %vm8319_vm1, %v8318_v15 }
0x1ed0   :  { %7695 = vmatprep.subr.bf16.mxu1 %v8317_v13 }
0x1ed2   :  { %v3054_v56 = vpop.f32.mrb[28].mxu0  ;;  %7278 = vmatmul.mubr.msk.f32.vlgmr.msra.gmra.mrb[28].mxu1 %vm234_vm0, %v2608_v1 }
0x1ed3   :  { %7697 = vmatpush3.bf16.msra.mxu1 %v9005_v59  ;;  %v7272_v58 = vpop.f32.mrb[29].mxu0  ;;  %7295 = vmatprep.mubr.msk.f32.mxu1 %vm8319_vm1, %v8318_v15 }
0x1ed4   :  { %7698 = vmatprep.subr.bf16.mxu1 %v8317_v13 }
0x1ed7   :  { %7700 = vmatpush3.bf16.msra.mxu1 %v9016_v63 }
0x1ed8   :  { %7309 = vmatprep.subr.mxu1 %v8318_v15 }
0x1eda   :  { %7296 = vmatmul.mubr.msk.f32.vlgmr.msra.gmra.mrb[30].mxu1 %vm2105_vm3, %v2800_v57 }
0x1edb   :  { %7310 = vmatpush3.msra.mxu1 %v8980_v17  ;;  %7311 = vmatprep.mubr.msk.f32.mxu1 %vm8319_vm1, %v8318_v15 }
0x1edc   :  { %7710 = vmatprep.subr.bf16.mxu1 %v8317_v13 }
0x1fa1   :  { %v2980_v60 = vpop.f32.mrb[26].mxu1 }
0x1fa2   :  { %v3055_v62 = vadd.f32 %v3054_v56, %v2980_v60  ;;  %v7265_v1 = vpop.f32.mrb[27].mxu1 }
0x1fa4   :  { %v3058_v11 = vadd.f32 %v9059_v21, %v3055_v62 }
0x1fa5   :  { %v3125_v5 = vpop.f32.mrb[28].mxu1 }
0x1fa6   :  { %v3126_v6 = vadd.f32 %v9044_v24, %v3125_v5  ;;  %v7279_v8 = vpop.f32.mrb[29].mxu1 }
0x1fa8   :  { %3137 = vrot.lane.b32.xlu0 %v3126_v6, %s8324_s0  ;;  %v3129_v18 = vadd.f32 %v3126_v6, %v3058_v11 }
0x1faa   :  { %v6716_v19 = vmul.f32 -1.442695, %v3129_v18 }
0x1fac   :  { %7967 = vpow2.f32 %v6716_v19 }
0x1fad   :  { %v3299_v9 = vpop.f32.mrb[30].mxu1 }
0x1fae   :  { %v7297_v10 = vpop.f32.mrb[31].mxu1  ;;  %v3300_v12 = vadd.f32 %v9072_v33, %v3299_v9 }
0x1fb6   :  { %v7968_v20 = vpop.eup %7967 }
0x1fb7   :  { %v3133_v25 = vadd.f32 1.0, %v7968_v20 }
0x1fb9   :  { %7969 = vrcp.f32 %v3133_v25 }
0x1fc3   :  { %v7970_v27 = vpop.eup %7969 }
0x1fc4   :  { %v3147_v3 = vsub.f32 1.0, %v7970_v27  ;;  %v3153_v43 = vmul.f32 %v7970_v27, %v9078_v0 }
0x201a   :  { %v3138_v31 = vpop.permute.xlu0 %3137 }
0x201b   :  { %v3140_v37 = vmul.f32 %v7970_v27, %v3138_v31 }
0x201d   :  { %3142 = vrot.lane.b32.xlu1 %v3140_v37, %s8326_s9 }
0x208f   :  { %v3143_v38 = vpop.permute.xlu1 %3142 }
0x2090   :  { %v3145_v35 = vadd.f32 %v3143_v38, %v3058_v11 }
0x2092   :  { %7971 = vtanh.f32 %v3145_v35 }
0x209c   :  { %v7972_v41 = vpop.eup %7971 }
0x209d   :  { %3149 = vrot.lane.b32.xlu0 %v7972_v41, %s8327_s7 }
0x20a1   :  { %3304 = vrot.lane.b32.xlu0 %v3300_v12, %s8328_s8 }
0x210f   :  { %v3150_v57 = vpop.permute.xlu0 %3149 }
0x2110   :  { %v3152_v14 = vmul.f32 %v3150_v57, %v3147_v3 }
0x2112   :  { %v9156_v47 = vadd.f32 %v3153_v43, %v3152_v14 }
0x2113   :  { %v3305_v60 = vpop.permute.xlu0 %3304 }
0x2114   :  { %3156 = vrot.lane.b32.xlu1 %v9156_v47, %s8327_s7 }
0x2118   :  { %3314 = vrot.lane.b32.xlu1 %v3300_v12, %s8329_s18 }
0x2186   :  { %v3157_v26 = vpop.permute.xlu1 %3156 }
0x2187   :  { %7285 = vmatmul.mubr.msk.f32.vlgmr.msra.gmra.mrb[30].mxu0 %vm234_vm0, %v3157_v26 }
0x2188   :  { %7703 = vmatpush3.bf16.msra.mxu0 %v8960_v44  ;;  %7306 = vmatprep.mubr.msk.f32.mxu0 %vm8319_vm1, %v8318_v15 }
0x2189   :  { %7704 = vmatprep.subr.bf16.mxu0 %v8317_v13 }
0x218a   :  { %v3315_v9 = vpop.permute.xlu1 %3314 }
0x218c   :  { %7706 = vmatpush3.bf16.msra.mxu0 %v8973_v16 }
0x218d   :  { %7707 = vmatprep.subr.bf16.mxu0 %v8317_v13 }
0x225a   :  { %v3226_v55 = vpop.f32.mrb[30].mxu0 }
0x225b   :  { %v9169_v56 = vadd.f32 %v9093_v4, %v3226_v55  ;;  %v7286_v58 = vpop.f32.mrb[31].mxu0 }
0x225d   :  { %v3307_v62 = vadd.f32 %v3305_v60, %v9169_v56 }
0x225f   :  { %v6719_v1 = vmul.f32 -1.442695, %v3307_v62 }
0x2261   :  { %7973 = vpow2.f32 %v6719_v1 }
0x226b   :  { %v7974_v5 = vpop.eup %7973 }
0x226c   :  { %v3311_v6 = vadd.f32 1.0, %v7974_v5 }
0x226e   :  { %7975 = vrcp.f32 %v3311_v6 }
0x2278   :  { %v7976_v8 = vpop.eup %7975 }
0x2279   :  { %v3317_v10 = vmul.f32 %v7976_v8, %v3315_v9  ;;  %v3324_v20 = vsub.f32 1.0, %v7976_v8  ;;  %v3330_v27 = vmul.f32 %v7976_v8, %v9105_v42 }
0x227b   :  { %3319 = vrot.lane.b32.xlu0 %v3317_v10, %s8330_s4 }
0x22ed   :  { %v3320_v11 = vpop.permute.xlu0 %3319 }
0x22ee   :  { %v3322_v18 = vadd.f32 %v3320_v11, %v9169_v56 }
0x22f0   :  { %7977 = vtanh.f32 %v3322_v18 }
0x22fa   :  { %v7978_v19 = vpop.eup %7977 }
0x22fb   :  { %3326 = vrot.lane.b32.xlu1 %v7978_v19, %s8324_s0 }
0x22ff   :  { %3439 = vrot.lane.b32.xlu1 %v8757_v51, %s8325_s14 }
0x236d   :  { %v3327_v25 = vpop.permute.xlu1 %3326 }
0x236e   :  { %v3329_v31 = vmul.f32 %v3327_v25, %v3324_v20 }
0x2370   :  { %v9178_v37 = vadd.f32 %v3330_v27, %v3329_v31 }
0x2371   :  { %v3440_v51 = vpop.permute.xlu1 %3439 }
0x2372   :  { %3333 = vrot.lane.b32.xlu0 %v9178_v37, %s8325_s14 }
0x2376   :  { %3442 = vrot.lane.b32.xlu0 %v8865_v29, %s8324_s0 }
0x23e4   :  { %v3334_v38 = vpop.permute.xlu0 %3333 }
0x23e5   :  { %7307 = vmatmul.mubr.msk.f32.vlgmr.msra.gmra.mrb[32].mxu0 %vm2105_vm3, %v3334_v38 }
0x23e6   :  { %7709 = vmatpush3.bf16.msra.mxu0 %v9035_v2  ;;  %7318 = vmatprep.mubr.msk.f32.mxu0 %vm8319_vm1, %v8318_v15 }
0x23e7   :  { %7713 = vmatprep.subr.bf16.mxu0 %v8317_v13 }
0x23e8   :  { %v3443_v35 = vpop.permute.xlu0 %3442 }
0x23e9   :  { %v9190_v41 = vsel %vm2189_vm4, %v3440_v51, %v3443_v35 }
0x23ea   :  { %v3519_v12 = vrot.slane %v9190_v41, 4 }
0x23ec   :  { %7319 = vmatmul.mubr.msk.f32.vlgmr.msra.gmra.mrb[34].mxu0 %vm234_vm0, %v3519_v12 }
0x23ed   :  { %7715 = vmatpush3.bf16.msra.mxu0 %v9069_v49  ;;  %7332 = vmatprep.mubr.msk.f32.mxu0 %vm8319_vm1, %v8318_v15 }
0x23ee   :  { %7722 = vmatprep.subr.bf16.mxu0 %v8317_v13 }
0x24b8   :  { %v3403_v29 = vpop.f32.mrb[32].mxu0 }
0x24b9   :  { %v9199_v3 = vadd.f32 %v9125_v22, %v3403_v29  ;;  %v7308_v57 = vpop.f32.mrb[33].mxu0 }
0x24bb   :  { %7312 = vmatmul.mubr.msk.f32.vlgmr.msra.gmra.mrb[32].mxu1 %vm2189_vm4, %v9199_v3 }
0x24bc   :  { %7712 = vmatpush3.bf16.msra.mxu1 %v8990_v52  ;;  %7325 = vmatprep.mubr.msk.f32.mxu1 %vm8319_vm1, %v8318_v15 }
0x24bd   :  { %7716 = vmatprep.subr.bf16.mxu1 %v8317_v13 }
0x24bf   :  { %v3588_v43 = vpop.f32.mrb[34].mxu0  ;;  %7326 = vmatmul.mubr.msk.f32.vlgmr.msra.gmra.mrb[34].mxu1 %vm234_vm0, %v3157_v26 }
0x24c0   :  { %7718 = vmatpush3.bf16.msra.mxu1 %v9005_v59  ;;  %v7320_v14 = vpop.f32.mrb[35].mxu0  ;;  %7343 = vmatprep.mubr.msk.f32.mxu1 %vm8319_vm1, %v8318_v15 }
0x24c1   :  { %7719 = vmatprep.subr.bf16.mxu1 %v8317_v13 }
0x24c4   :  { %7721 = vmatpush3.bf16.msra.mxu1 %v9016_v63 }
0x24c5   :  { %7357 = vmatprep.subr.mxu1 %v8318_v15 }
0x24c7   :  { %7344 = vmatmul.mubr.msk.f32.vlgmr.msra.gmra.mrb[36].mxu1 %vm2105_vm3, %v3334_v38 }
0x24c8   :  { %7358 = vmatpush3.msra.mxu1 %v8980_v17  ;;  %7359 = vmatprep.mubr.msk.f32.mxu1 %vm8319_vm1, %v8318_v15 }
0x24c9   :  { %7731 = vmatprep.subr.bf16.mxu1 %v8317_v13 }
0x258e   :  { %v3514_v26 = vpop.f32.mrb[32].mxu1 }
0x258f   :  { %v3589_v55 = vadd.f32 %v3588_v43, %v3514_v26  ;;  %v7313_v58 = vpop.f32.mrb[33].mxu1 }
0x2591   :  { %v3592_v8 = vadd.f32 %v9059_v21, %v3589_v55 }
0x2592   :  { %v3659_v60 = vpop.f32.mrb[34].mxu1 }
0x2593   :  { %v3660_v62 = vadd.f32 %v9044_v24, %v3659_v60  ;;  %v7327_v1 = vpop.f32.mrb[35].mxu1 }
0x2595   :  { %3671 = vrot.lane.b32.xlu1 %v3660_v62, %s8324_s0  ;;  %v3663_v9 = vadd.f32 %v3660_v62, %v3592_v8 }
0x2597   :  { %v6725_v10 = vmul.f32 -1.442695, %v3663_v9 }
0x2599   :  { %7979 = vpow2.f32 %v6725_v10 }
0x259a   :  { %v3833_v5 = vpop.f32.mrb[36].mxu1 }
0x259b   :  { %v7345_v6 = vpop.f32.mrb[37].mxu1  ;;  %v3834_v51 = vadd.f32 %v9072_v33, %v3833_v5 }
0x25a3   :  { %v7980_v11 = vpop.eup %7979 }
0x25a4   :  { %v3667_v18 = vadd.f32 1.0, %v7980_v11 }
0x25a6   :  { %7981 = vrcp.f32 %v3667_v18 }
0x25b0   :  { %v7982_v19 = vpop.eup %7981 }
0x25b1   :  { %v3681_v35 = vsub.f32 1.0, %v7982_v19  ;;  %v3687_v29 = vmul.f32 %v7982_v19, %v9156_v47 }
0x2607   :  { %v3672_v20 = vpop.permute.xlu1 %3671 }
0x2608   :  { %v3674_v25 = vmul.f32 %v7982_v19, %v3672_v20 }
0x260a   :  { %3676 = vrot.lane.b32.xlu0 %v3674_v25, %s8326_s9 }
0x267c   :  { %v3677_v27 = vpop.permute.xlu0 %3676 }
0x267d   :  { %v3679_v31 = vadd.f32 %v3677_v27, %v3592_v8 }
0x267f   :  { %7983 = vtanh.f32 %v3679_v31 }
0x2689   :  { %v7984_v38 = vpop.eup %7983 }
0x268a   :  { %3683 = vrot.lane.b32.xlu1 %v7984_v38, %s8327_s7 }
0x268e   :  { %3838 = vrot.lane.b32.xlu1 %v3834_v51, %s8328_s8 }
0x26fc   :  { %v3684_v12 = vpop.permute.xlu1 %3683 }
0x26fd   :  { %v3686_v57 = vmul.f32 %v3684_v12, %v3681_v35 }
0x26ff   :  { %v9227_v43 = vadd.f32 %v3687_v29, %v3686_v57 }
0x2700   :  { %v3839_v60 = vpop.permute.xlu1 %3838 }
0x2701   :  { %3690 = vrot.lane.b32.xlu0 %v9227_v43, %s8327_s7 }
0x2705   :  { %3848 = vrot.lane.b32.xlu0 %v3834_v51, %s8329_s18 }
0x2773   :  { %v3691_v14 = vpop.permute.xlu0 %3690 }
0x2774   :  { %7333 = vmatmul.mubr.msk.f32.vlgmr.msra.gmra.mrb[36].mxu0 %vm234_vm0, %v3691_v14 }
0x2775   :  { %7724 = vmatpush3.bf16.msra.mxu0 %v8960_v44  ;;  %7354 = vmatprep.mubr.msk.f32.mxu0 %vm8319_vm1, %v8318_v15 }
0x2776   :  { %7725 = vmatprep.subr.bf16.mxu0 %v8317_v13 }
0x2777   :  { %v3849_v9 = vpop.permute.xlu0 %3848 }
0x2779   :  { %7727 = vmatpush3.bf16.msra.mxu0 %v8973_v16 }
0x277a   :  { %7728 = vmatprep.subr.bf16.mxu0 %v8317_v13 }
0x2847   :  { %v3760_v26 = vpop.f32.mrb[36].mxu0 }
0x2848   :  { %v9240_v55 = vadd.f32 %v9093_v4, %v3760_v26  ;;  %v7334_v58 = vpop.f32.mrb[37].mxu0 }
0x284a   :  { %v3841_v62 = vadd.f32 %v3839_v60, %v9240_v55 }
0x284c   :  { %v6728_v1 = vmul.f32 -1.442695, %v3841_v62 }
0x284e   :  { %7985 = vpow2.f32 %v6728_v1 }
0x2858   :  { %v7986_v5 = vpop.eup %7985 }
0x2859   :  { %v3845_v6 = vadd.f32 1.0, %v7986_v5 }
0x285b   :  { %7987 = vrcp.f32 %v3845_v6 }
0x2865   :  { %v7988_v8 = vpop.eup %7987 }
0x2866   :  { %v3851_v10 = vmul.f32 %v7988_v8, %v3849_v9  ;;  %v3858_v20 = vsub.f32 1.0, %v7988_v8  ;;  %v3864_v27 = vmul.f32 %v7988_v8, %v9178_v37 }
0x2868   :  { %3853 = vrot.lane.b32.xlu1 %v3851_v10, %s8330_s4 }
0x28da   :  { %v3854_v11 = vpop.permute.xlu1 %3853 }
0x28db   :  { %v3856_v18 = vadd.f32 %v3854_v11, %v9240_v55 }
0x28dd   :  { %7989 = vtanh.f32 %v3856_v18 }
0x28e7   :  { %v7990_v19 = vpop.eup %7989 }
0x28e8   :  { %3860 = vrot.lane.b32.xlu0 %v7990_v19, %s8324_s0 }
0x28ec   :  { %3973 = vrot.lane.b32.xlu0 %v8794_v36, %s8325_s14 }
0x295a   :  { %v3861_v25 = vpop.permute.xlu0 %3860 }
0x295b   :  { %v3863_v31 = vmul.f32 %v3861_v25, %v3858_v20 }
0x295d   :  { %v9249_v38 = vadd.f32 %v3864_v27, %v3863_v31 }
0x295e   :  { %v3974_v36 = vpop.permute.xlu0 %3973 }
0x295f   :  { %3867 = vrot.lane.b32.xlu1 %v9249_v38, %s8325_s14 }
0x2963   :  { %3976 = vrot.lane.b32.xlu1 %v8827_v30, %s8324_s0 }
0x29d1   :  { %v3868_v51 = vpop.permute.xlu1 %3867 }
0x29d2   :  { %7355 = vmatmul.mubr.msk.f32.vlgmr.msra.gmra.mrb[38].mxu0 %vm2105_vm3, %v3868_v51 }
0x29d3   :  { %7730 = vmatpush3.bf16.msra.mxu0 %v9035_v2  ;;  %7366 = vmatprep.mubr.msk.f32.mxu0 %vm8319_vm1, %v8318_v15 }
0x29d4   :  { %7734 = vmatprep.subr.bf16.mxu0 %v8317_v13 }
0x29d5   :  { %v3977_v35 = vpop.permute.xlu1 %3976 }
0x29d6   :  { %v9261_v12 = vsel %vm2189_vm4, %v3974_v36, %v3977_v35 }
0x29d7   :  { %v4053_v29 = vrot.slane %v9261_v12, 6 }
0x29d9   :  { %7367 = vmatmul.mubr.msk.f32.vlgmr.msra.gmra.mrb[40].mxu0 %vm234_vm0, %v4053_v29 }
0x29da   :  { %7736 = vmatpush3.bf16.msra.mxu0 %v9069_v49  ;;  %7380 = vmatprep.mubr.msk.f32.mxu0 %vm8319_vm1, %v8318_v15 }
0x29db   :  { %7743 = vmatprep.subr.bf16.mxu0 %v8317_v13 }
0x2aa5   :  { %v3937_v30 = vpop.f32.mrb[38].mxu0 }
0x2aa6   :  { %v9270_v57 = vadd.f32 %v9125_v22, %v3937_v30  ;;  %v7356_v26 = vpop.f32.mrb[39].mxu0 }
0x2aa8   :  { %7360 = vmatmul.mubr.msk.f32.vlgmr.msra.gmra.mrb[38].mxu1 %vm2189_vm4, %v9270_v57 }
0x2aa9   :  { %7733 = vmatpush3.bf16.msra.mxu1 %v8990_v52  ;;  %7373 = vmatprep.mubr.msk.f32.mxu1 %vm8319_vm1, %v8318_v15 }
0x2aaa   :  { %7737 = vmatprep.subr.bf16.mxu1 %v8317_v13 }
0x2aac   :  { %v4122_v58 = vpop.f32.mrb[40].mxu0  ;;  %7374 = vmatmul.mubr.msk.f32.vlgmr.msra.gmra.mrb[40].mxu1 %vm234_vm0, %v3691_v14 }
0x2aad   :  { %7739 = vmatpush3.bf16.msra.mxu1 %v9005_v59  ;;  %v7368_v60 = vpop.f32.mrb[41].mxu0  ;;  %7391 = vmatprep.mubr.msk.f32.mxu1 %vm8319_vm1, %v8318_v15 }
0x2aae   :  { %7740 = vmatprep.subr.bf16.mxu1 %v8317_v13 }
0x2ab1   :  { %7742 = vmatpush3.bf16.msra.mxu1 %v9016_v63 }
0x2ab2   :  { %7405 = vmatprep.subr.mxu1 %v8318_v15 }
0x2ab4   :  { %7392 = vmatmul.mubr.msk.f32.vlgmr.msra.gmra.mrb[42].mxu1 %vm2105_vm3, %v3868_v51 }
0x2ab5   :  { %7406 = vmatpush3.msra.mxu1 %v8980_v17  ;;  %7407 = vmatprep.mubr.msk.f32.mxu1 %vm8319_vm1, %v8318_v15 }
0x2ab6   :  { %7752 = vmatprep.subr.bf16.mxu1 %v8317_v13 }
0x2b7b   :  { %v4048_v14 = vpop.f32.mrb[38].mxu1 }
0x2b7c   :  { %v4123_v62 = vadd.f32 %v4122_v58, %v4048_v14  ;;  %v7361_v1 = vpop.f32.mrb[39].mxu1 }
0x2b7e   :  { %v4126_v11 = vadd.f32 %v9059_v21, %v4123_v62 }
0x2b7f   :  { %v4193_v5 = vpop.f32.mrb[40].mxu1 }
0x2b80   :  { %v4194_v6 = vadd.f32 %v9044_v24, %v4193_v5  ;;  %v7375_v8 = vpop.f32.mrb[41].mxu1 }
0x2b82   :  { %4205 = vrot.lane.b32.xlu0 %v4194_v6, %s8324_s0  ;;  %v4197_v18 = vadd.f32 %v4194_v6, %v4126_v11 }
0x2b84   :  { %v6734_v19 = vmul.f32 -1.442695, %v4197_v18 }
0x2b86   :  { %7991 = vpow2.f32 %v6734_v19 }
0x2b87   :  { %v4367_v9 = vpop.f32.mrb[42].mxu1 }
0x2b88   :  { %v7393_v10 = vpop.f32.mrb[43].mxu1  ;;  %v4368_v30 = vadd.f32 %v9072_v33, %v4367_v9 }
0x2b90   :  { %v7992_v20 = vpop.eup %7991 }
0x2b91   :  { %v4201_v25 = vadd.f32 1.0, %v7992_v20 }
0x2b93   :  { %7993 = vrcp.f32 %v4201_v25 }
0x2b9d   :  { %v7994_v27 = vpop.eup %7993 }
0x2b9e   :  { %v4215_v26 = vsub.f32 1.0, %v7994_v27  ;;  %v4221_v60 = vmul.f32 %v7994_v27, %v9227_v43 }
0x2bf4   :  { %v4206_v31 = vpop.permute.xlu0 %4205 }
0x2bf5   :  { %v4208_v51 = vmul.f32 %v7994_v27, %v4206_v31 }
0x2bf7   :  { %4210 = vrot.lane.b32.xlu1 %v4208_v51, %s8326_s9 }
0x2c69   :  { %v4211_v36 = vpop.permute.xlu1 %4210 }
0x2c6a   :  { %v4213_v35 = vadd.f32 %v4211_v36, %v4126_v11 }
0x2c6c   :  { %7995 = vtanh.f32 %v4213_v35 }
0x2c76   :  { %v7996_v29 = vpop.eup %7995 }
0x2c77   :  { %4217 = vrot.lane.b32.xlu0 %v7996_v29, %s8327_s7 }
0x2c7b   :  { %4372 = vrot.lane.b32.xlu0 %v4368_v30, %s8328_s8 }
0x2ce9   :  { %v4218_v58 = vpop.permute.xlu0 %4217 }
0x2cea   :  { %v4220_v14 = vmul.f32 %v4218_v58, %v4215_v26 }
0x2cec   :  { %v9298_v62 = vadd.f32 %v4221_v60, %v4220_v14 }
0x2ced   :  { %v4373_v9 = vpop.permute.xlu0 %4372 }
0x2cee   :  { %4224 = vrot.lane.b32.xlu1 %v9298_v62, %s8327_s7 }
0x2cf2   :  { %4382 = vrot.lane.b32.xlu1 %v4368_v30, %s8329_s18 }
0x2d60   :  { %v4225_v1 = vpop.permute.xlu1 %4224 }
0x2d61   :  { %7381 = vmatmul.mubr.msk.f32.vlgmr.msra.gmra.mrb[42].mxu0 %vm234_vm0, %v4225_v1 }
0x2d62   :  { %7745 = vmatpush3.bf16.msra.mxu0 %v8960_v44  ;;  %7402 = vmatprep.mubr.msk.f32.mxu0 %vm8319_vm1, %v8318_v15 }
0x2d63   :  { %7746 = vmatprep.subr.bf16.mxu0 %v8317_v13 }
0x2d64   :  { %v4383_v25 = vpop.permute.xlu1 %4382 }
0x2d66   :  { %7748 = vmatpush3.bf16.msra.mxu0 %v8973_v16 }
0x2d67   :  { %7749 = vmatprep.subr.bf16.mxu0 %v8317_v13 }
0x2e34   :  { %v4294_v5 = vpop.f32.mrb[42].mxu0 }
0x2e35   :  { %v9311_v6 = vadd.f32 %v9093_v4, %v4294_v5  ;;  %v7382_v8 = vpop.f32.mrb[43].mxu0 }
0x2e37   :  { %v4375_v10 = vadd.f32 %v4373_v9, %v9311_v6 }
0x2e39   :  { %v6737_v11 = vmul.f32 -1.442695, %v4375_v10 }
0x2e3b   :  { %7997 = vpow2.f32 %v6737_v11 }
0x2e45   :  { %v7998_v18 = vpop.eup %7997 }
0x2e46   :  { %v4379_v19 = vadd.f32 1.0, %v7998_v18 }
0x2e48   :  { %7999 = vrcp.f32 %v4379_v19 }
0x2e52   :  { %v8000_v20 = vpop.eup %7999 }
0x2e53   :  { %v4385_v27 = vmul.f32 %v8000_v20, %v4383_v25  ;;  %v4392_v35 = vsub.f32 1.0, %v8000_v20  ;;  %v4398_v30 = vmul.f32 %v8000_v20, %v9249_v38 }
0x2e55   :  { %4387 = vrot.lane.b32.xlu0 %v4385_v27, %s8330_s4 }
0x2ec7   :  { %v4388_v31 = vpop.permute.xlu0 %4387 }
0x2ec8   :  { %v4390_v51 = vadd.f32 %v4388_v31, %v9311_v6 }
0x2eca   :  { %8001 = vtanh.f32 %v4390_v51 }
0x2ed4   :  { %v8002_v36 = vpop.eup %8001 }
0x2ed5   :  { %4394 = vrot.lane.b32.xlu1 %v8002_v36, %s8324_s0 }
0x2ed9   :  { %4507 = vrot.lane.b32.xlu1 %v8832_v40, %s8325_s14 }
0x2f47   :  { %v4395_v29 = vpop.permute.xlu1 %4394 }
0x2f48   :  { %v4397_v26 = vmul.f32 %v4395_v29, %v4392_v35 }
0x2f4a   :  { %v9320_v58 = vadd.f32 %v4398_v30, %v4397_v26 }
0x2f4b   :  { %v4508_v40 = vpop.permute.xlu1 %4507 }
0x2f4c   :  { %4401 = vrot.lane.b32.xlu0 %v9320_v58, %s8325_s14 }
0x2f50   :  { %4510 = vrot.lane.b32.xlu0 %v8789_v39, %s8324_s0 }
0x2fbe   :  { %v4402_v60 = vpop.permute.xlu0 %4401 }
0x2fbf   :  { %7403 = vmatmul.mubr.msk.f32.vlgmr.msra.gmra.mrb[44].mxu0 %vm2105_vm3, %v4402_v60 }
0x2fc0   :  { %7751 = vmatpush3.bf16.msra.mxu0 %v9035_v2  ;;  %7414 = vmatprep.mubr.msk.f32.mxu0 %vm8319_vm1, %v8318_v15 }
0x2fc1   :  { %7755 = vmatprep.subr.bf16.mxu0 %v8317_v13 }
0x2fc2   :  { %v4511_v14 = vpop.permute.xlu0 %4510 }
0x2fc3   :  { %v9332_v5 = vsel %vm2189_vm4, %v4508_v40, %v4511_v14 }
0x2fc4   :  { %7415 = vmatmul.mubr.msk.f32.vlgmr.msra.gmra.mrb[46].mxu0 %vm234_vm0, %v9332_v5 }
0x2fc5   :  { %7757 = vmatpush3.bf16.msra.mxu0 %v9069_v49  ;;  %7428 = vmatprep.mubr.msk.f32.mxu0 %vm8319_vm1, %v8318_v15 }
0x2fc6   :  { %7764 = vmatprep.subr.bf16.mxu0 %v8317_v13 }
0x3092   :  { %v4471_v39 = vpop.f32.mrb[44].mxu0 }
0x3093   :  { %v9341_v8 = vadd.f32 %v9125_v22, %v4471_v39  ;;  %v7404_v9 = vpop.f32.mrb[45].mxu0 }
0x3095   :  { %7408 = vmatmul.mubr.msk.f32.vlgmr.msra.gmra.mrb[44].mxu1 %vm2189_vm4, %v9341_v8 }
0x3096   :  { %7754 = vmatpush3.bf16.msra.mxu1 %v8990_v52  ;;  %7421 = vmatprep.mubr.msk.f32.mxu1 %vm8319_vm1, %v8318_v15 }
0x3097   :  { %v4655_v10 = vpop.f32.mrb[46].mxu0  ;;  %7758 = vmatprep.subr.bf16.mxu1 %v8317_v13 }
0x3098   :  { %v7416_v11 = vpop.f32.mrb[47].mxu0 }
0x3099   :  { %7422 = vmatmul.mubr.msk.f32.vlgmr.msra.gmra.mrb[46].mxu1 %vm234_vm0, %v4225_v1 }
0x309a   :  { %7760 = vmatpush3.bf16.msra.mxu1 %v9005_v59  ;;  %7439 = vmatprep.mubr.msk.f32.mxu1 %vm8319_vm1, %v8318_v15 }
0x309b   :  { %7761 = vmatprep.subr.bf16.mxu1 %v8317_v13 }
0x309e   :  { %7763 = vmatpush3.bf16.msra.mxu1 %v9016_v63 }
0x309f   :  { %7453 = vmatprep.subr.mxu1 %v8318_v15 }
0x30a1   :  { %7440 = vmatmul.mubr.msk.f32.vlgmr.msra.gmra.mrb[48].mxu1 %vm2105_vm3, %v4402_v60 }
0x30a2   :  { %7454 = vmatpush3.msra.mxu1 %v8980_v17  ;;  %7455 = vmatprep.mubr.msk.f32.mxu1 %vm8319_vm1, %v8318_v15 }
0x30a3   :  { %7773 = vmatprep.subr.bf16.mxu1 %v8317_v13 }
0x3168   :  { %v4582_v1 = vpop.f32.mrb[44].mxu1 }
0x3169   :  { %v4656_v18 = vadd.f32 %v4655_v10, %v4582_v1  ;;  %v7409_v19 = vpop.f32.mrb[45].mxu1 }
0x316b   :  { %v4659_v36 = vadd.f32 %v9059_v21, %v4656_v18 }
0x316c   :  { %v4726_v20 = vpop.f32.mrb[46].mxu1 }
0x316d   :  { %v4727_v25 = vadd.f32 %v9044_v24, %v4726_v20  ;;  %v7423_v27 = vpop.f32.mrb[47].mxu1 }
0x316f   :  { %4738 = vrot.lane.b32.xlu1 %v4727_v25, %s8324_s0  ;;  %v4730_v35 = vadd.f32 %v4727_v25, %v4659_v36 }
0x3171   :  { %v6743_v17 = vmul.f32 -1.442695, %v4730_v35 }
0x3173   :  { %8003 = vpow2.f32 %v6743_v17 }
0x3174   :  { %v4900_v31 = vpop.f32.mrb[48].mxu1 }
0x3175   :  { %v7441_v51 = vpop.f32.mrb[49].mxu1  ;;  %v4901_v9 = vadd.f32 %v9072_v33, %v4900_v31 }
0x317d   :  { %v8004_v29 = vpop.eup %8003 }
0x317e   :  { %v4734_v30 = vadd.f32 1.0, %v8004_v29 }
0x3180   :  { %8005 = vrcp.f32 %v4734_v30 }
0x318a   :  { %v8006_v26 = vpop.eup %8005 }
0x318b   :  { %v4748_v21 = vsub.f32 1.0, %v8006_v26  ;;  %v4754_v11 = vmul.f32 %v8006_v26, %v9298_v62 }
0x31e1   :  { %v4739_v60 = vpop.permute.xlu1 %4738 }
0x31e2   :  { %v4741_v40 = vmul.f32 %v8006_v26, %v4739_v60 }
0x31e4   :  { %4743 = vrot.lane.b32.xlu0 %v4741_v40, %s8326_s9 }
0x3256   :  { %v4744_v14 = vpop.permute.xlu0 %4743 }
0x3257   :  { %v4746_v24 = vadd.f32 %v4744_v14, %v4659_v36 }
0x3259   :  { %8007 = vtanh.f32 %v4746_v24 }
0x3263   :  { %v8008_v39 = vpop.eup %8007 }
0x3264   :  { %4750 = vrot.lane.b32.xlu1 %v8008_v39, %s8327_s7 }
0x3268   :  { %4905 = vrot.lane.b32.xlu1 %v4901_v9, %s8328_s8 }
0x32d6   :  { %v4751_v10 = vpop.permute.xlu1 %4750 }
0x32d7   :  { %v4753_v1 = vmul.f32 %v4751_v10, %v4748_v21 }
0x32d9   :  { %v9369_v18 = vadd.f32 %v4754_v11, %v4753_v1 }
0x32da   :  { %v4906_v31 = vpop.permute.xlu1 %4905 }
0x32db   :  { %4757 = vrot.lane.b32.xlu0 %v9369_v18, %s8327_s7 }
0x32df   :  { %4915 = vrot.lane.b32.xlu0 %v4901_v9, %s8329_s18 }
0x334d   :  { %v4758_v19 = vpop.permute.xlu0 %4757 }
0x334e   :  { %7429 = vmatmul.mubr.msk.f32.vlgmr.msra.gmra.mrb[48].mxu0 %vm234_vm0, %v4758_v19 }
0x334f   :  { %7766 = vmatpush3.bf16.msra.mxu0 %v8960_v44  ;;  %7450 = vmatprep.mubr.msk.f32.mxu0 %vm8319_vm1, %v8318_v15 }
0x3350   :  { %7767 = vmatprep.subr.bf16.mxu0 %v8317_v13 }
0x3351   :  { %v4916_v30 = vpop.permute.xlu0 %4915 }
0x3353   :  { %7769 = vmatpush3.bf16.msra.mxu0 %v8973_v16 }
0x3354   :  { %7770 = vmatprep.subr.bf16.mxu0 %v8317_v13 }
0x3421   :  { %v4827_v20 = vpop.f32.mrb[48].mxu0 }
0x3422   :  { %v9382_v25 = vadd.f32 %v9093_v4, %v4827_v20  ;;  %v7430_v27 = vpop.f32.mrb[49].mxu0 }
0x3424   :  { %v4908_v51 = vadd.f32 %v4906_v31, %v9382_v25 }
0x3426   :  { %v6746_v36 = vmul.f32 -1.442695, %v4908_v51 }
0x3428   :  { %8009 = vpow2.f32 %v6746_v36 }
0x3432   :  { %v8010_v35 = vpop.eup %8009 }
0x3433   :  { %v4912_v17 = vadd.f32 1.0, %v8010_v35 }
0x3435   :  { %8011 = vrcp.f32 %v4912_v17  ;;  %v9428_v17 = vld [vmem:[#allocation13] sm:$0xff] }
0x343f   :  { %v8012_v29 = vpop.eup %8011 }
0x3440   :  { %v4918_v26 = vmul.f32 %v8012_v29, %v4916_v30  ;;  %v4925_v24 = vsub.f32 1.0, %v8012_v29  ;;  %v4931_v9 = vmul.f32 %v8012_v29, %v9320_v58 }
0x3442   :  { %4920 = vrot.lane.b32.xlu1 %v4918_v26, %s8330_s4 }
0x34b4   :  { %v4921_v60 = vpop.permute.xlu1 %4920 }
0x34b5   :  { %v4923_v40 = vadd.f32 %v4921_v60, %v9382_v25  ;;  %v9437_v60 = vld [vmem:[%s9832_s17] ss:$0 sm:$0xff] }
0x34b7   :  { %8013 = vtanh.f32 %v4923_v40 }
0x34c1   :  { %v8014_v14 = vpop.eup %8013 }
0x34c2   :  { %4927 = vrot.lane.b32.xlu0 %v8014_v14, %s8324_s0 }
0x34c6   :  { %5035 = vrot.lane.b32.xlu0 %v8867_v34, %s8325_s14 }
0x3534   :  { %v4928_v39 = vpop.permute.xlu0 %4927 }
0x3535   :  { %v4930_v21 = vmul.f32 %v4928_v39, %v4925_v24 }
0x3537   :  { %v9391_v10 = vadd.f32 %v4931_v9, %v4930_v21  ;;  %v9444_v9 = vld [vmem:[%s9831_s16] ss:$0 sm:$0xff] }
0x3538   :  { %v5036_v34 = vpop.permute.xlu0 %5035 }
0x3539   :  { %4934 = vrot.lane.b32.xlu1 %v9391_v10, %s8325_s14 }
0x353d   :  { %5038 = vrot.lane.b32.xlu1 %v8755_v48, %s8324_s0 }
0x35ab   :  { %v4935_v11 = vpop.permute.xlu1 %4934 }
0x35ac   :  { %7451 = vmatmul.mubr.msk.f32.vlgmr.msra.gmra.mrb[50].mxu0 %vm2105_vm3, %v4935_v11 }
0x35ad   :  { %7772 = vmatpush3.bf16.msra.mxu0 %v9035_v2  ;;  %7462 = vmatprep.mubr.msk.f32.mxu0 %vm8319_vm1, %v8318_v15 }
0x35ae   :  { %7776 = vmatprep.subr.bf16.mxu0 %v8317_v13 }
0x35af   :  { %v5039_v1 = vpop.permute.xlu1 %5038 }
0x35b0   :  { %v9403_v20 = vsel %vm2189_vm4, %v5036_v34, %v5039_v1 }
0x35b1   :  { %v5115_v27 = vrot.slane %v9403_v20, 2 }
0x35b3   :  { %7463 = vmatmul.mubr.msk.f32.vlgmr.msra.gmra.mrb[52].mxu0 %vm234_vm0, %v5115_v27 }
0x35b4   :  { %7778 = vmatpush3.bf16.msra.mxu0 %v9069_v49  ;;  %7476 = vmatprep.mubr.msk.f32.mxu0 %vm8319_vm1, %v8318_v15 }
0x35b5   :  { %7785 = vmatprep.subr.bf16.mxu0 %v8317_v13 }
0x367f   :  { %v5004_v48 = vpop.f32.mrb[50].mxu0 }
0x3680   :  { %v9412_v31 = vadd.f32 %v9125_v22, %v5004_v48  ;;  %v7452_v51 = vpop.f32.mrb[51].mxu0 }
0x3682   :  { %7456 = vmatmul.mubr.msk.f32.vlgmr.msra.gmra.mrb[50].mxu1 %vm2189_vm4, %v9412_v31 }
0x3683   :  { %7775 = vmatpush3.bf16.msra.mxu1 %v8990_v52  ;;  %7469 = vmatprep.mubr.msk.f32.mxu1 %vm8319_vm1, %v8318_v15 }
0x3684   :  { %7779 = vmatprep.subr.bf16.mxu1 %v8317_v13 }
0x3686   :  { %v5184_v36 = vpop.f32.mrb[52].mxu0  ;;  %7470 = vmatmul.mubr.msk.f32.vlgmr.msra.gmra.mrb[52].mxu1 %vm234_vm0, %v4758_v19 }
0x3687   :  { %7781 = vmatpush3.bf16.msra.mxu1 %v9005_v59  ;;  %v7464_v35 = vpop.f32.mrb[53].mxu0  ;;  %7487 = vmatprep.mubr.msk.f32.mxu1 %vm8319_vm1, %v8318_v15 }
0x3688   :  { %7782 = vmatprep.subr.bf16.mxu1 %v8317_v13 }
0x368b   :  { %7784 = vmatpush3.bf16.msra.mxu1 %v9016_v63 }
0x368c   :  { %7501 = vmatprep.subr.mxu1 %v8318_v15 }
0x368e   :  { %7488 = vmatmul.mubr.msk.f32.vlgmr.msra.gmra.mrb[54].mxu1 %vm2105_vm3, %v4935_v11 }
0x368f   :  { %7502 = vmatpush3.msra.mxu1 %v9428_v17  ;;  %7503 = vmatprep.mubr.msk.f32.mxu1 %vm8319_vm1, %v8318_v15 }
0x3690   :  { %7794 = vmatprep.subr.bf16.mxu1 %v8317_v13 }
0x3755   :  { %v5110_v19 = vpop.f32.mrb[50].mxu1 }
0x3756   :  { %v5185_v29 = vadd.f32 %v5184_v36, %v5110_v19  ;;  %v7457_v30 = vpop.f32.mrb[51].mxu1 }
0x3758   :  { %v5188_v21 = vadd.f32 %v9444_v9, %v5185_v29 }
0x3759   :  { %v5255_v26 = vpop.f32.mrb[52].mxu1 }
0x375a   :  { %v5256_v40 = vadd.f32 %v9437_v60, %v5255_v26  ;;  %v7471_v14 = vpop.f32.mrb[53].mxu1 }
0x375c   :  { %5267 = vrot.lane.b32.xlu0 %v5256_v40, %s8324_s0  ;;  %v5259_v11 = vadd.f32 %v5256_v40, %v5188_v21 }
0x375e   :  { %v6752_v34 = vmul.f32 -1.442695, %v5259_v11 }
0x3760   :  { %8015 = vpow2.f32 %v6752_v34 }
0x3761   :  { %v5429_v24 = vpop.f32.mrb[54].mxu1 }
0x3762   :  { %v7489_v39 = vpop.f32.mrb[55].mxu1  ;;  %v5430_v26 = vadd.f32 %v9072_v33, %v5429_v24 }
0x376a   :  { %v8016_v1 = vpop.eup %8015 }
0x376b   :  { %v5263_v27 = vadd.f32 1.0, %v8016_v1 }
0x376d   :  { %8017 = vrcp.f32 %v5263_v27 }
0x3777   :  { %v8018_v48 = vpop.eup %8017 }
0x3778   :  { %v5277_v29 = vsub.f32 1.0, %v8018_v48  ;;  %v5283_v14 = vmul.f32 %v8018_v48, %v9369_v18 }
0x37ce   :  { %v5268_v51 = vpop.permute.xlu0 %5267 }
0x37cf   :  { %v5270_v36 = vmul.f32 %v8018_v48, %v5268_v51 }
0x37d1   :  { %5272 = vrot.lane.b32.xlu1 %v5270_v36, %s8326_s9 }
0x3843   :  { %v5273_v35 = vpop.permute.xlu1 %5272 }
0x3844   :  { %v5275_v19 = vadd.f32 %v5273_v35, %v5188_v21 }
0x3846   :  { %8019 = vtanh.f32 %v5275_v19 }
0x3850   :  { %v8020_v30 = vpop.eup %8019 }
0x3851   :  { %5279 = vrot.lane.b32.xlu0 %v8020_v30, %s8327_s7 }
0x3855   :  { %5434 = vrot.lane.b32.xlu0 %v5430_v26, %s8328_s8 }
0x38c3   :  { %v5280_v40 = vpop.permute.xlu0 %5279 }
0x38c4   :  { %v5282_v39 = vmul.f32 %v5280_v40, %v5277_v29 }
0x38c6   :  { %v9452_v11 = vadd.f32 %v5283_v14, %v5282_v39 }
0x38c7   :  { %v5435_v1 = vpop.permute.xlu0 %5434 }
0x38c8   :  { %5286 = vrot.lane.b32.xlu1 %v9452_v11, %s8327_s7 }
0x38cc   :  { %5444 = vrot.lane.b32.xlu1 %v5430_v26, %s8329_s18 }
0x393a   :  { %v5287_v21 = vpop.permute.xlu1 %5286 }
0x393b   :  { %7477 = vmatmul.mubr.msk.f32.vlgmr.msra.gmra.mrb[54].mxu0 %vm234_vm0, %v5287_v21 }
0x393c   :  { %7787 = vmatpush3.bf16.msra.mxu0 %v8960_v44  ;;  %7498 = vmatprep.mubr.msk.f32.mxu0 %vm8319_vm1, %v8318_v15 }
0x393d   :  { %7788 = vmatprep.subr.bf16.mxu0 %v8317_v13 }
0x393e   :  { %v5445_v19 = vpop.permute.xlu1 %5444 }
0x3940   :  { %7790 = vmatpush3.bf16.msra.mxu0 %v8973_v16 }
0x3941   :  { %7791 = vmatprep.subr.bf16.mxu0 %v8317_v13 }
0x3a0e   :  { %v5356_v33 = vpop.f32.mrb[54].mxu0 }
0x3a0f   :  { %v9465_v24 = vadd.f32 %v9093_v4, %v5356_v33  ;;  %v7478_v34 = vpop.f32.mrb[55].mxu0 }
0x3a11   :  { %v5437_v27 = vadd.f32 %v5435_v1, %v9465_v24 }
0x3a13   :  { %v6755_v48 = vmul.f32 -1.442695, %v5437_v27 }
0x3a15   :  { %8021 = vpow2.f32 %v6755_v48 }
0x3a1f   :  { %v8022_v51 = vpop.eup %8021 }
0x3a20   :  { %v5441_v36 = vadd.f32 1.0, %v8022_v51 }
0x3a22   :  { %8023 = vrcp.f32 %v5441_v36 }
0x3a2c   :  { %v8024_v35 = vpop.eup %8023 }
0x3a2d   :  { %v5447_v30 = vmul.f32 %v8024_v35, %v5445_v19  ;;  %v5454_v40 = vsub.f32 1.0, %v8024_v35  ;;  %v5460_v39 = vmul.f32 %v8024_v35, %v9391_v10 }
0x3a2f   :  { %5449 = vrot.lane.b32.xlu0 %v5447_v30, %s8330_s4 }
0x3aa1   :  { %v5450_v26 = vpop.permute.xlu0 %5449 }
0x3aa2   :  { %v5452_v29 = vadd.f32 %v5450_v26, %v9465_v24 }
0x3aa4   :  { %8025 = vtanh.f32 %v5452_v29 }
0x3aae   :  { %v8026_v4 = vpop.eup %8025 }
0x3aaf   :  { %5456 = vrot.lane.b32.xlu1 %v8026_v4, %s8324_s0 }
0x3ab3   :  { %5569 = vrot.lane.b32.xlu1 %v8903_v28, %s8325_s14 }
0x3b21   :  { %v5457_v14 = vpop.permute.xlu1 %5456 }
0x3b22   :  { %v5459_v33 = vmul.f32 %v5457_v14, %v5454_v40 }
0x3b24   :  { %v9474_v34 = vadd.f32 %v5460_v39, %v5459_v33 }
0x3b25   :  { %v5570_v28 = vpop.permute.xlu1 %5569 }
0x3b26   :  { %5463 = vrot.lane.b32.xlu0 %v9474_v34, %s8325_s14 }
0x3b2a   :  { %5572 = vrot.lane.b32.xlu0 %v8719_v54, %s8324_s0 }
0x3b98   :  { %v5464_v1 = vpop.permute.xlu0 %5463 }
0x3b99   :  { %7499 = vmatmul.mubr.msk.f32.vlgmr.msra.gmra.mrb[56].mxu0 %vm2105_vm3, %v5464_v1 }
0x3b9a   :  { %7793 = vmatpush3.bf16.msra.mxu0 %v9035_v2  ;;  %7510 = vmatprep.mubr.msk.f32.mxu0 %vm8319_vm1, %v8318_v15 }
0x3b9b   :  { %7797 = vmatprep.subr.bf16.mxu0 %v8317_v13 }
0x3b9c   :  { %v5573_v27 = vpop.permute.xlu0 %5572 }
0x3b9d   :  { %v9486_v48 = vsel %vm2189_vm4, %v5570_v28, %v5573_v27 }
0x3b9e   :  { %v5649_v51 = vrot.slane %v9486_v48, 4 }
0x3ba0   :  { %7511 = vmatmul.mubr.msk.f32.vlgmr.msra.gmra.mrb[58].mxu0 %vm234_vm0, %v5649_v51 }
0x3ba1   :  { %7799 = vmatpush3.bf16.msra.mxu0 %v9069_v49  ;;  %7524 = vmatprep.mubr.msk.f32.mxu0 %vm8319_vm1, %v8318_v15 }
0x3ba2   :  { %7806 = vmatprep.subr.bf16.mxu0 %v8317_v13 }
0x3c6c   :  { %v5533_v54 = vpop.f32.mrb[56].mxu0 }
0x3c6d   :  { %v9495_v36 = vadd.f32 %v9125_v22, %v5533_v54  ;;  %v7500_v35 = vpop.f32.mrb[57].mxu0 }
0x3c6f   :  { %7504 = vmatmul.mubr.msk.f32.vlgmr.msra.gmra.mrb[56].mxu1 %vm2189_vm4, %v9495_v36 }
0x3c70   :  { %7796 = vmatpush3.bf16.msra.mxu1 %v8990_v52  ;;  %7517 = vmatprep.mubr.msk.f32.mxu1 %vm8319_vm1, %v8318_v15 }
0x3c71   :  { %7800 = vmatprep.subr.bf16.mxu1 %v8317_v13 }
0x3c73   :  { %v5718_v19 = vpop.f32.mrb[58].mxu0  ;;  %7518 = vmatmul.mubr.msk.f32.vlgmr.msra.gmra.mrb[58].mxu1 %vm234_vm0, %v5287_v21 }
0x3c74   :  { %7802 = vmatpush3.bf16.msra.mxu1 %v9005_v59  ;;  %v7512_v30 = vpop.f32.mrb[59].mxu0  ;;  %7535 = vmatprep.mubr.msk.f32.mxu1 %vm8319_vm1, %v8318_v15 }
0x3c75   :  { %7803 = vmatprep.subr.bf16.mxu1 %v8317_v13 }
0x3c78   :  { %7805 = vmatpush3.bf16.msra.mxu1 %v9016_v63 }
0x3c79   :  { %7549 = vmatprep.subr.mxu1 %v8318_v15 }
0x3c7b   :  { %7536 = vmatmul.mubr.msk.f32.vlgmr.msra.gmra.mrb[60].mxu1 %vm2105_vm3, %v5464_v1 }
0x3c7c   :  { %7550 = vmatpush3.msra.mxu1 %v9428_v17  ;;  %7551 = vmatprep.mubr.msk.f32.mxu1 %vm8319_vm1, %v8318_v15 }
0x3c7d   :  { %7815 = vmatprep.subr.bf16.mxu1 %v8317_v13 }
0x3d42   :  { %v5644_v22 = vpop.f32.mrb[56].mxu1 }
0x3d43   :  { %v5719_v21 = vadd.f32 %v5718_v19, %v5644_v22  ;;  %v7505_v26 = vpop.f32.mrb[57].mxu1 }
0x3d44   :  { %v9520_v26 = vld [vmem:[#allocation15] ss:$0 sm:$0xff] }
0x3d45   :  { %v5722_v33 = vadd.f32 %v9444_v9, %v5719_v21 }
0x3d46   :  { %v5789_v29 = vpop.f32.mrb[58].mxu1 }
0x3d47   :  { %v5790_v4 = vadd.f32 %v9437_v60, %v5789_v29  ;;  %v7519_v40 = vpop.f32.mrb[59].mxu1 }
0x3d49   :  { %5801 = vrot.lane.b32.xlu1 %v5790_v4, %s8324_s0  ;;  %v5793_v1 = vadd.f32 %v5790_v4, %v5722_v33 }
0x3d4b   :  { %v6761_v17 = vmul.f32 -1.442695, %v5793_v1 }
0x3d4d   :  { %8027 = vpow2.f32 %v6761_v17  ;;  %v9540_v17 = vld [vmem:[%s9834_s19] ss:$0 sm:$0xff]  ;;  %s8332_s19 = smov 16  }
0x3d4e   :  { %v5963_v14 = vpop.f32.mrb[60].mxu1 }
0x3d4f   :  { %v7537_v39 = vpop.f32.mrb[61].mxu1  ;;  %v5964_v21 = vadd.f32 %v9520_v26, %v5963_v14 }
0x3d57   :  { %v8028_v28 = vpop.eup %8027 }
0x3d58   :  { %v5797_v27 = vadd.f32 1.0, %v8028_v28 }
0x3d5a   :  { %8029 = vrcp.f32 %v5797_v27 }
0x3d64   :  { %v8030_v51 = vpop.eup %8029 }
0x3d65   :  { %v5811_v29 = vsub.f32 1.0, %v8030_v51  ;;  %v5817_v40 = vmul.f32 %v8030_v51, %v9452_v11 }
0x3dbb   :  { %v5802_v54 = vpop.permute.xlu1 %5801 }
0x3dbc   :  { %v5804_v35 = vmul.f32 %v8030_v51, %v5802_v54 }
0x3dbe   :  { %5806 = vrot.lane.b32.xlu0 %v5804_v35, %s8326_s9 }
0x3e30   :  { %v5807_v19 = vpop.permute.xlu0 %5806 }
0x3e31   :  { %v5809_v30 = vadd.f32 %v5807_v19, %v5722_v33 }
0x3e33   :  { %8031 = vtanh.f32 %v5809_v30 }
0x3e3d   :  { %v8032_v22 = vpop.eup %8031 }
0x3e3e   :  { %5813 = vrot.lane.b32.xlu1 %v8032_v22, %s8327_s7 }
0x3e42   :  { %5968 = vrot.lane.b32.xlu1 %v5964_v21, %s8328_s8 }
0x3eb0   :  { %v5814_v4 = vpop.permute.xlu1 %5813 }
0x3eb1   :  { %v5816_v39 = vmul.f32 %v5814_v4, %v5811_v29 }
0x3eb3   :  { %v9525_v1 = vadd.f32 %v5817_v40, %v5816_v39 }
0x3eb4   :  { %v5969_v51 = vpop.permute.xlu1 %5968 }
0x3eb5   :  { %5820 = vrot.lane.b32.xlu0 %v9525_v1, %s8327_s7 }
0x3eb9   :  { %5978 = vrot.lane.b32.xlu0 %v5964_v21, %s8329_s18 }
0x3f27   :  { %v5821_v33 = vpop.permute.xlu0 %5820 }
0x3f28   :  { %7525 = vmatmul.mubr.msk.f32.vlgmr.msra.gmra.mrb[60].mxu0 %vm234_vm0, %v5821_v33 }
0x3f29   :  { %7808 = vmatpush3.bf16.msra.mxu0 %v8960_v44  ;;  %7546 = vmatprep.mubr.msk.f32.mxu0 %vm8319_vm1, %v8318_v15 }
0x3f2a   :  { %7809 = vmatprep.subr.bf16.mxu0 %v8317_v13 }
0x3f2b   :  { %v5979_v21 = vpop.permute.xlu0 %5978 }
0x3f2d   :  { %7811 = vmatpush3.bf16.msra.mxu0 %v8973_v16 }
0x3f2e   :  { %7812 = vmatprep.subr.bf16.mxu0 %v8317_v13 }
0x3ffb   :  { %v5890_v14 = vpop.f32.mrb[60].mxu0 }
0x3ffc   :  { %v9543_v28 = vadd.f32 %v9540_v17, %v5890_v14  ;;  %v7526_v27 = vpop.f32.mrb[61].mxu0 }
0x3ffe   :  { %v5971_v54 = vadd.f32 %v5969_v51, %v9543_v28 }
0x4000   :  { %v6764_v35 = vmul.f32 -1.442695, %v5971_v54 }
0x4002   :  { %8033 = vpow2.f32 %v6764_v35 }
0x400c   :  { %v8034_v19 = vpop.eup %8033 }
0x400d   :  { %v5975_v30 = vadd.f32 1.0, %v8034_v19 }
0x400f   :  { %8035 = vrcp.f32 %v5975_v30 }
0x4019   :  { %v8036_v22 = vpop.eup %8035 }
0x401a   :  { %v5981_v29 = vmul.f32 %v8036_v22, %v5979_v21  ;;  %v5988_v14 = vsub.f32 1.0, %v8036_v22  ;;  %v5994_v51 = vmul.f32 %v8036_v22, %v9474_v34 }
0x401c   :  { %5983 = vrot.lane.b32.xlu1 %v5981_v29, %s8330_s4 }
0x408e   :  { %v5984_v4 = vpop.permute.xlu1 %5983 }
0x408f   :  { %v5986_v40 = vadd.f32 %v5984_v4, %v9543_v28 }
0x4091   :  { %8037 = vtanh.f32 %v5986_v40 }
0x409b   :  { %v8038_v39 = vpop.eup %8037 }
0x409c   :  { %5990 = vrot.lane.b32.xlu0 %v8038_v39, %s8324_s0 }
0x40a0   :  { %6103 = vrot.lane.b32.xlu0 %v8942_v32, %s8325_s14 }
0x410e   :  { %v5991_v27 = vpop.permute.xlu0 %5990 }
0x410f   :  { %v5993_v54 = vmul.f32 %v5991_v27, %v5988_v14 }
0x4111   :  { %v9552_v35 = vadd.f32 %v5994_v51, %v5993_v54 }
0x4112   :  { %v6104_v32 = vpop.permute.xlu0 %6103 }
0x4113   :  { %5997 = vrot.lane.b32.xlu1 %v9552_v35, %s8325_s14 }
0x4117   :  { %6106 = vrot.lane.b32.xlu1 %v8683_v61, %s8324_s0 }
0x4185   :  { %v5998_v19 = vpop.permute.xlu1 %5997 }
0x4186   :  { %7547 = vmatmul.mubr.msk.f32.vlgmr.msra.gmra.mrb[62].mxu0 %vm2105_vm3, %v5998_v19 }
0x4187   :  { %7814 = vmatpush3.bf16.msra.mxu0 %v9035_v2  ;;  %7558 = vmatprep.mubr.msk.f32.mxu0 %vm8319_vm1, %v8318_v15  ;;  %v9572_v2 = vld [vmem:[#allocation16] ss:$0 sm:$0xff] }
0x4188   :  { %7818 = vmatprep.subr.bf16.mxu0 %v8317_v13 }
0x4189   :  { %v6107_v30 = vpop.permute.xlu1 %6106 }
0x418a   :  { %v9564_v22 = vsel %vm2189_vm4, %v6104_v32, %v6107_v30 }
0x418b   :  { %v6183_v21 = vrot.slane %v9564_v22, 6 }
0x418d   :  { %7559 = vmatmul.mubr.msk.f32.vlgmr.msra.gmra.mrb[64].mxu0 %vm234_vm0, %v6183_v21 }
0x418e   :  { %7820 = vmatpush3.bf16.msra.mxu0 %v9069_v49  ;;  %7572 = vmatprep.mubr.msk.f32.mxu0 %vm8319_vm1, %v8318_v15 }
0x418f   :  { %7827 = vmatprep.subr.bf16.mxu0 %v8317_v13 }
0x4259   :  { %v6067_v61 = vpop.f32.mrb[62].mxu0 }
0x425a   :  { %v9575_v29 = vadd.f32 %v9572_v2, %v6067_v61  ;;  %v7548_v4 = vpop.f32.mrb[63].mxu0 }
0x425c   :  { %7552 = vmatmul.mubr.msk.f32.vlgmr.msra.gmra.mrb[62].mxu1 %vm2189_vm4, %v9575_v29 }
0x425d   :  { %7817 = vmatpush3.bf16.msra.mxu1 %v8990_v52  ;;  %7565 = vmatprep.mubr.msk.f32.mxu1 %vm8319_vm1, %v8318_v15 }
0x425e   :  { %7821 = vmatprep.subr.bf16.mxu1 %v8317_v13 }
0x4260   :  { %v6252_v49 = vpop.f32.mrb[64].mxu0  ;;  %7566 = vmatmul.mubr.msk.f32.vlgmr.msra.gmra.mrb[64].mxu1 %vm234_vm0, %v5821_v33 }
0x4261   :  { %7823 = vmatpush3.bf16.msra.mxu1 %v9005_v59  ;;  %v7560_v40 = vpop.f32.mrb[65].mxu0  ;;  %7583 = vmatprep.mubr.msk.f32.mxu1 %vm8319_vm1, %v8318_v15 }
0x4262   :  { %7824 = vmatprep.subr.bf16.mxu1 %v8317_v13 }
0x4265   :  { %7826 = vmatpush3.bf16.msra.mxu1 %v9016_v63 }
0x4268   :  { %7584 = vmatmul.mubr.msk.f32.vlgmr.msra.gmra.mrb[66].mxu1 %vm2105_vm3, %v5998_v19 }
0x432f   :  { %v6178_v52 = vpop.f32.mrb[62].mxu1 }
0x4330   :  { %v6253_v39 = vadd.f32 %v6252_v49, %v6178_v52  ;;  %v7553_v14 = vpop.f32.mrb[63].mxu1 }
0x4332   :  { %v6256_v32 = vadd.f32 %v9444_v9, %v6253_v39 }
0x4333   :  { %v6323_v27 = vpop.f32.mrb[64].mxu1 }
0x4334   :  { %v6324_v51 = vadd.f32 %v9437_v60, %v6323_v27  ;;  %v7567_v54 = vpop.f32.mrb[65].mxu1 }
0x4336   :  { %6335 = vrot.lane.b32.xlu0 %v6324_v51, %s8324_s0  ;;  %v6327_v30 = vadd.f32 %v6324_v51, %v6256_v32 }
0x4338   :  { %v6770_v21 = vmul.f32 -1.442695, %v6327_v30 }
0x433a   :  { %8039 = vpow2.f32 %v6770_v21 }
0x433b   :  { %v6497_v59 = vpop.f32.mrb[66].mxu1 }
0x433c   :  { %v7585_v33 = vpop.f32.mrb[67].mxu1  ;;  %v6498_v14 = vadd.f32 %v9520_v26, %v6497_v59 }
0x4344   :  { %v8040_v61 = vpop.eup %8039 }
0x4345   :  { %v6331_v63 = vadd.f32 1.0, %v8040_v61 }
0x4347   :  { %8041 = vrcp.f32 %v6331_v63 }
0x4351   :  { %v8042_v19 = vpop.eup %8041 }
0x4352   :  { %v6345_v9 = vsub.f32 1.0, %v8042_v19  ;;  %v6351_v27 = vmul.f32 %v8042_v19, %v9525_v1 }
0x43a8   :  { %v6336_v4 = vpop.permute.xlu0 %6335 }
0x43a9   :  { %v6338_v49 = vmul.f32 %v8042_v19, %v6336_v4 }
0x43ab   :  { %6340 = vrot.lane.b32.xlu1 %v6338_v49, %s8326_s9 }
0x441d   :  { %v6341_v40 = vpop.permute.xlu1 %6340 }
0x441e   :  { %v6343_v60 = vadd.f32 %v6341_v40, %v6256_v32 }
0x4420   :  { %8043 = vtanh.f32 %v6343_v60  ;;  %v3411_v60 = vrot.slane %v9156_v47, 6  ;;  %v5541_v47 = vrot.slane %v9452_v11, 6 }
0x442a   :  { %v8044_v52 = vpop.eup %8043 }
0x442b   :  { %6347 = vrot.lane.b32.xlu0 %v8044_v52, %s8327_s7 }
0x442f   :  { %6502 = vrot.lane.b32.xlu0 %v6498_v14, %s8328_s8 }
0x449d   :  { %v6348_v39 = vpop.permute.xlu0 %6347 }
0x449e   :  { %v6350_v51 = vmul.f32 %v6348_v39, %v6345_v9  ;;  %v4475_v9 = vrot.slane %v9320_v58, 2  ;;  %v4479_v39 = vrot.slane %v9298_v62, 2 }
0x44a0   :  { %v6352_v54 = vadd.f32 %v6351_v27, %v6350_v51  ;;  %v5360_v51 = vmul.f32 0.5, %v9465_v24 }
0x44a1   :  { %v6503_v30 = vpop.permute.xlu0 %6502 }
0x44a2   :  { %6354 = vrot.lane.b32.xlu1 %v6352_v54, %s8327_s7  ;;  %v6609_v58 = vrot.slane %v6352_v54, 2 }
0x44a6   :  { %6512 = vrot.lane.b32.xlu1 %v6498_v14, %s8329_s18 }
0x4514   :  { %v6355_v33 = vpop.permute.xlu1 %6354 }
0x4515   :  { %7573 = vmatmul.mubr.msk.f32.vlgmr.msra.gmra.mrb[66].mxu0 %vm234_vm0, %v6355_v33 }
0x4516   :  { %7829 = vmatpush3.bf16.msra.mxu0 %v8960_v44  ;;  %7594 = vmatprep.mubr.msk.f32.mxu0 %vm8319_vm1, %v8318_v15 }
0x4517   :  { %7830 = vmatprep.subr.bf16.mxu0 %v8317_v13 }
0x4518   :  { %v6513_v44 = vpop.permute.xlu1 %6512 }
0x451a   :  { %7832 = vmatpush3.bf16.msra.mxu0 %v8973_v16 }
0x45e8   :  { %v6424_v26 = vpop.f32.mrb[66].mxu0 }
0x45e9   :  { %v6425_v59 = vadd.f32 %v9540_v17, %v6424_v26  ;;  %v7574_v32 = vpop.f32.mrb[67].mxu0  ;;  %v3230_v17 = vmul.f32 0.5, %v9169_v56  ;;  %v4484_v26 = vrot.slane %v9311_v6, 2 }
0x45ea   :  { %v5546_v32 = vrot.slane %v9465_v24, 6  ;;  %v3960_v24 = vrot.slane %v9270_v57, 4 }
0x45eb   :  { %v6505_v21 = vadd.f32 %v6503_v30, %v6425_v59  ;;  %v3231_v40 = vmul.f32 1.442695, %v3230_v17  ;;  %v6428_v33 = vmul.f32 0.5, %v6425_v59  ;;  %v6614_v11 = vrot.slane %v6425_v59, 2 }
0x45ed   :  { %v6773_v61 = vmul.f32 -1.442695, %v6505_v21  ;;  %v6429_v62 = vmul.f32 1.442695, %v6428_v33  ;;  %v3950_v33 = vrot.slane %v9240_v55, 4 }
0x45ef   :  { %8045 = vpow2.f32 %v6773_v61 }
0x45f9   :  { %v8046_v63 = vpop.eup %8045 }
0x45fa   :  { %v6509_v19 = vadd.f32 1.0, %v8046_v63 }
0x45fc   :  { %8047 = vrcp.f32 %v6509_v19 }
0x4606   :  { %v9607_v4 = vpop.eup %8047 }
0x4607   :  { %v6515_v15 = vmul.f32 %v9607_v4, %v6513_v44  ;;  %v6522_v44 = vsub.f32 1.0, %v9607_v4 }
0x4609   :  { %6517 = vrot.lane.b32.xlu0 %v6515_v15, %s8330_s4 }
0x467b   :  { %v6518_v13 = vpop.permute.xlu0 %6517 }
0x467c   :  { %v6520_v16 = vadd.f32 %v6518_v13, %v6425_v59  ;;  %v2681_v59 = vmul.f32 0.5, %v9096_v23  ;;  %v6528_v13 = vmul.f32 %v9607_v4, %v9552_v35 }
0x467e   :  { %8049 = vtanh.f32 %v6520_v16  ;;  %v2682_v19 = vmul.f32 1.442695, %v2681_v59  ;;  %v4494_v59 = vrot.slane %v9341_v8, 2 }
0x467f   :  { %8051 = vpow2.f32 %v3231_v40 }
0x4688   :  { %v8050_v49 = vpop.eup %8049 }
0x4689   :  { %6524 = vrot.lane.b32.xlu1 %v8050_v49, %s8324_s0  ;;  %v8052_v52 = vpop.eup %8051 }
0x468a   :  { %v3421_v14 = vrot.slane %v8052_v52, 6 }
0x468d   :  { %2873 = vrot.lane.b32.xlu1 %v9105_v42, %s8322_s26  ;;  %v5537_v42 = vrot.slane %v9474_v34, 6  ;;  %v5361_v34 = vmul.f32 1.442695, %v5360_v51  ;;  %v6075_v51 = vrot.slane %v9525_v1, 4 }
0x4691   :  { %2880 = vrot.lane.b32.xlu1 %v9096_v23, %s8330_s4  ;;  %v6090_v23 = vrot.slane %v9575_v29, 4  ;;  %v3416_v29 = vrot.slane %v9169_v56, 6 }
0x4695   :  { %2888 = vrot.lane.b32.xlu1 %v9128_v50, %s8329_s18  ;;  %v4298_v50 = vmul.f32 0.5, %v9311_v6 }
0x4697   :  { %v4299_v27 = vmul.f32 1.442695, %v4298_v50 }
0x4699   :  { %3412 = vrot.lane.b32.xlu1 %v3411_v60, %s8326_s9  ;;  %8053 = vpow2.f32 %v4299_v27  ;;  %v3407_v60 = vrot.slane %v9178_v37, 6 }
0x469a   :  { %8055 = vpow2.f32 %v5361_v34  ;;  %v5894_v34 = vmul.f32 0.5, %v9543_v28 }
0x469b   :  { %8057 = vpow2.f32 %v6429_v62 }
0x469c   :  { %8059 = vpow2.f32 %v2682_v19  ;;  %v5556_v19 = vrot.slane %v9495_v36, 6 }
0x469d   :  { %3422 = vrot.lane.b32.xlu1 %v3421_v14, %s8330_s4 }
0x46a1   :  { %4476 = vrot.lane.b32.xlu1 %v4475_v9, %s8322_s26 }
0x46a3   :  { %v8054_v30 = vpop.eup %8053 }
0x46a4   :  { %v4489_v54 = vrot.slane %v8054_v30, 2  ;;  %v8056_v21 = vpop.eup %8055 }
0x46a5   :  { %5538 = vrot.lane.b32.xlu1 %v5537_v42, %s8322_s26  ;;  %v5551_v61 = vrot.slane %v8056_v21, 6  ;;  %v8058_v63 = vpop.eup %8057 }
0x46a6   :  { %v6619_v6 = vrot.slane %v8058_v63, 2  ;;  %v8060_v4 = vpop.eup %8059 }
0x46a9   :  { %4480 = vrot.lane.b32.xlu1 %v4479_v39, %s8326_s9 }
0x46ad   :  { %5542 = vrot.lane.b32.xlu1 %v5541_v47, %s8326_s9 }
0x46b1   :  { %6610 = vrot.lane.b32.xlu1 %v6609_v58, %s8326_s9 }
0x46b5   :  { %4485 = vrot.lane.b32.xlu1 %v4484_v26, %s8330_s4 }
0x46b9   :  { %5547 = vrot.lane.b32.xlu1 %v5546_v32, %s8330_s4  ;;  %v5895_v32 = vmul.f32 1.442695, %v5894_v34 }
0x46bd   :  { %6615 = vrot.lane.b32.xlu1 %v6614_v11, %s8330_s4  ;;  %v6080_v11 = vrot.slane %v9543_v28, 4  ;;  %v3426_v28 = vrot.slane %v9199_v3, 6 }
0x46c1   :  { %4490 = vrot.lane.b32.xlu1 %v4489_v54, %s8330_s4 }
0x46c5   :  { %5552 = vrot.lane.b32.xlu1 %v5551_v61, %s8330_s4 }
0x46c9   :  { %6620 = vrot.lane.b32.xlu1 %v6619_v6, %s8330_s4 }
0x46cd   :  { %3961 = vrot.lane.b32.xlu1 %v3960_v24, %s8329_s18 }
0x46d1   :  { %5023 = vrot.lane.b32.xlu1 %v9412_v31, %s8329_s18 }
0x46fb   :  { %v6525_v15 = vpop.permute.xlu1 %6524 }
0x46fc   :  { %v6527_v16 = vmul.f32 %v6525_v15, %v6522_v44  ;;  %v2178_v15 = vmul.f32 0.5, %v8962_v45 }
0x46fe   :  { %v6529_v17 = vadd.f32 %v6528_v13, %v6527_v16  ;;  %v2179_v16 = vmul.f32 1.442695, %v2178_v15 }
0x46ff   :  { %v9649_v49 = vpop.permute.xlu1 %2873 }
0x4700   :  { %v6605_v57 = vrot.slane %v6529_v17, 2  ;;  %6531 = vrot.lane.b32.xlu0 %v6529_v17, %s8325_s14  ;;  %v2891_v36 = vsel %vm234_vm0, %v9048_v7, %v9649_v49 }
0x4702   :  { %6606 = vrot.lane.b32.xlu1 %v6605_v57, %s8322_s26 }
0x4703   :  { %v9653_v31 = vpop.permute.xlu1 %2880 }
0x4704   :  { %2876 = vrot.lane.b32.xlu0 %v9078_v0, %s8326_s9  ;;  %v3941_v0 = vrot.slane %v9249_v38, 4  ;;  %v3945_v38 = vrot.slane %v9227_v43, 4  ;;  %v4831_v43 = vmul.f32 0.5, %v9382_v25 }
0x4706   :  { %6091 = vrot.lane.b32.xlu1 %v6090_v23, %s8329_s18  ;;  %v4832_v62 = vmul.f32 1.442695, %v4831_v43 }
0x4707   :  { %v9659_v40 = vpop.permute.xlu1 %2888 }
0x4708   :  { %2884 = vrot.lane.b32.xlu0 %v8060_v4, %s8330_s4 }
0x470a   :  { %6637 = vrot.lane.b32.xlu1 %v8992_v53, %s8332_s19  ;;  %v6071_v53 = vrot.slane %v9552_v35, 4 }
0x470b   :  { %v9664_v52 = vpop.permute.xlu1 %3412 }
0x470c   :  { %3408 = vrot.lane.b32.xlu0 %v3407_v60, %s8322_s26 }
0x470f   :  { %v9668_v14 = vpop.permute.xlu1 %3422 }
0x4710   :  { %3417 = vrot.lane.b32.xlu0 %v3416_v29, %s8330_s4 }
0x4713   :  { %v4477_v9 = vpop.permute.xlu1 %4476 }
0x4714   :  { %3942 = vrot.lane.b32.xlu0 %v3941_v0, %s8322_s26  ;;  %v4498_v37 = vsel %vm234_vm0, %v9261_v12, %v4477_v9 }
0x4717   :  { %v5539_v42 = vpop.permute.xlu1 %5538 }
0x4718   :  { %5008 = vrot.lane.b32.xlu0 %v9391_v10, %s8322_s26  ;;  %v5560_v50 = vsel %vm234_vm0, %v9403_v20, %v5539_v42  ;;  %v3764_v10 = vmul.f32 0.5, %v9240_v55 }
0x471a   :  { %v3765_v12 = vmul.f32 1.442695, %v3764_v10 }
0x471b   :  { %v4481_v56 = vpop.permute.xlu1 %4480 }
0x471c   :  { %v4499_v39 = vsel %vm2892_vm5, %v4498_v37, %v4481_v56  ;;  %6072 = vrot.lane.b32.xlu0 %v6071_v53, %s8322_s26  ;;  %8061 = vpow2.f32 %v3765_v12 }
0x471d   :  { %8063 = vpow2.f32 %v4832_v62 }
0x471e   :  { %8065 = vpow2.f32 %v5895_v32 }
0x471f   :  { %v5543_v47 = vpop.permute.xlu1 %5542  ;;  %8067 = vpow2.f32 %v2179_v16 }
0x4720   :  { %v5561_v27 = vsel %vm2892_vm5, %v5560_v50, %v5543_v47  ;;  %3946 = vrot.lane.b32.xlu0 %v3945_v38, %s8326_s9 }
0x4723   :  { %v6611_v35 = vpop.permute.xlu1 %6610 }
0x4724   :  { %5011 = vrot.lane.b32.xlu0 %v9369_v18, %s8326_s9 }
0x4726   :  { %v8062_v30 = vpop.eup %8061 }
0x4727   :  { %v4486_v58 = vpop.permute.xlu1 %4485  ;;  %v3955_v21 = vrot.slane %v8062_v30, 4  ;;  %v8064_v6 = vpop.eup %8063 }
0x4728   :  { %v4500_v20 = vsel %vm2894_vm6, %v4499_v39, %v4486_v58  ;;  %6076 = vrot.lane.b32.xlu0 %v6075_v51, %s8326_s9 }
0x472b   :  { %v5548_v26 = vpop.permute.xlu1 %5547 }
0x472c   :  { %v5562_v18 = vsel %vm2894_vm6, %v5561_v27, %v5548_v26  ;;  %3951 = vrot.lane.b32.xlu0 %v3950_v33, %s8330_s4 }
0x472f   :  { %v6616_v1 = vpop.permute.xlu1 %6615 }
0x4730   :  { %5015 = vrot.lane.b32.xlu0 %v9382_v25, %s8330_s4  ;;  %v8066_v25 = vpop.eup %8065 }
0x4731   :  { %v6085_v24 = vrot.slane %v8066_v25, 4  ;;  %v8068_v42 = vpop.eup %8067 }
0x4732   :  { %v6640_v37 = vsel %vm2189_vm4, %v8962_v45, %v8068_v42 }
0x4733   :  { %v4491_v54 = vpop.permute.xlu1 %4490 }
0x4734   :  { %v9700_v55 = vsel %vm2896_vm7, %v4500_v20, %v4491_v54  ;;  %6081 = vrot.lane.b32.xlu0 %v6080_v11, %s8330_s4 }
0x4737   :  { %v5553_v61 = vpop.permute.xlu1 %5552 }
0x4738   :  { %v9704_v63 = vsel %vm2896_vm7, %v5562_v18, %v5553_v61  ;;  %3956 = vrot.lane.b32.xlu0 %v3955_v21, %s8330_s4 }
0x473b   :  { %v6621_v44 = vpop.permute.xlu1 %6620 }
0x473c   :  { %5019 = vrot.lane.b32.xlu0 %v8064_v6, %s8330_s4 }
0x473f   :  { %v3962_v13 = vpop.permute.xlu1 %3961 }
0x4740   :  { %6086 = vrot.lane.b32.xlu0 %v6085_v24, %s8330_s4 }
0x4743   :  { %v5024_v17 = vpop.permute.xlu1 %5023 }
0x4744   :  { %3427 = vrot.lane.b32.xlu0 %v3426_v28, %s8329_s18 }
0x4748   :  { %4495 = vrot.lane.b32.xlu0 %v4494_v59, %s8329_s18 }
0x474c   :  { %5557 = vrot.lane.b32.xlu0 %v5556_v19, %s8329_s18 }
0x4772   :  { %v6532_v57 = vpop.permute.xlu0 %6531 }
0x4773   :  { %7595 = vmatmul.mubr.msk.f32.vlgmr.msra.gmra.mrb[68].mxu0 %vm2105_vm3, %v6532_v57 }
0x4774   :  { %v6607_v3 = vpop.permute.xlu1 %6606 }
0x4775   :  { %v6628_v8 = vsel %vm234_vm0, %v9564_v22, %v6607_v3 }
0x4776   :  { %v6629_v23 = vsel %vm2892_vm5, %v6628_v8, %v6611_v35  ;;  %v2877_v4 = vpop.permute.xlu0 %2876 }
0x4777   :  { %v2893_v60 = vsel %vm2892_vm5, %v2891_v36, %v2877_v4  ;;  %v6630_v29 = vsel %vm2894_vm6, %v6629_v23, %v6616_v1 }
0x4778   :  { %v6092_v0 = vpop.permute.xlu1 %6091  ;;  %v9726_v9 = vsel %vm2896_vm7, %v6630_v29, %v6621_v44  ;;  %v2895_v22 = vsel %vm2894_vm6, %v2893_v60, %v9653_v31 }
0x477a   :  { %v2885_v53 = vpop.permute.xlu0 %2884 }
0x477b   :  { %v2897_v7 = vsel %vm2896_vm7, %v2895_v22, %v2885_v53 }
0x477c   :  { %v2899_v49 = vsel %vm2898_vm8, %v2897_v7, %v9659_v40  ;;  %v6638_v56 = vpop.permute.xlu1 %6637 }
0x477d   :  { %v2901_v39 = vsel %vm2900_vm9, %v2899_v49, %v9659_v40  ;;  %v6641_v38 = vsel %vm234_vm0, %v6640_v37, %v6638_v56 }
0x477e   :  { %v2903_v50 = vsel %vm2902_vm10, %v2901_v39, 0.0  ;;  %v6642_v47 = vsel %vm2892_vm5, %v6641_v38, 0.0  ;;  %v3409_v31 = vpop.permute.xlu0 %3408 }
0x477f   :  { %2904 = vst [vmem:[%s9839_s24] sm:$0x3] %v2903_v50  ;;  %6643 = vst [vmem:[%s9840_s25] sm:$0x3] %v6642_v47  ;;  %v3430_v61 = vsel %vm234_vm0, %v9117_v46, %v3409_v31 }
0x4780   :  { %v3431_v59 = vsel %vm2892_vm5, %v3430_v61, %v9664_v52 }
0x4782   :  { %v3418_v45 = vpop.permute.xlu0 %3417 }
0x4783   :  { %v3432_v15 = vsel %vm2894_vm6, %v3431_v59, %v3418_v45 }
0x4784   :  { %v3433_v57 = vsel %vm2896_vm7, %v3432_v15, %v9668_v14 }
0x4786   :  { %v3943_v27 = vpop.permute.xlu0 %3942 }
0x4787   :  { %v3964_v34 = vsel %vm234_vm0, %v9190_v41, %v3943_v27 }
0x478a   :  { %v5009_v10 = vpop.permute.xlu0 %5008 }
0x478b   :  { %v5026_v32 = vsel %vm234_vm0, %v9332_v5, %v5009_v10 }
0x478e   :  { %v6073_v35 = vpop.permute.xlu0 %6072 }
0x478f   :  { %v6094_v6 = vsel %vm234_vm0, %v9486_v48, %v6073_v35 }
0x4792   :  { %v3947_v40 = vpop.permute.xlu0 %3946 }
0x4793   :  { %v3965_v33 = vsel %vm2892_vm5, %v3964_v34, %v3947_v40 }
0x4796   :  { %v5012_v12 = vpop.permute.xlu0 %5011 }
0x4797   :  { %v5027_v11 = vsel %vm2892_vm5, %v5026_v32, %v5012_v12 }
0x479a   :  { %v6077_v51 = vpop.permute.xlu0 %6076 }
0x479b   :  { %v6095_v24 = vsel %vm2892_vm5, %v6094_v6, %v6077_v51 }
0x479e   :  { %v3952_v58 = vpop.permute.xlu0 %3951 }
0x479f   :  { %v3966_v26 = vsel %vm2894_vm6, %v3965_v33, %v3952_v58 }
0x47a2   :  { %v5016_v43 = vpop.permute.xlu0 %5015 }
0x47a3   :  { %v5028_v54 = vsel %vm2894_vm6, %v5027_v11, %v5016_v43 }
0x47a6   :  { %v6082_v20 = vpop.permute.xlu0 %6081 }
0x47a7   :  { %v6096_v46 = vsel %vm2894_vm6, %v6095_v24, %v6082_v20 }
0x47aa   :  { %v3957_v62 = vpop.permute.xlu0 %3956 }
0x47ab   :  { %v3967_v18 = vsel %vm2896_vm7, %v3966_v26, %v3957_v62 }
0x47ac   :  { %v3968_v1 = vsel %vm2898_vm8, %v3967_v18, %v3962_v13 }
0x47ad   :  { %v3969_v30 = vsel %vm2900_vm9, %v3968_v1, %v3962_v13 }
0x47ae   :  { %v3970_v41 = vsel %vm2902_vm10, %v3969_v30, 0.0  ;;  %v5020_v21 = vpop.permute.xlu0 %5019 }
0x47af   :  { %6730 = vst [vmem:[%s9839_s24] sm:$0x30] %v3970_v41  ;;  %v5029_v5 = vsel %vm2896_vm7, %v5028_v54, %v5020_v21 }
0x47b0   :  { %v5030_v25 = vsel %vm2898_vm8, %v5029_v5, %v5024_v17 }
0x47b1   :  { %v5031_v28 = vsel %vm2900_vm9, %v5030_v25, %v5024_v17 }
0x47b2   :  { %v5032_v19 = vsel %vm2902_vm10, %v5031_v28, 0.0  ;;  %v6087_v44 = vpop.permute.xlu0 %6086 }
0x47b3   :  { %6748 = vst [vmem:[%s9839_s24 + $0x8] sm:$0x3] %v5032_v19  ;;  %v6097_v48 = vsel %vm2896_vm7, %v6096_v46, %v6087_v44 }
0x47b4   :  { %v6098_v13 = vsel %vm2898_vm8, %v6097_v48, %v6092_v0 }
0x47b5   :  { %v6099_v16 = vsel %vm2900_vm9, %v6098_v13, %v6092_v0 }
0x47b6   :  { %v6100_v17 = vsel %vm2902_vm10, %v6099_v16, 0.0  ;;  %v3428_v52 = vpop.permute.xlu0 %3427 }
0x47b7   :  { %6766 = vst [vmem:[%s9839_s24 + $0x8] sm:$0x30] %v6100_v17  ;;  %v3434_v3 = vsel %vm2898_vm8, %v3433_v57, %v3428_v52 }
0x47b8   :  { %v3435_v8 = vsel %vm2900_vm9, %v3434_v3, %v3428_v52 }
0x47b9   :  { %v3436_v36 = vsel %vm2902_vm10, %v3435_v8, 0.0 }
0x47ba   :  { %6721 = vst [vmem:[%s9839_s24] sm:$0xc] %v3436_v36  ;;  %v4496_v23 = vpop.permute.xlu0 %4495 }
0x47bb   :  { %v4502_v4 = vsel %vm2898_vm8, %v9700_v55, %v4496_v23 }
0x47bc   :  { %v4503_v14 = vsel %vm2900_vm9, %v4502_v4, %v4496_v23 }
0x47bd   :  { %v4504_v60 = vsel %vm2902_vm10, %v4503_v14, 0.0 }
0x47be   :  { %6739 = vst [vmem:[%s9839_s24] sm:$0xc0] %v4504_v60  ;;  %v5558_v29 = vpop.permute.xlu0 %5557 }
0x47bf   :  { %v5564_v0 = vsel %vm2898_vm8, %v9704_v63, %v5558_v29 }
0x47c0   :  { %v5565_v42 = vsel %vm2900_vm9, %v5564_v0, %v5558_v29 }
0x47c1   :  { %v5566_v53 = vsel %vm2902_vm10, %v5565_v42, 0.0 }
0x47c2   :  { %6757 = vst [vmem:[%s9839_s24 + $0x8] sm:$0xc] %v5566_v53 }
0x4846   :  { %v6601_v55 = vpop.f32.mrb[68].mxu0 }
0x4847   :  { %v6602_v22 = vadd.f32 %v9572_v2, %v6601_v55  ;;  %v7596_v7 = vpop.f32.mrb[69].mxu0 }
0x4849   :  { %v6624_v49 = vrot.slane %v6602_v22, 2 }
0x484b   :  { %6625 = vrot.lane.b32.xlu0 %v6624_v49, %s8329_s18 }
0x48bd   :  { %v6626_v37 = vpop.permute.xlu0 %6625 }
0x48be   :  { %v6632_v56 = vsel %vm2898_vm8, %v9726_v9, %v6626_v37 }
0x48bf   :  { %v6633_v63 = vsel %vm2900_vm9, %v6632_v56, %v6626_v37 }
0x48c0   :  { %v6634_v39 = vsel %vm2902_vm10, %v6633_v63, 0.0 }
0x48c1   :  { %6775 = vst [vmem:[%s9839_s24 + $0x8] sm:$0xc0] %v6634_v39 }
0x48c2   :  { %6652 = vsyncpa [#allocation3], 1 }
0x48c3   :  { %6653 = vsyncpa [#allocation5], 1 }
0x48c4   :  { %6654 = vsyncpa [#allocation8], 1 }
0x48c5   :  { %6655 = vsyncpa [#allocation11], 1 }
0x48c6   :  { %6656 = vsyncpa [#allocation14], 1 }
0x48c7   :  { %6657 = vsyncpa [#allocation17], 1 }

</bundles_post_ra>
